<compile_context>
chip_gen: v7x
topology: tpu7x:2x2x1
jax: 0.10.0
libtpu: 0.0.40
codegen_flags: <defaults>
</compile_context>

<pallas_src>
import numpy as np
import jax
import jax.numpy as jnp
from jax.experimental import pallas as pl
from jax.experimental.pallas import tpu as pltpu

BN_EPS = 1e-5  # nn.BatchNorm2d default


# --------------------------- host-side constant builders ---------------------

def _interp_matrix_1d(out_size, in_size):
    """align_corners=True bilinear interpolation matrix (out_size, in_size)."""
    A = np.zeros((out_size, in_size), np.float32)
    if in_size == 1:
        A[:, 0] = 1.0
        return A
    src = np.arange(out_size, dtype=np.float32) * (in_size - 1) / (out_size - 1)
    i0 = np.clip(np.floor(src).astype(np.int32), 0, in_size - 2)
    frac = src - i0
    rows = np.arange(out_size)
    A[rows, i0] += 1.0 - frac
    A[rows, i0 + 1] += frac
    return A


def _padded_up_matrix(out_size, in_size):
    """Rows = x2 grid; cols = x1 grid.  Embeds the F.pad zero padding."""
    up_size = 2 * in_size
    diff = out_size - up_size
    assert diff >= 0, "x2 spatial must be >= 2 * x1 spatial"
    A = np.zeros((out_size, in_size), np.float32)
    A[diff // 2: diff // 2 + up_size, :] = _interp_matrix_1d(up_size, in_size)
    return A


def _tap_shift_matrices(H, W):
    """S[t, q, p] = 1 iff q == p + dy*W + dx and (y+dy, x+dx) is inside the
    image (p = y*W + x).  Then (X @ S[t])[c, p] = zero-padded tap value."""
    HW = H * W
    p = np.arange(HW)
    y, x = p // W, p % W
    mats = []
    for dy in (-1, 0, 1):
        for dx in (-1, 0, 1):
            q = (y + dy) * W + (x + dx)
            valid = ((y + dy >= 0) & (y + dy < H) &
                     (x + dx >= 0) & (x + dx < W))
            S = np.zeros((HW, HW), np.float32)
            S[q[valid], p[valid]] = 1.0
            mats.append(S)
    return np.stack(mats)  # (9, HW, HW)


# --------------------------------- kernel ------------------------------------

def up_double_conv_kernel(x1_ref, x2_ref, ut_ref, s_ref,
                          w1a_ref, w1b_ref, b1_ref, g1_ref, be1_ref,
                          w2_ref, b2_ref, g2_ref, be2_ref,
                          o_ref):
    f32 = jnp.float32
    n_batch = x1_ref.shape[0]
    hw = x2_ref.shape[2]
    cout = b1_ref.shape[0]

    ut = ut_ref[...]                               # (H1*W1, HW)
    w1a, w1b = w1a_ref[...], w1b_ref[...]          # (9*cout, C2), (9*cout, C1)
    w2 = w2_ref[...]                               # (9*cout, cout)
    b1, g1, be1 = b1_ref[...], g1_ref[...], be1_ref[...]   # (cout, 1)
    b2, g2, be2 = b2_ref[...], g2_ref[...], be2_ref[...]

    def apply_taps(p, bias):
        # p: (9*cout, hw) per-tap channel-mixed maps.  S_t embeds both the
        # spatial shift and the conv zero-padding mask, so summing the 9
        # lane-dense matmuls yields the 3x3 convolution.
        acc = jnp.dot(p[0:cout, :], s_ref[0], preferred_element_type=f32)
        for t in range(1, 9):
            acc = acc + jnp.dot(p[t * cout:(t + 1) * cout, :], s_ref[t],
                                preferred_element_type=f32)
        return acc + bias

    def bn_relu(ys, gamma, beta):
        # train-mode BatchNorm2d: batch statistics over (N, H, W), biased var.
        cnt = float(len(ys) * hw)
        s = ys[0].sum(axis=1, keepdims=True)
        ss = (ys[0] * ys[0]).sum(axis=1, keepdims=True)
        for y in ys[1:]:
            s = s + y.sum(axis=1, keepdims=True)
            ss = ss + (y * y).sum(axis=1, keepdims=True)
        mean = s / cnt
        var = ss / cnt - mean * mean
        scale = gamma * jax.lax.rsqrt(var + BN_EPS)
        shift = beta - mean * scale
        return [jnp.maximum(y * scale + shift, 0.0) for y in ys]

    # ---- upsample (+pad) and conv1 channel mixing per image -----------------
    y1 = []
    for n in range(n_batch):
        x1 = x1_ref[n]                                          # (C1, H1*W1)
        x2 = x2_ref[n]                                          # (C2, HW)
        up = jnp.dot(x1, ut, preferred_element_type=f32)        # (C1, HW)
        # cat([x2, up], channel) folded into conv1 by pre-splitting its weight,
        # so no in-kernel concatenate is needed.
        p = (jnp.dot(w1a, x2, preferred_element_type=f32) +
             jnp.dot(w1b, up, preferred_element_type=f32))      # (9*cout, HW)
        y1.append(apply_taps(p, b1))
    h1 = bn_relu(y1, g1, be1)                                   # BN1 + ReLU

    # ---- conv2, BN2 + ReLU ----------------------------------------------------
    y2 = [apply_taps(jnp.dot(w2, h, preferred_element_type=f32), b2)
          for h in h1]
    h2 = bn_relu(y2, g2, be2)

    for n in range(n_batch):
        o_ref[n] = h2[n].astype(o_ref.dtype)


# -------------------------------- wrapper ------------------------------------

def up_forward(x1, x2, w1, b1, g1, be1, w2, b2, g2, be2):
    N, C1, H1, W1 = x1.shape
    Nb, C2, H2, W2 = x2.shape
    assert Nb == N
    Cin = C1 + C2
    Cout = w1.shape[0]
    assert w1.shape == (Cout, Cin, 3, 3) and w2.shape == (Cout, Cout, 3, 3)
    HW1, HW2 = H1 * W1, H2 * W2

    # bilinear(align_corners=True, x2) upsample + F.pad as one matrix U^T
    ut = jnp.asarray(np.kron(_padded_up_matrix(H2, H1),
                             _padded_up_matrix(W2, W1)).T)      # (HW1, HW2)
    # per-tap shift/zero-pad matrices for the 3x3 convs
    s_mats = jnp.asarray(_tap_shift_matrices(H2, W2))           # (9, HW2, HW2)

    # conv weights as stacked per-tap channel-mixing matrices (tap-major rows)
    w1_t = jnp.transpose(w1, (2, 3, 0, 1)).reshape(9 * Cout, Cin)
    w1_a = w1_t[:, :C2]          # columns acting on x2  (cat order: [x2, x1up])
    w1_b = w1_t[:, C2:]          # columns acting on upsampled x1
    w2_t = jnp.transpose(w2, (2, 3, 0, 1)).reshape(9 * Cout, Cout)

    col = lambda v: jnp.asarray(v, jnp.float32).reshape(-1, 1)

    x1_f = x1.reshape(N, C1, HW1).astype(jnp.float32)
    x2_f = x2.reshape(N, C2, HW2).astype(jnp.float32)

    flops = 2 * N * (C1 * HW1 * HW2
                     + 9 * Cout * Cin * HW2 + 9 * Cout * HW2 * HW2
                     + 9 * Cout * Cout * HW2 + 9 * Cout * HW2 * HW2)
    bytes_accessed = 4 * (x1_f.size + x2_f.size + ut.size + s_mats.size
                          + w1_a.size + w1_b.size + w2_t.size
                          + 8 * Cout + N * Cout * HW2)
    cost = pl.CostEstimate(flops=flops, transcendentals=2 * Cout,
                           bytes_accessed=bytes_accessed)

    def full(shape):
        return pl.BlockSpec(shape, lambda i: (0,) * len(shape))

    out = pl.pallas_call(
        up_double_conv_kernel,
        out_shape=jax.ShapeDtypeStruct((N, Cout, HW2), jnp.float32),
        grid_spec=pltpu.PrefetchScalarGridSpec(
            num_scalar_prefetch=0,
            grid=(1,),   # tiny problem: one VMEM-resident step, no pipelining
            in_specs=[
                full((N, C1, HW1)),
                full((N, C2, HW2)),
                full((HW1, HW2)),
                full((9, HW2, HW2)),
                full((9 * Cout, C2)),
                full((9 * Cout, C1)),
                full((Cout, 1)), full((Cout, 1)), full((Cout, 1)),
                full((9 * Cout, Cout)),
                full((Cout, 1)), full((Cout, 1)), full((Cout, 1)),
            ],
            out_specs=full((N, Cout, HW2)),
        ),
        compiler_params=pltpu.CompilerParams(
            dimension_semantics=("arbitrary",)),
        cost_estimate=cost,
    )(x1_f, x2_f, ut, s_mats, w1_a, w1_b, col(b1), col(g1), col(be1),
      w2_t, col(b2), col(g2), col(be2))

    return out.reshape(N, Cout, H2, W2)


# --------------------------- pure-JAX reference -------------------------------

def _bilinear_up2_ref(x):
    # (N, C, H, W) -> (N, C, 2H, 2W); bilinear, align_corners=True
    N, C, H, W = x.shape
    Ho, Wo = 2 * H, 2 * W
    ys = jnp.arange(Ho, dtype=jnp.float32) * (H - 1) / (Ho - 1)
    xs = jnp.arange(Wo, dtype=jnp.float32) * (W - 1) / (Wo - 1)
    y0 = jnp.clip(jnp.floor(ys).astype(jnp.int32), 0, H - 2)
    x0 = jnp.clip(jnp.floor(xs).astype(jnp.int32), 0, W - 2)
    fy = (ys - y0)[None, None, :, None]
    fx = (xs - x0)[None, None, None, :]
    gt = x[:, :, y0, :]
    gb = x[:, :, y0 + 1, :]
    top = gt[:, :, :, x0] * (1 - fx) + gt[:, :, :, x0 + 1] * fx
    bot = gb[:, :, :, x0] * (1 - fx) + gb[:, :, :, x0 + 1] * fx
    return top * (1 - fy) + bot * fy


def up_module_ref(x1, x2, w1, b1, g1, be1, w2, b2, g2, be2):
    up = _bilinear_up2_ref(x1)
    dY = x2.shape[2] - up.shape[2]
    dX = x2.shape[3] - up.shape[3]
    up = jnp.pad(up, ((0, 0), (0, 0),
                      (dY // 2, dY - dY // 2), (dX // 2, dX - dX // 2)))
    x = jnp.concatenate([x2, up], axis=1)

    def conv(v, w, b):
        y = jax.lax.conv_general_dilated(
            v, w, (1, 1), ((1, 1), (1, 1)),
            dimension_numbers=('NCHW', 'OIHW', 'NCHW'))
        return y + b[None, :, None, None]

    def bn_relu(v, g, be):
        m = jnp.mean(v, axis=(0, 2, 3), keepdims=True)
        var = jnp.mean((v - m) ** 2, axis=(0, 2, 3), keepdims=True)
        v = (v - m) / jnp.sqrt(var + BN_EPS)
        v = v * g[None, :, None, None] + be[None, :, None, None]
        return jnp.maximum(v, 0.0)

    y = bn_relu(conv(x, w1, b1), g1, be1)
    return bn_relu(conv(y, w2, b2), g2, be2)


# ---------------------------------- main --------------------------------------

if __name__ == "__main__":
    key = jax.random.PRNGKey(0)
    ks = jax.random.split(key, 10)

    N = 2
    C1 = C2 = 4          # in_channels = 8 after concat (bilinear path)
    Cout = 4             # out_channels
    H1 = W1 = 8
    H2 = W2 = 16
    Cin = C1 + C2

    x1 = jax.random.normal(ks[0], (N, C1, H1, W1), jnp.float32)
    x2 = jax.random.normal(ks[1], (N, C2, H2, W2), jnp.float32)
    w1 = jax.random.normal(ks[2], (Cout, Cin, 3, 3), jnp.float32) * 0.1
    b1 = jax.random.normal(ks[3], (Cout,), jnp.float32) * 0.1
    g1 = 1.0 + 0.1 * jax.random.normal(ks[4], (Cout,), jnp.float32)
    be1 = 0.1 * jax.random.normal(ks[5], (Cout,), jnp.float32)
    w2 = jax.random.normal(ks[6], (Cout, Cout, 3, 3), jnp.float32) * 0.1
    b2 = jax.random.normal(ks[7], (Cout,), jnp.float32) * 0.1
    g2 = 1.0 + 0.1 * jax.random.normal(ks[8], (Cout,), jnp.float32)
    be2 = 0.1 * jax.random.normal(ks[9], (Cout,), jnp.float32)

    out = up_forward(x1, x2, w1, b1, g1, be1, w2, b2, g2, be2)
    out = jax.block_until_ready(out)

    ref = up_module_ref(x1, x2, w1, b1, g1, be1, w2, b2, g2, be2)
    assert out.shape == (N, Cout, H2, W2)
    assert jnp.allclose(out, ref, atol=1e-3, rtol=1e-3), "mismatch vs reference"

    print("KERNEL_OK")
</pallas_src>

<mosaic_0001>
module attributes {stable_mosaic.version = 11 : i64} {
  func.func @up_double_conv_kernel(%arg0: i32, %arg1: memref<2x4x64xf32, #tpu.memory_space<vmem>>, %arg2: memref<2x4x256xf32, #tpu.memory_space<vmem>>, %arg3: memref<64x256xf32, #tpu.memory_space<vmem>>, %arg4: memref<9x256x256xf32, #tpu.memory_space<vmem>>, %arg5: memref<36x4xf32, #tpu.memory_space<vmem>>, %arg6: memref<36x4xf32, #tpu.memory_space<vmem>>, %arg7: memref<4x1xf32, #tpu.memory_space<vmem>>, %arg8: memref<4x1xf32, #tpu.memory_space<vmem>>, %arg9: memref<4x1xf32, #tpu.memory_space<vmem>>, %arg10: memref<36x4xf32, #tpu.memory_space<vmem>>, %arg11: memref<4x1xf32, #tpu.memory_space<vmem>>, %arg12: memref<4x1xf32, #tpu.memory_space<vmem>>, %arg13: memref<4x1xf32, #tpu.memory_space<vmem>>, %arg14: memref<2x4x256xf32, #tpu.memory_space<vmem>>) attributes {dimension_semantics = [#tpu.dimension_semantics<arbitrary>], iteration_bounds = array<i64: 1>, scalar_prefetch = 0 : i64, scratch_operands = 0 : i64, tpu.core_type = #tpu.core_type<tc>, window_params = [{pipeline_mode = #tpu.pipeline_mode<synchronous>, transform_indices = @transform_0, window_bounds = array<i64: 2, 4, 64>}, {pipeline_mode = #tpu.pipeline_mode<synchronous>, transform_indices = @transform_1, window_bounds = array<i64: 2, 4, 256>}, {pipeline_mode = #tpu.pipeline_mode<synchronous>, transform_indices = @transform_2, window_bounds = array<i64: 64, 256>}, {pipeline_mode = #tpu.pipeline_mode<synchronous>, transform_indices = @transform_3, window_bounds = array<i64: 9, 256, 256>}, {pipeline_mode = #tpu.pipeline_mode<synchronous>, transform_indices = @transform_4, window_bounds = array<i64: 36, 4>}, {pipeline_mode = #tpu.pipeline_mode<synchronous>, transform_indices = @transform_5, window_bounds = array<i64: 36, 4>}, {pipeline_mode = #tpu.pipeline_mode<synchronous>, transform_indices = @transform_6, window_bounds = array<i64: 4, 1>}, {pipeline_mode = #tpu.pipeline_mode<synchronous>, transform_indices = @transform_7, window_bounds = array<i64: 4, 1>}, {pipeline_mode = #tpu.pipeline_mode<synchronous>, transform_indices = @transform_8, window_bounds = array<i64: 4, 1>}, {pipeline_mode = #tpu.pipeline_mode<synchronous>, transform_indices = @transform_9, window_bounds = array<i64: 36, 4>}, {pipeline_mode = #tpu.pipeline_mode<synchronous>, transform_indices = @transform_10, window_bounds = array<i64: 4, 1>}, {pipeline_mode = #tpu.pipeline_mode<synchronous>, transform_indices = @transform_11, window_bounds = array<i64: 4, 1>}, {pipeline_mode = #tpu.pipeline_mode<synchronous>, transform_indices = @transform_12, window_bounds = array<i64: 4, 1>}, {pipeline_mode = #tpu.pipeline_mode<synchronous>, transform_indices = @transform_13, window_bounds = array<i64: 2, 4, 256>}]} {
    %c0 = arith.constant 0 : index
    %c0_0 = arith.constant 0 : index
    %0 = vector.load %arg3[%c0, %c0_0] : memref<64x256xf32, #tpu.memory_space<vmem>>, vector<64x256xf32>
    %c0_1 = arith.constant 0 : index
    %c0_2 = arith.constant 0 : index
    %1 = vector.load %arg5[%c0_1, %c0_2] : memref<36x4xf32, #tpu.memory_space<vmem>>, vector<36x4xf32>
    %c0_3 = arith.constant 0 : index
    %c0_4 = arith.constant 0 : index
    %2 = vector.load %arg6[%c0_3, %c0_4] : memref<36x4xf32, #tpu.memory_space<vmem>>, vector<36x4xf32>
    %c0_5 = arith.constant 0 : index
    %c0_6 = arith.constant 0 : index
    %3 = vector.load %arg10[%c0_5, %c0_6] : memref<36x4xf32, #tpu.memory_space<vmem>>, vector<36x4xf32>
    %c0_7 = arith.constant 0 : index
    %c0_8 = arith.constant 0 : index
    %4 = vector.load %arg7[%c0_7, %c0_8] : memref<4x1xf32, #tpu.memory_space<vmem>>, vector<4x1xf32>
    %c0_9 = arith.constant 0 : index
    %c0_10 = arith.constant 0 : index
    %5 = vector.load %arg8[%c0_9, %c0_10] : memref<4x1xf32, #tpu.memory_space<vmem>>, vector<4x1xf32>
    %c0_11 = arith.constant 0 : index
    %c0_12 = arith.constant 0 : index
    %6 = vector.load %arg9[%c0_11, %c0_12] : memref<4x1xf32, #tpu.memory_space<vmem>>, vector<4x1xf32>
    %c0_13 = arith.constant 0 : index
    %c0_14 = arith.constant 0 : index
    %7 = vector.load %arg11[%c0_13, %c0_14] : memref<4x1xf32, #tpu.memory_space<vmem>>, vector<4x1xf32>
    %c0_15 = arith.constant 0 : index
    %c0_16 = arith.constant 0 : index
    %8 = vector.load %arg12[%c0_15, %c0_16] : memref<4x1xf32, #tpu.memory_space<vmem>>, vector<4x1xf32>
    %c0_17 = arith.constant 0 : index
    %c0_18 = arith.constant 0 : index
    %9 = vector.load %arg13[%c0_17, %c0_18] : memref<4x1xf32, #tpu.memory_space<vmem>>, vector<4x1xf32>
    %c0_19 = arith.constant 0 : index
    %c0_20 = arith.constant 0 : index
    %c0_21 = arith.constant 0 : index
    %10 = vector.load %arg1[%c0_19, %c0_20, %c0_21] : memref<2x4x64xf32, #tpu.memory_space<vmem>>, vector<1x4x64xf32>
    %11 = vector.shape_cast %10 : vector<1x4x64xf32> to vector<4x64xf32>
    %c0_22 = arith.constant 0 : index
    %c0_23 = arith.constant 0 : index
    %c0_24 = arith.constant 0 : index
    %12 = vector.load %arg2[%c0_22, %c0_23, %c0_24] : memref<2x4x256xf32, #tpu.memory_space<vmem>>, vector<1x4x256xf32>
    %13 = vector.shape_cast %12 : vector<1x4x256xf32> to vector<4x256xf32>
    %cst = arith.constant dense<0.000000e+00> : vector<4x256xf32>
    %14 = tpu.matmul %11, %0, %cst {dimension_numbers = #tpu.dot_dimension_numbers<[1], [0], [0], [1], [0, 0, 1, 1], [], []>} : vector<4x64xf32>, vector<64x256xf32>, vector<4x256xf32> -> vector<4x256xf32>
    %cst_25 = arith.constant dense<0.000000e+00> : vector<36x256xf32>
    %15 = tpu.matmul %1, %13, %cst_25 {dimension_numbers = #tpu.dot_dimension_numbers<[1], [0], [0], [1], [0, 0, 1, 1], [], []>} : vector<36x4xf32>, vector<4x256xf32>, vector<36x256xf32> -> vector<36x256xf32>
    %cst_26 = arith.constant dense<0.000000e+00> : vector<36x256xf32>
    %16 = tpu.matmul %2, %14, %cst_26 {dimension_numbers = #tpu.dot_dimension_numbers<[1], [0], [0], [1], [0, 0, 1, 1], [], []>} : vector<36x4xf32>, vector<4x256xf32>, vector<36x256xf32> -> vector<36x256xf32>
    %17 = arith.addf %15, %16 : vector<36x256xf32>
    %18 = vector.extract_strided_slice %17 {offsets = [0, 0], sizes = [4, 256], strides = [1, 1]} : vector<36x256xf32> to vector<4x256xf32>
    %c0_27 = arith.constant 0 : index
    %c0_28 = arith.constant 0 : index
    %c0_29 = arith.constant 0 : index
    %19 = vector.load %arg4[%c0_27, %c0_28, %c0_29] : memref<9x256x256xf32, #tpu.memory_space<vmem>>, vector<1x256x256xf32>
    %20 = vector.shape_cast %19 : vector<1x256x256xf32> to vector<256x256xf32>
    %cst_30 = arith.constant dense<0.000000e+00> : vector<4x256xf32>
    %21 = tpu.matmul %18, %20, %cst_30 {dimension_numbers = #tpu.dot_dimension_numbers<[1], [0], [0], [1], [0, 0, 1, 1], [], []>} : vector<4x256xf32>, vector<256x256xf32>, vector<4x256xf32> -> vector<4x256xf32>
    %22 = vector.extract_strided_slice %17 {offsets = [4, 0], sizes = [4, 256], strides = [1, 1]} : vector<36x256xf32> to vector<4x256xf32>
    %c1 = arith.constant 1 : index
    %c0_31 = arith.constant 0 : index
    %c0_32 = arith.constant 0 : index
    %23 = vector.load %arg4[%c1, %c0_31, %c0_32] : memref<9x256x256xf32, #tpu.memory_space<vmem>>, vector<1x256x256xf32>
    %24 = vector.shape_cast %23 : vector<1x256x256xf32> to vector<256x256xf32>
    %cst_33 = arith.constant dense<0.000000e+00> : vector<4x256xf32>
    %25 = tpu.matmul %22, %24, %cst_33 {dimension_numbers = #tpu.dot_dimension_numbers<[1], [0], [0], [1], [0, 0, 1, 1], [], []>} : vector<4x256xf32>, vector<256x256xf32>, vector<4x256xf32> -> vector<4x256xf32>
    %26 = arith.addf %21, %25 : vector<4x256xf32>
    %27 = vector.extract_strided_slice %17 {offsets = [8, 0], sizes = [4, 256], strides = [1, 1]} : vector<36x256xf32> to vector<4x256xf32>
    %c2 = arith.constant 2 : index
    %c0_34 = arith.constant 0 : index
    %c0_35 = arith.constant 0 : index
    %28 = vector.load %arg4[%c2, %c0_34, %c0_35] : memref<9x256x256xf32, #tpu.memory_space<vmem>>, vector<1x256x256xf32>
    %29 = vector.shape_cast %28 : vector<1x256x256xf32> to vector<256x256xf32>
    %cst_36 = arith.constant dense<0.000000e+00> : vector<4x256xf32>
    %30 = tpu.matmul %27, %29, %cst_36 {dimension_numbers = #tpu.dot_dimension_numbers<[1], [0], [0], [1], [0, 0, 1, 1], [], []>} : vector<4x256xf32>, vector<256x256xf32>, vector<4x256xf32> -> vector<4x256xf32>
    %31 = arith.addf %26, %30 : vector<4x256xf32>
    %32 = vector.extract_strided_slice %17 {offsets = [12, 0], sizes = [4, 256], strides = [1, 1]} : vector<36x256xf32> to vector<4x256xf32>
    %c3 = arith.constant 3 : index
    %c0_37 = arith.constant 0 : index
    %c0_38 = arith.constant 0 : index
    %33 = vector.load %arg4[%c3, %c0_37, %c0_38] : memref<9x256x256xf32, #tpu.memory_space<vmem>>, vector<1x256x256xf32>
    %34 = vector.shape_cast %33 : vector<1x256x256xf32> to vector<256x256xf32>
    %cst_39 = arith.constant dense<0.000000e+00> : vector<4x256xf32>
    %35 = tpu.matmul %32, %34, %cst_39 {dimension_numbers = #tpu.dot_dimension_numbers<[1], [0], [0], [1], [0, 0, 1, 1], [], []>} : vector<4x256xf32>, vector<256x256xf32>, vector<4x256xf32> -> vector<4x256xf32>
    %36 = arith.addf %31, %35 : vector<4x256xf32>
    %37 = vector.extract_strided_slice %17 {offsets = [16, 0], sizes = [4, 256], strides = [1, 1]} : vector<36x256xf32> to vector<4x256xf32>
    %c4 = arith.constant 4 : index
    %c0_40 = arith.constant 0 : index
    %c0_41 = arith.constant 0 : index
    %38 = vector.load %arg4[%c4, %c0_40, %c0_41] : memref<9x256x256xf32, #tpu.memory_space<vmem>>, vector<1x256x256xf32>
    %39 = vector.shape_cast %38 : vector<1x256x256xf32> to vector<256x256xf32>
    %cst_42 = arith.constant dense<0.000000e+00> : vector<4x256xf32>
    %40 = tpu.matmul %37, %39, %cst_42 {dimension_numbers = #tpu.dot_dimension_numbers<[1], [0], [0], [1], [0, 0, 1, 1], [], []>} : vector<4x256xf32>, vector<256x256xf32>, vector<4x256xf32> -> vector<4x256xf32>
    %41 = arith.addf %36, %40 : vector<4x256xf32>
    %42 = vector.extract_strided_slice %17 {offsets = [20, 0], sizes = [4, 256], strides = [1, 1]} : vector<36x256xf32> to vector<4x256xf32>
    %c5 = arith.constant 5 : index
    %c0_43 = arith.constant 0 : index
    %c0_44 = arith.constant 0 : index
    %43 = vector.load %arg4[%c5, %c0_43, %c0_44] : memref<9x256x256xf32, #tpu.memory_space<vmem>>, vector<1x256x256xf32>
    %44 = vector.shape_cast %43 : vector<1x256x256xf32> to vector<256x256xf32>
    %cst_45 = arith.constant dense<0.000000e+00> : vector<4x256xf32>
    %45 = tpu.matmul %42, %44, %cst_45 {dimension_numbers = #tpu.dot_dimension_numbers<[1], [0], [0], [1], [0, 0, 1, 1], [], []>} : vector<4x256xf32>, vector<256x256xf32>, vector<4x256xf32> -> vector<4x256xf32>
    %46 = arith.addf %41, %45 : vector<4x256xf32>
    %47 = vector.extract_strided_slice %17 {offsets = [24, 0], sizes = [4, 256], strides = [1, 1]} : vector<36x256xf32> to vector<4x256xf32>
    %c6 = arith.constant 6 : index
    %c0_46 = arith.constant 0 : index
    %c0_47 = arith.constant 0 : index
    %48 = vector.load %arg4[%c6, %c0_46, %c0_47] : memref<9x256x256xf32, #tpu.memory_space<vmem>>, vector<1x256x256xf32>
    %49 = vector.shape_cast %48 : vector<1x256x256xf32> to vector<256x256xf32>
    %cst_48 = arith.constant dense<0.000000e+00> : vector<4x256xf32>
    %50 = tpu.matmul %47, %49, %cst_48 {dimension_numbers = #tpu.dot_dimension_numbers<[1], [0], [0], [1], [0, 0, 1, 1], [], []>} : vector<4x256xf32>, vector<256x256xf32>, vector<4x256xf32> -> vector<4x256xf32>
    %51 = arith.addf %46, %50 : vector<4x256xf32>
    %52 = vector.extract_strided_slice %17 {offsets = [28, 0], sizes = [4, 256], strides = [1, 1]} : vector<36x256xf32> to vector<4x256xf32>
    %c7 = arith.constant 7 : index
    %c0_49 = arith.constant 0 : index
    %c0_50 = arith.constant 0 : index
    %53 = vector.load %arg4[%c7, %c0_49, %c0_50] : memref<9x256x256xf32, #tpu.memory_space<vmem>>, vector<1x256x256xf32>
    %54 = vector.shape_cast %53 : vector<1x256x256xf32> to vector<256x256xf32>
    %cst_51 = arith.constant dense<0.000000e+00> : vector<4x256xf32>
    %55 = tpu.matmul %52, %54, %cst_51 {dimension_numbers = #tpu.dot_dimension_numbers<[1], [0], [0], [1], [0, 0, 1, 1], [], []>} : vector<4x256xf32>, vector<256x256xf32>, vector<4x256xf32> -> vector<4x256xf32>
    %56 = arith.addf %51, %55 : vector<4x256xf32>
    %57 = vector.extract_strided_slice %17 {offsets = [32, 0], sizes = [4, 256], strides = [1, 1]} : vector<36x256xf32> to vector<4x256xf32>
    %c8 = arith.constant 8 : index
    %c0_52 = arith.constant 0 : index
    %c0_53 = arith.constant 0 : index
    %58 = vector.load %arg4[%c8, %c0_52, %c0_53] : memref<9x256x256xf32, #tpu.memory_space<vmem>>, vector<1x256x256xf32>
    %59 = vector.shape_cast %58 : vector<1x256x256xf32> to vector<256x256xf32>
    %cst_54 = arith.constant dense<0.000000e+00> : vector<4x256xf32>
    %60 = tpu.matmul %57, %59, %cst_54 {dimension_numbers = #tpu.dot_dimension_numbers<[1], [0], [0], [1], [0, 0, 1, 1], [], []>} : vector<4x256xf32>, vector<256x256xf32>, vector<4x256xf32> -> vector<4x256xf32>
    %61 = arith.addf %56, %60 : vector<4x256xf32>
    %62 = vector.broadcast %4 : vector<4x1xf32> to vector<4x256xf32>
    %63 = arith.addf %61, %62 : vector<4x256xf32>
    %c1_55 = arith.constant 1 : index
    %c0_56 = arith.constant 0 : index
    %c0_57 = arith.constant 0 : index
    %64 = vector.load %arg1[%c1_55, %c0_56, %c0_57] : memref<2x4x64xf32, #tpu.memory_space<vmem>>, vector<1x4x64xf32>
    %65 = vector.shape_cast %64 : vector<1x4x64xf32> to vector<4x64xf32>
    %c1_58 = arith.constant 1 : index
    %c0_59 = arith.constant 0 : index
    %c0_60 = arith.constant 0 : index
    %66 = vector.load %arg2[%c1_58, %c0_59, %c0_60] : memref<2x4x256xf32, #tpu.memory_space<vmem>>, vector<1x4x256xf32>
    %67 = vector.shape_cast %66 : vector<1x4x256xf32> to vector<4x256xf32>
    %cst_61 = arith.constant dense<0.000000e+00> : vector<4x256xf32>
    %68 = tpu.matmul %65, %0, %cst_61 {dimension_numbers = #tpu.dot_dimension_numbers<[1], [0], [0], [1], [0, 0, 1, 1], [], []>} : vector<4x64xf32>, vector<64x256xf32>, vector<4x256xf32> -> vector<4x256xf32>
    %cst_62 = arith.constant dense<0.000000e+00> : vector<36x256xf32>
    %69 = tpu.matmul %1, %67, %cst_62 {dimension_numbers = #tpu.dot_dimension_numbers<[1], [0], [0], [1], [0, 0, 1, 1], [], []>} : vector<36x4xf32>, vector<4x256xf32>, vector<36x256xf32> -> vector<36x256xf32>
    %cst_63 = arith.constant dense<0.000000e+00> : vector<36x256xf32>
    %70 = tpu.matmul %2, %68, %cst_63 {dimension_numbers = #tpu.dot_dimension_numbers<[1], [0], [0], [1], [0, 0, 1, 1], [], []>} : vector<36x4xf32>, vector<4x256xf32>, vector<36x256xf32> -> vector<36x256xf32>
    %71 = arith.addf %69, %70 : vector<36x256xf32>
    %72 = vector.extract_strided_slice %71 {offsets = [0, 0], sizes = [4, 256], strides = [1, 1]} : vector<36x256xf32> to vector<4x256xf32>
    %c0_64 = arith.constant 0 : index
    %c0_65 = arith.constant 0 : index
    %c0_66 = arith.constant 0 : index
    %73 = vector.load %arg4[%c0_64, %c0_65, %c0_66] : memref<9x256x256xf32, #tpu.memory_space<vmem>>, vector<1x256x256xf32>
    %74 = vector.shape_cast %73 : vector<1x256x256xf32> to vector<256x256xf32>
    %cst_67 = arith.constant dense<0.000000e+00> : vector<4x256xf32>
    %75 = tpu.matmul %72, %74, %cst_67 {dimension_numbers = #tpu.dot_dimension_numbers<[1], [0], [0], [1], [0, 0, 1, 1], [], []>} : vector<4x256xf32>, vector<256x256xf32>, vector<4x256xf32> -> vector<4x256xf32>
    %76 = vector.extract_strided_slice %71 {offsets = [4, 0], sizes = [4, 256], strides = [1, 1]} : vector<36x256xf32> to vector<4x256xf32>
    %c1_68 = arith.constant 1 : index
    %c0_69 = arith.constant 0 : index
    %c0_70 = arith.constant 0 : index
    %77 = vector.load %arg4[%c1_68, %c0_69, %c0_70] : memref<9x256x256xf32, #tpu.memory_space<vmem>>, vector<1x256x256xf32>
    %78 = vector.shape_cast %77 : vector<1x256x256xf32> to vector<256x256xf32>
    %cst_71 = arith.constant dense<0.000000e+00> : vector<4x256xf32>
    %79 = tpu.matmul %76, %78, %cst_71 {dimension_numbers = #tpu.dot_dimension_numbers<[1], [0], [0], [1], [0, 0, 1, 1], [], []>} : vector<4x256xf32>, vector<256x256xf32>, vector<4x256xf32> -> vector<4x256xf32>
    %80 = arith.addf %75, %79 : vector<4x256xf32>
    %81 = vector.extract_strided_slice %71 {offsets = [8, 0], sizes = [4, 256], strides = [1, 1]} : vector<36x256xf32> to vector<4x256xf32>
    %c2_72 = arith.constant 2 : index
    %c0_73 = arith.constant 0 : index
    %c0_74 = arith.constant 0 : index
    %82 = vector.load %arg4[%c2_72, %c0_73, %c0_74] : memref<9x256x256xf32, #tpu.memory_space<vmem>>, vector<1x256x256xf32>
    %83 = vector.shape_cast %82 : vector<1x256x256xf32> to vector<256x256xf32>
    %cst_75 = arith.constant dense<0.000000e+00> : vector<4x256xf32>
    %84 = tpu.matmul %81, %83, %cst_75 {dimension_numbers = #tpu.dot_dimension_numbers<[1], [0], [0], [1], [0, 0, 1, 1], [], []>} : vector<4x256xf32>, vector<256x256xf32>, vector<4x256xf32> -> vector<4x256xf32>
    %85 = arith.addf %80, %84 : vector<4x256xf32>
    %86 = vector.extract_strided_slice %71 {offsets = [12, 0], sizes = [4, 256], strides = [1, 1]} : vector<36x256xf32> to vector<4x256xf32>
    %c3_76 = arith.constant 3 : index
    %c0_77 = arith.constant 0 : index
    %c0_78 = arith.constant 0 : index
    %87 = vector.load %arg4[%c3_76, %c0_77, %c0_78] : memref<9x256x256xf32, #tpu.memory_space<vmem>>, vector<1x256x256xf32>
    %88 = vector.shape_cast %87 : vector<1x256x256xf32> to vector<256x256xf32>
    %cst_79 = arith.constant dense<0.000000e+00> : vector<4x256xf32>
    %89 = tpu.matmul %86, %88, %cst_79 {dimension_numbers = #tpu.dot_dimension_numbers<[1], [0], [0], [1], [0, 0, 1, 1], [], []>} : vector<4x256xf32>, vector<256x256xf32>, vector<4x256xf32> -> vector<4x256xf32>
    %90 = arith.addf %85, %89 : vector<4x256xf32>
    %91 = vector.extract_strided_slice %71 {offsets = [16, 0], sizes = [4, 256], strides = [1, 1]} : vector<36x256xf32> to vector<4x256xf32>
    %c4_80 = arith.constant 4 : index
    %c0_81 = arith.constant 0 : index
    %c0_82 = arith.constant 0 : index
    %92 = vector.load %arg4[%c4_80, %c0_81, %c0_82] : memref<9x256x256xf32, #tpu.memory_space<vmem>>, vector<1x256x256xf32>
    %93 = vector.shape_cast %92 : vector<1x256x256xf32> to vector<256x256xf32>
    %cst_83 = arith.constant dense<0.000000e+00> : vector<4x256xf32>
    %94 = tpu.matmul %91, %93, %cst_83 {dimension_numbers = #tpu.dot_dimension_numbers<[1], [0], [0], [1], [0, 0, 1, 1], [], []>} : vector<4x256xf32>, vector<256x256xf32>, vector<4x256xf32> -> vector<4x256xf32>
    %95 = arith.addf %90, %94 : vector<4x256xf32>
    %96 = vector.extract_strided_slice %71 {offsets = [20, 0], sizes = [4, 256], strides = [1, 1]} : vector<36x256xf32> to vector<4x256xf32>
    %c5_84 = arith.constant 5 : index
    %c0_85 = arith.constant 0 : index
    %c0_86 = arith.constant 0 : index
    %97 = vector.load %arg4[%c5_84, %c0_85, %c0_86] : memref<9x256x256xf32, #tpu.memory_space<vmem>>, vector<1x256x256xf32>
    %98 = vector.shape_cast %97 : vector<1x256x256xf32> to vector<256x256xf32>
    %cst_87 = arith.constant dense<0.000000e+00> : vector<4x256xf32>
    %99 = tpu.matmul %96, %98, %cst_87 {dimension_numbers = #tpu.dot_dimension_numbers<[1], [0], [0], [1], [0, 0, 1, 1], [], []>} : vector<4x256xf32>, vector<256x256xf32>, vector<4x256xf32> -> vector<4x256xf32>
    %100 = arith.addf %95, %99 : vector<4x256xf32>
    %101 = vector.extract_strided_slice %71 {offsets = [24, 0], sizes = [4, 256], strides = [1, 1]} : vector<36x256xf32> to vector<4x256xf32>
    %c6_88 = arith.constant 6 : index
    %c0_89 = arith.constant 0 : index
    %c0_90 = arith.constant 0 : index
    %102 = vector.load %arg4[%c6_88, %c0_89, %c0_90] : memref<9x256x256xf32, #tpu.memory_space<vmem>>, vector<1x256x256xf32>
    %103 = vector.shape_cast %102 : vector<1x256x256xf32> to vector<256x256xf32>
    %cst_91 = arith.constant dense<0.000000e+00> : vector<4x256xf32>
    %104 = tpu.matmul %101, %103, %cst_91 {dimension_numbers = #tpu.dot_dimension_numbers<[1], [0], [0], [1], [0, 0, 1, 1], [], []>} : vector<4x256xf32>, vector<256x256xf32>, vector<4x256xf32> -> vector<4x256xf32>
    %105 = arith.addf %100, %104 : vector<4x256xf32>
    %106 = vector.extract_strided_slice %71 {offsets = [28, 0], sizes = [4, 256], strides = [1, 1]} : vector<36x256xf32> to vector<4x256xf32>
    %c7_92 = arith.constant 7 : index
    %c0_93 = arith.constant 0 : index
    %c0_94 = arith.constant 0 : index
    %107 = vector.load %arg4[%c7_92, %c0_93, %c0_94] : memref<9x256x256xf32, #tpu.memory_space<vmem>>, vector<1x256x256xf32>
    %108 = vector.shape_cast %107 : vector<1x256x256xf32> to vector<256x256xf32>
    %cst_95 = arith.constant dense<0.000000e+00> : vector<4x256xf32>
    %109 = tpu.matmul %106, %108, %cst_95 {dimension_numbers = #tpu.dot_dimension_numbers<[1], [0], [0], [1], [0, 0, 1, 1], [], []>} : vector<4x256xf32>, vector<256x256xf32>, vector<4x256xf32> -> vector<4x256xf32>
    %110 = arith.addf %105, %109 : vector<4x256xf32>
    %111 = vector.extract_strided_slice %71 {offsets = [32, 0], sizes = [4, 256], strides = [1, 1]} : vector<36x256xf32> to vector<4x256xf32>
    %c8_96 = arith.constant 8 : index
    %c0_97 = arith.constant 0 : index
    %c0_98 = arith.constant 0 : index
    %112 = vector.load %arg4[%c8_96, %c0_97, %c0_98] : memref<9x256x256xf32, #tpu.memory_space<vmem>>, vector<1x256x256xf32>
    %113 = vector.shape_cast %112 : vector<1x256x256xf32> to vector<256x256xf32>
    %cst_99 = arith.constant dense<0.000000e+00> : vector<4x256xf32>
    %114 = tpu.matmul %111, %113, %cst_99 {dimension_numbers = #tpu.dot_dimension_numbers<[1], [0], [0], [1], [0, 0, 1, 1], [], []>} : vector<4x256xf32>, vector<256x256xf32>, vector<4x256xf32> -> vector<4x256xf32>
    %115 = arith.addf %110, %114 : vector<4x256xf32>
    %116 = vector.broadcast %4 : vector<4x1xf32> to vector<4x256xf32>
    %117 = arith.addf %115, %116 : vector<4x256xf32>
    %cst_100 = arith.constant dense<0.000000e+00> : vector<4xf32>
    %118 = vector.multi_reduction <add>, %63, %cst_100 [1] : vector<4x256xf32> to vector<4xf32>
    %119 = vector.shape_cast %118 : vector<4xf32> to vector<4x1xf32>
    %120 = arith.mulf %63, %63 : vector<4x256xf32>
    %cst_101 = arith.constant dense<0.000000e+00> : vector<4xf32>
    %121 = vector.multi_reduction <add>, %120, %cst_101 [1] : vector<4x256xf32> to vector<4xf32>
    %122 = vector.shape_cast %121 : vector<4xf32> to vector<4x1xf32>
    %cst_102 = arith.constant dense<0.000000e+00> : vector<4xf32>
    %123 = vector.multi_reduction <add>, %117, %cst_102 [1] : vector<4x256xf32> to vector<4xf32>
    %124 = vector.shape_cast %123 : vector<4xf32> to vector<4x1xf32>
    %125 = arith.addf %119, %124 : vector<4x1xf32>
    %126 = arith.mulf %117, %117 : vector<4x256xf32>
    %cst_103 = arith.constant dense<0.000000e+00> : vector<4xf32>
    %127 = vector.multi_reduction <add>, %126, %cst_103 [1] : vector<4x256xf32> to vector<4xf32>
    %128 = vector.shape_cast %127 : vector<4xf32> to vector<4x1xf32>
    %129 = arith.addf %122, %128 : vector<4x1xf32>
    %cst_104 = arith.constant 5.120000e+02 : f32
    %130 = vector.broadcast %cst_104 : f32 to vector<4x1xf32>
    %131 = arith.divf %125, %130 : vector<4x1xf32>
    %cst_105 = arith.constant 5.120000e+02 : f32
    %132 = vector.broadcast %cst_105 : f32 to vector<4x1xf32>
    %133 = arith.divf %129, %132 : vector<4x1xf32>
    %134 = arith.mulf %131, %131 : vector<4x1xf32>
    %135 = arith.subf %133, %134 : vector<4x1xf32>
    %cst_106 = arith.constant 9.99999974E-6 : f32
    %136 = vector.broadcast %cst_106 : f32 to vector<4x1xf32>
    %137 = arith.addf %135, %136 : vector<4x1xf32>
    %138 = math.rsqrt %137 : vector<4x1xf32>
    %139 = arith.mulf %5, %138 : vector<4x1xf32>
    %140 = arith.mulf %131, %139 : vector<4x1xf32>
    %141 = arith.subf %6, %140 : vector<4x1xf32>
    %142 = vector.broadcast %139 : vector<4x1xf32> to vector<4x256xf32>
    %143 = arith.mulf %63, %142 : vector<4x256xf32>
    %144 = vector.broadcast %141 : vector<4x1xf32> to vector<4x256xf32>
    %145 = arith.addf %143, %144 : vector<4x256xf32>
    %cst_107 = arith.constant 0.000000e+00 : f32
    %146 = vector.broadcast %cst_107 : f32 to vector<4x256xf32>
    %147 = arith.maximumf %145, %146 : vector<4x256xf32>
    %148 = vector.broadcast %139 : vector<4x1xf32> to vector<4x256xf32>
    %149 = arith.mulf %117, %148 : vector<4x256xf32>
    %150 = vector.broadcast %141 : vector<4x1xf32> to vector<4x256xf32>
    %151 = arith.addf %149, %150 : vector<4x256xf32>
    %cst_108 = arith.constant 0.000000e+00 : f32
    %152 = vector.broadcast %cst_108 : f32 to vector<4x256xf32>
    %153 = arith.maximumf %151, %152 : vector<4x256xf32>
    %cst_109 = arith.constant dense<0.000000e+00> : vector<36x256xf32>
    %154 = tpu.matmul %3, %147, %cst_109 {dimension_numbers = #tpu.dot_dimension_numbers<[1], [0], [0], [1], [0, 0, 1, 1], [], []>} : vector<36x4xf32>, vector<4x256xf32>, vector<36x256xf32> -> vector<36x256xf32>
    %155 = vector.extract_strided_slice %154 {offsets = [0, 0], sizes = [4, 256], strides = [1, 1]} : vector<36x256xf32> to vector<4x256xf32>
    %c0_110 = arith.constant 0 : index
    %c0_111 = arith.constant 0 : index
    %c0_112 = arith.constant 0 : index
    %156 = vector.load %arg4[%c0_110, %c0_111, %c0_112] : memref<9x256x256xf32, #tpu.memory_space<vmem>>, vector<1x256x256xf32>
    %157 = vector.shape_cast %156 : vector<1x256x256xf32> to vector<256x256xf32>
    %cst_113 = arith.constant dense<0.000000e+00> : vector<4x256xf32>
    %158 = tpu.matmul %155, %157, %cst_113 {dimension_numbers = #tpu.dot_dimension_numbers<[1], [0], [0], [1], [0, 0, 1, 1], [], []>} : vector<4x256xf32>, vector<256x256xf32>, vector<4x256xf32> -> vector<4x256xf32>
    %159 = vector.extract_strided_slice %154 {offsets = [4, 0], sizes = [4, 256], strides = [1, 1]} : vector<36x256xf32> to vector<4x256xf32>
    %c1_114 = arith.constant 1 : index
    %c0_115 = arith.constant 0 : index
    %c0_116 = arith.constant 0 : index
    %160 = vector.load %arg4[%c1_114, %c0_115, %c0_116] : memref<9x256x256xf32, #tpu.memory_space<vmem>>, vector<1x256x256xf32>
    %161 = vector.shape_cast %160 : vector<1x256x256xf32> to vector<256x256xf32>
    %cst_117 = arith.constant dense<0.000000e+00> : vector<4x256xf32>
    %162 = tpu.matmul %159, %161, %cst_117 {dimension_numbers = #tpu.dot_dimension_numbers<[1], [0], [0], [1], [0, 0, 1, 1], [], []>} : vector<4x256xf32>, vector<256x256xf32>, vector<4x256xf32> -> vector<4x256xf32>
    %163 = arith.addf %158, %162 : vector<4x256xf32>
    %164 = vector.extract_strided_slice %154 {offsets = [8, 0], sizes = [4, 256], strides = [1, 1]} : vector<36x256xf32> to vector<4x256xf32>
    %c2_118 = arith.constant 2 : index
    %c0_119 = arith.constant 0 : index
    %c0_120 = arith.constant 0 : index
    %165 = vector.load %arg4[%c2_118, %c0_119, %c0_120] : memref<9x256x256xf32, #tpu.memory_space<vmem>>, vector<1x256x256xf32>
    %166 = vector.shape_cast %165 : vector<1x256x256xf32> to vector<256x256xf32>
    %cst_121 = arith.constant dense<0.000000e+00> : vector<4x256xf32>
    %167 = tpu.matmul %164, %166, %cst_121 {dimension_numbers = #tpu.dot_dimension_numbers<[1], [0], [0], [1], [0, 0, 1, 1], [], []>} : vector<4x256xf32>, vector<256x256xf32>, vector<4x256xf32> -> vector<4x256xf32>
    %168 = arith.addf %163, %167 : vector<4x256xf32>
    %169 = vector.extract_strided_slice %154 {offsets = [12, 0], sizes = [4, 256], strides = [1, 1]} : vector<36x256xf32> to vector<4x256xf32>
    %c3_122 = arith.constant 3 : index
    %c0_123 = arith.constant 0 : index
    %c0_124 = arith.constant 0 : index
    %170 = vector.load %arg4[%c3_122, %c0_123, %c0_124] : memref<9x256x256xf32, #tpu.memory_space<vmem>>, vector<1x256x256xf32>
    %171 = vector.shape_cast %170 : vector<1x256x256xf32> to vector<256x256xf32>
    %cst_125 = arith.constant dense<0.000000e+00> : vector<4x256xf32>
    %172 = tpu.matmul %169, %171, %cst_125 {dimension_numbers = #tpu.dot_dimension_numbers<[1], [0], [0], [1], [0, 0, 1, 1], [], []>} : vector<4x256xf32>, vector<256x256xf32>, vector<4x256xf32> -> vector<4x256xf32>
    %173 = arith.addf %168, %172 : vector<4x256xf32>
    %174 = vector.extract_strided_slice %154 {offsets = [16, 0], sizes = [4, 256], strides = [1, 1]} : vector<36x256xf32> to vector<4x256xf32>
    %c4_126 = arith.constant 4 : index
    %c0_127 = arith.constant 0 : index
    %c0_128 = arith.constant 0 : index
    %175 = vector.load %arg4[%c4_126, %c0_127, %c0_128] : memref<9x256x256xf32, #tpu.memory_space<vmem>>, vector<1x256x256xf32>
    %176 = vector.shape_cast %175 : vector<1x256x256xf32> to vector<256x256xf32>
    %cst_129 = arith.constant dense<0.000000e+00> : vector<4x256xf32>
    %177 = tpu.matmul %174, %176, %cst_129 {dimension_numbers = #tpu.dot_dimension_numbers<[1], [0], [0], [1], [0, 0, 1, 1], [], []>} : vector<4x256xf32>, vector<256x256xf32>, vector<4x256xf32> -> vector<4x256xf32>
    %178 = arith.addf %173, %177 : vector<4x256xf32>
    %179 = vector.extract_strided_slice %154 {offsets = [20, 0], sizes = [4, 256], strides = [1, 1]} : vector<36x256xf32> to vector<4x256xf32>
    %c5_130 = arith.constant 5 : index
    %c0_131 = arith.constant 0 : index
    %c0_132 = arith.constant 0 : index
    %180 = vector.load %arg4[%c5_130, %c0_131, %c0_132] : memref<9x256x256xf32, #tpu.memory_space<vmem>>, vector<1x256x256xf32>
    %181 = vector.shape_cast %180 : vector<1x256x256xf32> to vector<256x256xf32>
    %cst_133 = arith.constant dense<0.000000e+00> : vector<4x256xf32>
    %182 = tpu.matmul %179, %181, %cst_133 {dimension_numbers = #tpu.dot_dimension_numbers<[1], [0], [0], [1], [0, 0, 1, 1], [], []>} : vector<4x256xf32>, vector<256x256xf32>, vector<4x256xf32> -> vector<4x256xf32>
    %183 = arith.addf %178, %182 : vector<4x256xf32>
    %184 = vector.extract_strided_slice %154 {offsets = [24, 0], sizes = [4, 256], strides = [1, 1]} : vector<36x256xf32> to vector<4x256xf32>
    %c6_134 = arith.constant 6 : index
    %c0_135 = arith.constant 0 : index
    %c0_136 = arith.constant 0 : index
    %185 = vector.load %arg4[%c6_134, %c0_135, %c0_136] : memref<9x256x256xf32, #tpu.memory_space<vmem>>, vector<1x256x256xf32>
    %186 = vector.shape_cast %185 : vector<1x256x256xf32> to vector<256x256xf32>
    %cst_137 = arith.constant dense<0.000000e+00> : vector<4x256xf32>
    %187 = tpu.matmul %184, %186, %cst_137 {dimension_numbers = #tpu.dot_dimension_numbers<[1], [0], [0], [1], [0, 0, 1, 1], [], []>} : vector<4x256xf32>, vector<256x256xf32>, vector<4x256xf32> -> vector<4x256xf32>
    %188 = arith.addf %183, %187 : vector<4x256xf32>
    %189 = vector.extract_strided_slice %154 {offsets = [28, 0], sizes = [4, 256], strides = [1, 1]} : vector<36x256xf32> to vector<4x256xf32>
    %c7_138 = arith.constant 7 : index
    %c0_139 = arith.constant 0 : index
    %c0_140 = arith.constant 0 : index
    %190 = vector.load %arg4[%c7_138, %c0_139, %c0_140] : memref<9x256x256xf32, #tpu.memory_space<vmem>>, vector<1x256x256xf32>
    %191 = vector.shape_cast %190 : vector<1x256x256xf32> to vector<256x256xf32>
    %cst_141 = arith.constant dense<0.000000e+00> : vector<4x256xf32>
    %192 = tpu.matmul %189, %191, %cst_141 {dimension_numbers = #tpu.dot_dimension_numbers<[1], [0], [0], [1], [0, 0, 1, 1], [], []>} : vector<4x256xf32>, vector<256x256xf32>, vector<4x256xf32> -> vector<4x256xf32>
    %193 = arith.addf %188, %192 : vector<4x256xf32>
    %194 = vector.extract_strided_slice %154 {offsets = [32, 0], sizes = [4, 256], strides = [1, 1]} : vector<36x256xf32> to vector<4x256xf32>
    %c8_142 = arith.constant 8 : index
    %c0_143 = arith.constant 0 : index
    %c0_144 = arith.constant 0 : index
    %195 = vector.load %arg4[%c8_142, %c0_143, %c0_144] : memref<9x256x256xf32, #tpu.memory_space<vmem>>, vector<1x256x256xf32>
    %196 = vector.shape_cast %195 : vector<1x256x256xf32> to vector<256x256xf32>
    %cst_145 = arith.constant dense<0.000000e+00> : vector<4x256xf32>
    %197 = tpu.matmul %194, %196, %cst_145 {dimension_numbers = #tpu.dot_dimension_numbers<[1], [0], [0], [1], [0, 0, 1, 1], [], []>} : vector<4x256xf32>, vector<256x256xf32>, vector<4x256xf32> -> vector<4x256xf32>
    %198 = arith.addf %193, %197 : vector<4x256xf32>
    %199 = vector.broadcast %7 : vector<4x1xf32> to vector<4x256xf32>
    %200 = arith.addf %198, %199 : vector<4x256xf32>
    %cst_146 = arith.constant dense<0.000000e+00> : vector<36x256xf32>
    %201 = tpu.matmul %3, %153, %cst_146 {dimension_numbers = #tpu.dot_dimension_numbers<[1], [0], [0], [1], [0, 0, 1, 1], [], []>} : vector<36x4xf32>, vector<4x256xf32>, vector<36x256xf32> -> vector<36x256xf32>
    %202 = vector.extract_strided_slice %201 {offsets = [0, 0], sizes = [4, 256], strides = [1, 1]} : vector<36x256xf32> to vector<4x256xf32>
    %c0_147 = arith.constant 0 : index
    %c0_148 = arith.constant 0 : index
    %c0_149 = arith.constant 0 : index
    %203 = vector.load %arg4[%c0_147, %c0_148, %c0_149] : memref<9x256x256xf32, #tpu.memory_space<vmem>>, vector<1x256x256xf32>
    %204 = vector.shape_cast %203 : vector<1x256x256xf32> to vector<256x256xf32>
    %cst_150 = arith.constant dense<0.000000e+00> : vector<4x256xf32>
    %205 = tpu.matmul %202, %204, %cst_150 {dimension_numbers = #tpu.dot_dimension_numbers<[1], [0], [0], [1], [0, 0, 1, 1], [], []>} : vector<4x256xf32>, vector<256x256xf32>, vector<4x256xf32> -> vector<4x256xf32>
    %206 = vector.extract_strided_slice %201 {offsets = [4, 0], sizes = [4, 256], strides = [1, 1]} : vector<36x256xf32> to vector<4x256xf32>
    %c1_151 = arith.constant 1 : index
    %c0_152 = arith.constant 0 : index
    %c0_153 = arith.constant 0 : index
    %207 = vector.load %arg4[%c1_151, %c0_152, %c0_153] : memref<9x256x256xf32, #tpu.memory_space<vmem>>, vector<1x256x256xf32>
    %208 = vector.shape_cast %207 : vector<1x256x256xf32> to vector<256x256xf32>
    %cst_154 = arith.constant dense<0.000000e+00> : vector<4x256xf32>
    %209 = tpu.matmul %206, %208, %cst_154 {dimension_numbers = #tpu.dot_dimension_numbers<[1], [0], [0], [1], [0, 0, 1, 1], [], []>} : vector<4x256xf32>, vector<256x256xf32>, vector<4x256xf32> -> vector<4x256xf32>
    %210 = arith.addf %205, %209 : vector<4x256xf32>
    %211 = vector.extract_strided_slice %201 {offsets = [8, 0], sizes = [4, 256], strides = [1, 1]} : vector<36x256xf32> to vector<4x256xf32>
    %c2_155 = arith.constant 2 : index
    %c0_156 = arith.constant 0 : index
    %c0_157 = arith.constant 0 : index
    %212 = vector.load %arg4[%c2_155, %c0_156, %c0_157] : memref<9x256x256xf32, #tpu.memory_space<vmem>>, vector<1x256x256xf32>
    %213 = vector.shape_cast %212 : vector<1x256x256xf32> to vector<256x256xf32>
    %cst_158 = arith.constant dense<0.000000e+00> : vector<4x256xf32>
    %214 = tpu.matmul %211, %213, %cst_158 {dimension_numbers = #tpu.dot_dimension_numbers<[1], [0], [0], [1], [0, 0, 1, 1], [], []>} : vector<4x256xf32>, vector<256x256xf32>, vector<4x256xf32> -> vector<4x256xf32>
    %215 = arith.addf %210, %214 : vector<4x256xf32>
    %216 = vector.extract_strided_slice %201 {offsets = [12, 0], sizes = [4, 256], strides = [1, 1]} : vector<36x256xf32> to vector<4x256xf32>
    %c3_159 = arith.constant 3 : index
    %c0_160 = arith.constant 0 : index
    %c0_161 = arith.constant 0 : index
    %217 = vector.load %arg4[%c3_159, %c0_160, %c0_161] : memref<9x256x256xf32, #tpu.memory_space<vmem>>, vector<1x256x256xf32>
    %218 = vector.shape_cast %217 : vector<1x256x256xf32> to vector<256x256xf32>
    %cst_162 = arith.constant dense<0.000000e+00> : vector<4x256xf32>
    %219 = tpu.matmul %216, %218, %cst_162 {dimension_numbers = #tpu.dot_dimension_numbers<[1], [0], [0], [1], [0, 0, 1, 1], [], []>} : vector<4x256xf32>, vector<256x256xf32>, vector<4x256xf32> -> vector<4x256xf32>
    %220 = arith.addf %215, %219 : vector<4x256xf32>
    %221 = vector.extract_strided_slice %201 {offsets = [16, 0], sizes = [4, 256], strides = [1, 1]} : vector<36x256xf32> to vector<4x256xf32>
    %c4_163 = arith.constant 4 : index
    %c0_164 = arith.constant 0 : index
    %c0_165 = arith.constant 0 : index
    %222 = vector.load %arg4[%c4_163, %c0_164, %c0_165] : memref<9x256x256xf32, #tpu.memory_space<vmem>>, vector<1x256x256xf32>
    %223 = vector.shape_cast %222 : vector<1x256x256xf32> to vector<256x256xf32>
    %cst_166 = arith.constant dense<0.000000e+00> : vector<4x256xf32>
    %224 = tpu.matmul %221, %223, %cst_166 {dimension_numbers = #tpu.dot_dimension_numbers<[1], [0], [0], [1], [0, 0, 1, 1], [], []>} : vector<4x256xf32>, vector<256x256xf32>, vector<4x256xf32> -> vector<4x256xf32>
    %225 = arith.addf %220, %224 : vector<4x256xf32>
    %226 = vector.extract_strided_slice %201 {offsets = [20, 0], sizes = [4, 256], strides = [1, 1]} : vector<36x256xf32> to vector<4x256xf32>
    %c5_167 = arith.constant 5 : index
    %c0_168 = arith.constant 0 : index
    %c0_169 = arith.constant 0 : index
    %227 = vector.load %arg4[%c5_167, %c0_168, %c0_169] : memref<9x256x256xf32, #tpu.memory_space<vmem>>, vector<1x256x256xf32>
    %228 = vector.shape_cast %227 : vector<1x256x256xf32> to vector<256x256xf32>
    %cst_170 = arith.constant dense<0.000000e+00> : vector<4x256xf32>
    %229 = tpu.matmul %226, %228, %cst_170 {dimension_numbers = #tpu.dot_dimension_numbers<[1], [0], [0], [1], [0, 0, 1, 1], [], []>} : vector<4x256xf32>, vector<256x256xf32>, vector<4x256xf32> -> vector<4x256xf32>
    %230 = arith.addf %225, %229 : vector<4x256xf32>
    %231 = vector.extract_strided_slice %201 {offsets = [24, 0], sizes = [4, 256], strides = [1, 1]} : vector<36x256xf32> to vector<4x256xf32>
    %c6_171 = arith.constant 6 : index
    %c0_172 = arith.constant 0 : index
    %c0_173 = arith.constant 0 : index
    %232 = vector.load %arg4[%c6_171, %c0_172, %c0_173] : memref<9x256x256xf32, #tpu.memory_space<vmem>>, vector<1x256x256xf32>
    %233 = vector.shape_cast %232 : vector<1x256x256xf32> to vector<256x256xf32>
    %cst_174 = arith.constant dense<0.000000e+00> : vector<4x256xf32>
    %234 = tpu.matmul %231, %233, %cst_174 {dimension_numbers = #tpu.dot_dimension_numbers<[1], [0], [0], [1], [0, 0, 1, 1], [], []>} : vector<4x256xf32>, vector<256x256xf32>, vector<4x256xf32> -> vector<4x256xf32>
    %235 = arith.addf %230, %234 : vector<4x256xf32>
    %236 = vector.extract_strided_slice %201 {offsets = [28, 0], sizes = [4, 256], strides = [1, 1]} : vector<36x256xf32> to vector<4x256xf32>
    %c7_175 = arith.constant 7 : index
    %c0_176 = arith.constant 0 : index
    %c0_177 = arith.constant 0 : index
    %237 = vector.load %arg4[%c7_175, %c0_176, %c0_177] : memref<9x256x256xf32, #tpu.memory_space<vmem>>, vector<1x256x256xf32>
    %238 = vector.shape_cast %237 : vector<1x256x256xf32> to vector<256x256xf32>
    %cst_178 = arith.constant dense<0.000000e+00> : vector<4x256xf32>
    %239 = tpu.matmul %236, %238, %cst_178 {dimension_numbers = #tpu.dot_dimension_numbers<[1], [0], [0], [1], [0, 0, 1, 1], [], []>} : vector<4x256xf32>, vector<256x256xf32>, vector<4x256xf32> -> vector<4x256xf32>
    %240 = arith.addf %235, %239 : vector<4x256xf32>
    %241 = vector.extract_strided_slice %201 {offsets = [32, 0], sizes = [4, 256], strides = [1, 1]} : vector<36x256xf32> to vector<4x256xf32>
    %c8_179 = arith.constant 8 : index
    %c0_180 = arith.constant 0 : index
    %c0_181 = arith.constant 0 : index
    %242 = vector.load %arg4[%c8_179, %c0_180, %c0_181] : memref<9x256x256xf32, #tpu.memory_space<vmem>>, vector<1x256x256xf32>
    %243 = vector.shape_cast %242 : vector<1x256x256xf32> to vector<256x256xf32>
    %cst_182 = arith.constant dense<0.000000e+00> : vector<4x256xf32>
    %244 = tpu.matmul %241, %243, %cst_182 {dimension_numbers = #tpu.dot_dimension_numbers<[1], [0], [0], [1], [0, 0, 1, 1], [], []>} : vector<4x256xf32>, vector<256x256xf32>, vector<4x256xf32> -> vector<4x256xf32>
    %245 = arith.addf %240, %244 : vector<4x256xf32>
    %246 = vector.broadcast %7 : vector<4x1xf32> to vector<4x256xf32>
    %247 = arith.addf %245, %246 : vector<4x256xf32>
    %cst_183 = arith.constant dense<0.000000e+00> : vector<4xf32>
    %248 = vector.multi_reduction <add>, %200, %cst_183 [1] : vector<4x256xf32> to vector<4xf32>
    %249 = vector.shape_cast %248 : vector<4xf32> to vector<4x1xf32>
    %250 = arith.mulf %200, %200 : vector<4x256xf32>
    %cst_184 = arith.constant dense<0.000000e+00> : vector<4xf32>
    %251 = vector.multi_reduction <add>, %250, %cst_184 [1] : vector<4x256xf32> to vector<4xf32>
    %252 = vector.shape_cast %251 : vector<4xf32> to vector<4x1xf32>
    %cst_185 = arith.constant dense<0.000000e+00> : vector<4xf32>
    %253 = vector.multi_reduction <add>, %247, %cst_185 [1] : vector<4x256xf32> to vector<4xf32>
    %254 = vector.shape_cast %253 : vector<4xf32> to vector<4x1xf32>
    %255 = arith.addf %249, %254 : vector<4x1xf32>
    %256 = arith.mulf %247, %247 : vector<4x256xf32>
    %cst_186 = arith.constant dense<0.000000e+00> : vector<4xf32>
    %257 = vector.multi_reduction <add>, %256, %cst_186 [1] : vector<4x256xf32> to vector<4xf32>
    %258 = vector.shape_cast %257 : vector<4xf32> to vector<4x1xf32>
    %259 = arith.addf %252, %258 : vector<4x1xf32>
    %cst_187 = arith.constant 5.120000e+02 : f32
    %260 = vector.broadcast %cst_187 : f32 to vector<4x1xf32>
    %261 = arith.divf %255, %260 : vector<4x1xf32>
    %cst_188 = arith.constant 5.120000e+02 : f32
    %262 = vector.broadcast %cst_188 : f32 to vector<4x1xf32>
    %263 = arith.divf %259, %262 : vector<4x1xf32>
    %264 = arith.mulf %261, %261 : vector<4x1xf32>
    %265 = arith.subf %263, %264 : vector<4x1xf32>
    %cst_189 = arith.constant 9.99999974E-6 : f32
    %266 = vector.broadcast %cst_189 : f32 to vector<4x1xf32>
    %267 = arith.addf %265, %266 : vector<4x1xf32>
    %268 = math.rsqrt %267 : vector<4x1xf32>
    %269 = arith.mulf %8, %268 : vector<4x1xf32>
    %270 = arith.mulf %261, %269 : vector<4x1xf32>
    %271 = arith.subf %9, %270 : vector<4x1xf32>
    %272 = vector.broadcast %269 : vector<4x1xf32> to vector<4x256xf32>
    %273 = arith.mulf %200, %272 : vector<4x256xf32>
    %274 = vector.broadcast %271 : vector<4x1xf32> to vector<4x256xf32>
    %275 = arith.addf %273, %274 : vector<4x256xf32>
    %cst_190 = arith.constant 0.000000e+00 : f32
    %276 = vector.broadcast %cst_190 : f32 to vector<4x256xf32>
    %277 = arith.maximumf %275, %276 : vector<4x256xf32>
    %278 = vector.broadcast %269 : vector<4x1xf32> to vector<4x256xf32>
    %279 = arith.mulf %247, %278 : vector<4x256xf32>
    %280 = vector.broadcast %271 : vector<4x1xf32> to vector<4x256xf32>
    %281 = arith.addf %279, %280 : vector<4x256xf32>
    %cst_191 = arith.constant 0.000000e+00 : f32
    %282 = vector.broadcast %cst_191 : f32 to vector<4x256xf32>
    %283 = arith.maximumf %281, %282 : vector<4x256xf32>
    %c0_192 = arith.constant 0 : index
    %c0_193 = arith.constant 0 : index
    %c0_194 = arith.constant 0 : index
    %284 = vector.load %arg14[%c0_192, %c0_193, %c0_194] : memref<2x4x256xf32, #tpu.memory_space<vmem>>, vector<1x4x256xf32>
    %285 = vector.shape_cast %284 : vector<1x4x256xf32> to vector<4x256xf32>
    %286 = vector.shape_cast %277 : vector<4x256xf32> to vector<1x4x256xf32>
    tpu.vector_store %arg14[%c0_192, %c0_193, %c0_194], %286 {strides = array<i32>} : memref<2x4x256xf32, #tpu.memory_space<vmem>>, vector<1x4x256xf32>,
    %c1_195 = arith.constant 1 : index
    %c0_196 = arith.constant 0 : index
    %c0_197 = arith.constant 0 : index
    %287 = vector.load %arg14[%c1_195, %c0_196, %c0_197] : memref<2x4x256xf32, #tpu.memory_space<vmem>>, vector<1x4x256xf32>
    %288 = vector.shape_cast %287 : vector<1x4x256xf32> to vector<4x256xf32>
    %289 = vector.shape_cast %283 : vector<4x256xf32> to vector<1x4x256xf32>
    tpu.vector_store %arg14[%c1_195, %c0_196, %c0_197], %289 {strides = array<i32>} : memref<2x4x256xf32, #tpu.memory_space<vmem>>, vector<1x4x256xf32>,
    return
  }
  func.func @transform_0(%arg0: i32) -> (i32, i32, i32) {
    %c0_i32 = arith.constant 0 : i32
    %c0_i32_0 = arith.constant 0 : i32
    %c0_i32_1 = arith.constant 0 : i32
    %c0_i32_2 = arith.constant 0 : i32
    return %c0_i32, %c0_i32_0, %c0_i32_1 : i32, i32, i32
  }
  func.func @transform_1(%arg0: i32) -> (i32, i32, i32) {
    %c0_i32 = arith.constant 0 : i32
    %c0_i32_0 = arith.constant 0 : i32
    %c0_i32_1 = arith.constant 0 : i32
    %c0_i32_2 = arith.constant 0 : i32
    return %c0_i32, %c0_i32_0, %c0_i32_1 : i32, i32, i32
  }
  func.func @transform_2(%arg0: i32) -> (i32, i32) {
    %c0_i32 = arith.constant 0 : i32
    %c0_i32_0 = arith.constant 0 : i32
    %c0_i32_1 = arith.constant 0 : i32
    return %c0_i32, %c0_i32_0 : i32, i32
  }
  func.func @transform_3(%arg0: i32) -> (i32, i32, i32) {
    %c0_i32 = arith.constant 0 : i32
    %c0_i32_0 = arith.constant 0 : i32
    %c0_i32_1 = arith.constant 0 : i32
    %c0_i32_2 = arith.constant 0 : i32
    return %c0_i32, %c0_i32_0, %c0_i32_1 : i32, i32, i32
  }
  func.func @transform_4(%arg0: i32) -> (i32, i32) {
    %c0_i32 = arith.constant 0 : i32
    %c0_i32_0 = arith.constant 0 : i32
    %c0_i32_1 = arith.constant 0 : i32
    return %c0_i32, %c0_i32_0 : i32, i32
  }
  func.func @transform_5(%arg0: i32) -> (i32, i32) {
    %c0_i32 = arith.constant 0 : i32
    %c0_i32_0 = arith.constant 0 : i32
    %c0_i32_1 = arith.constant 0 : i32
    return %c0_i32, %c0_i32_0 : i32, i32
  }
  func.func @transform_6(%arg0: i32) -> (i32, i32) {
    %c0_i32 = arith.constant 0 : i32
    %c0_i32_0 = arith.constant 0 : i32
    %c0_i32_1 = arith.constant 0 : i32
    return %c0_i32, %c0_i32_0 : i32, i32
  }
  func.func @transform_7(%arg0: i32) -> (i32, i32) {
    %c0_i32 = arith.constant 0 : i32
    %c0_i32_0 = arith.constant 0 : i32
    %c0_i32_1 = arith.constant 0 : i32
    return %c0_i32, %c0_i32_0 : i32, i32
  }
  func.func @transform_8(%arg0: i32) -> (i32, i32) {
    %c0_i32 = arith.constant 0 : i32
    %c0_i32_0 = arith.constant 0 : i32
    %c0_i32_1 = arith.constant 0 : i32
    return %c0_i32, %c0_i32_0 : i32, i32
  }
  func.func @transform_9(%arg0: i32) -> (i32, i32) {
    %c0_i32 = arith.constant 0 : i32
    %c0_i32_0 = arith.constant 0 : i32
    %c0_i32_1 = arith.constant 0 : i32
    return %c0_i32, %c0_i32_0 : i32, i32
  }
  func.func @transform_10(%arg0: i32) -> (i32, i32) {
    %c0_i32 = arith.constant 0 : i32
    %c0_i32_0 = arith.constant 0 : i32
    %c0_i32_1 = arith.constant 0 : i32
    return %c0_i32, %c0_i32_0 : i32, i32
  }
  func.func @transform_11(%arg0: i32) -> (i32, i32) {
    %c0_i32 = arith.constant 0 : i32
    %c0_i32_0 = arith.constant 0 : i32
    %c0_i32_1 = arith.constant 0 : i32
    return %c0_i32, %c0_i32_0 : i32, i32
  }
  func.func @transform_12(%arg0: i32) -> (i32, i32) {
    %c0_i32 = arith.constant 0 : i32
    %c0_i32_0 = arith.constant 0 : i32
    %c0_i32_1 = arith.constant 0 : i32
    return %c0_i32, %c0_i32_0 : i32, i32
  }
  func.func @transform_13(%arg0: i32) -> (i32, i32, i32) {
    %c0_i32 = arith.constant 0 : i32
    %c0_i32_0 = arith.constant 0 : i32
    %c0_i32_1 = arith.constant 0 : i32
    %c0_i32_2 = arith.constant 0 : i32
    return %c0_i32, %c0_i32_0, %c0_i32_1 : i32, i32, i32
  }
}

</mosaic_0001>

<bundles_post_ra>
// kernel: tpu_custom_call.1
= control target key start
LH: loop header
LB: loop body
LE: loop exit
PB: predicated region body
PF: predicated region fallthrough
CT: control target
= control target key end

     0   :  { %18 = vsyncpa [#allocation3], 0  ;;  %s9243_s0 = inlined_call_operand.hbm [shape: f32[2,4,64], index: 0, kind: input, shape index: {}]   ;;  %s9244_s1 = inlined_call_operand.hbm [shape: f32[2,4,256], index: 1, kind: input, shape index: {}]   ;;  %s9245_s2 = inlined_call_operand.hbm [shape: f32[64,256], index: 2, kind: input, shape index: {}]   ;;  %s9246_s3 = inlined_call_operand.hbm [shape: f32[9,256,256], index: 3, kind: input, shape index: {}]   ;;  %s9247_s4 = inlined_call_operand.vmem [shape: f32[36,4], index: 4, kind: input, shape index: {}]   ;;  %s9248_s5 = inlined_call_operand.vmem [shape: f32[36,4], index: 5, kind: input, shape index: {}]   ;;  %s9249_s6 = inlined_call_operand.vmem [shape: f32[4,1], index: 6, kind: input, shape index: {}]   ;;  %s9250_s7 = inlined_call_operand.vmem [shape: f32[4,1], index: 7, kind: input, shape index: {}]   ;;  %s9251_s8 = inlined_call_operand.vmem [shape: f32[4,1], index: 8, kind: input, shape index: {}]   ;;  %s9252_s9 = inlined_call_operand.vmem [shape: f32[36,4], index: 9, kind: input, shape index: {}]   ;;  %s9253_s10 = inlined_call_operand.vmem [shape: f32[4,1], index: 10, kind: input, shape index: {}]   ;;  %s9254_s11 = inlined_call_operand.vmem [shape: f32[4,1], index: 11, kind: input, shape index: {}]   ;;  %s9255_s12 = inlined_call_operand.vmem [shape: f32[4,1], index: 12, kind: input, shape index: {}]   ;;  %s9256_s13 = inlined_call_operand.hbm [shape: f32[2,4,256], index: 13, kind: output, shape index: {}]  }
   0x1   :  { %19 = vsyncpa [#allocation6], 0 }
   0x2   :  { %20 = vsyncpa [#allocation9], 0 }
   0x3   :  { %21 = vsyncpa [#allocation4], 0  ;;  %s7015_s25 = smov [#allocation5]   ;;  %s6897_s29 = scalar_lea.hbm %s9244_s1, 256 }
   0x4   :  { %s39_s26 = sshll.u32 %s7015_s25, 4  ;;  %p6898_p0 = scmp.ne.s32.totalorder %s9244_s1, %s6897_s29  ;;  %s40_s26 = int_to_ptr.vmem [resolvable:$true] %s39_s26 }
   0x5   :  { %p6901_p1 = scmp.lt.u32.totalorder %s6897_s29, %s9244_s1 }
   0x7   :  { %p6903_p2 = pnand %p6901_p1, %p6898_p0 }
   0x9   :  { %6906 = shalt.err (!%p6903_p2)
}
   0xa   :  { %s6907_s17 = scalar_lea.vmem %s40_s26, 256  ;;  %p6912_p4 = scmp.lt.s32.totalorder %s40_s26, %s40_s26 }
   0xb   :  { %p6908_p3 = scmp.ne.s32.totalorder %s40_s26, %s6907_s17  ;;  %p6913_p5 = scmp.lt.s32.totalorder %s6907_s17, %s6907_s17 }
   0xd   :  { %p6914_p6 = por %p6913_p5, %p6912_p4 }
   0xf   :  { %p6915_p7 = pnand %p6914_p6, %p6908_p3 }
  0x11   :  { %6918 = shalt.err (!%p6915_p7)
}
  0x12   :  { %s7016_s18 = smov 128   ;;  %s7017_s19 = smov 8  }
  0x13   :  { %45 = dma.hbm_to_vmem [thread:$0]  %s9244_s1, 256, %s40_s26, [#allocation6], %s7016_s18, %s7016_s18, %s7017_s19  }
  0x14   :  { %s7018_s22 = smov [#allocation2]   ;;  %s6919_s27 = scalar_lea.hbm %s9243_s0, 128 }
  0x15   :  { %s27_s23 = sshll.u32 %s7018_s22, 4  ;;  %p6920_p8 = scmp.ne.s32.totalorder %s9243_s0, %s6919_s27  ;;  %s28_s23 = int_to_ptr.vmem [resolvable:$true] %s27_s23 }
  0x16   :  { %p6923_p9 = scmp.lt.u32.totalorder %s6919_s27, %s9243_s0 }
  0x18   :  { %p6925_p10 = pnand %p6923_p9, %p6920_p8 }
  0x1a   :  { %6928 = shalt.err (!%p6925_p10)
}
  0x1b   :  { %s6929_s15 = scalar_lea.vmem %s28_s23, 128  ;;  %p6934_p12 = scmp.lt.s32.totalorder %s28_s23, %s28_s23 }
  0x1c   :  { %p6930_p11 = scmp.ne.s32.totalorder %s28_s23, %s6929_s15  ;;  %p6935_p13 = scmp.lt.s32.totalorder %s6929_s15, %s6929_s15 }
  0x1e   :  { %p6936_p0 = por %p6935_p13, %p6934_p12 }
  0x20   :  { %p6937_p1 = pnand %p6936_p0, %p6930_p11 }
  0x22   :  { %6940 = shalt.err (!%p6937_p1)
}
  0x23   :  { %s7019_s1 = smov 64   ;;  %s7020_s26 = smov 4  }
  0x24   :  { %33 = dma.hbm_to_vmem [thread:$0]  %s9243_s0, 128, %s28_s23, [#allocation3], %s7019_s1, %s7019_s1, %s7020_s26  }
  0x25   :  { %s7021_s20 = smov [#allocation7]   ;;  %s6941_s25 = scalar_lea.hbm %s9245_s2, 2048 }
  0x26   :  { %s51_s21 = sshll.u32 %s7021_s20, 4  ;;  %p6942_p2 = scmp.ne.s32.totalorder %s9245_s2, %s6941_s25  ;;  %s52_s21 = int_to_ptr.vmem [resolvable:$true] %s51_s21 }
  0x27   :  { %p6945_p3 = scmp.lt.u32.totalorder %s6941_s25, %s9245_s2 }
  0x29   :  { %p6947_p4 = pnand %p6945_p3, %p6942_p2 }
  0x2b   :  { %6950 = shalt.err (!%p6947_p4)
}
  0x2c   :  { %s6951_s14 = scalar_lea.vmem %s52_s21, 2048  ;;  %p6956_p6 = scmp.lt.s32.totalorder %s52_s21, %s52_s21 }
  0x2d   :  { %p6952_p5 = scmp.ne.s32.totalorder %s52_s21, %s6951_s14  ;;  %p6957_p7 = scmp.lt.s32.totalorder %s6951_s14, %s6951_s14 }
  0x2f   :  { %p6958_p8 = por %p6957_p7, %p6956_p6 }
  0x31   :  { %p6959_p9 = pnand %p6958_p8, %p6952_p5 }
  0x33   :  { %6962 = shalt.err (!%p6959_p9)
}
  0x34   :  { %s7022_s0 = smov 256   ;;  %s7023_s23 = smov 16  }
  0x35   :  { %57 = dma.hbm_to_vmem [thread:$0]  %s9245_s2, 2048, %s52_s21, [#allocation6], %s7022_s0, %s7022_s0, %s7023_s23  }
  0x36   :  { %s7024_s26 = smov [#allocation8]   ;;  %s6963_s22 = scalar_lea.hbm %s9246_s3, 73728 }
  0x37   :  { %s63_s16 = sshll.u32 %s7024_s26, 4  ;;  %p6964_p10 = scmp.ne.s32.totalorder %s9246_s3, %s6963_s22  ;;  %s64_s16 = int_to_ptr.vmem [resolvable:$true] %s63_s16 }
  0x38   :  { %p6967_p11 = scmp.lt.u32.totalorder %s6963_s22, %s9246_s3 }
  0x3a   :  { %p6969_p12 = pnand %p6967_p11, %p6964_p10 }
  0x3c   :  { %6972 = shalt.err (!%p6969_p12)
}
  0x3d   :  { %s6973_s29 = scalar_lea.vmem %s64_s16, 73728  ;;  %p6978_p0 = scmp.lt.s32.totalorder %s64_s16, %s64_s16 }
  0x3e   :  { %p6974_p13 = scmp.ne.s32.totalorder %s64_s16, %s6973_s29  ;;  %p6979_p1 = scmp.lt.s32.totalorder %s6973_s29, %s6973_s29 }
  0x40   :  { %p6980_p2 = por %p6979_p1, %p6978_p0 }
  0x42   :  { %p6981_p3 = pnand %p6980_p2, %p6974_p13 }
  0x44   :  { %6984 = shalt.err (!%p6981_p3)
}
  0x45   :  { %69 = dma.hbm_to_vmem [thread:$0]  %s9246_s3, 73728, %s64_s16, [#allocation9], %s7022_s0, %s7022_s0, %s7023_s23  }
  0x46   :  { %7007 = dma.done.wait [#allocation3], 128  }
  0x47   :  { %7008 = vsyncadd [#allocation3], 4294967168 }
  0x48   :  { %7009 = dma.done.wait [#allocation6], 2304  }
  0x49   :  { %7010 = vsyncadd [#allocation6], 4294964992 }
  0x4a   :  { %7011 = dma.done.wait [#allocation9], 73728  }
  0x4b   :  { %7012 = vsyncadd [#allocation9], 4294893568  ;;  %v9257_v0 = vmov 0.0   ;;  %v101_v1 = vld [vmem:[#allocation7 + $0x8] sm:$0xff]  ;;  %v103_v2 = vld [vmem:[#allocation7 + $0x18] sm:$0xff]  ;;  %vm139_vm0 = vcmask 523264  }
  0x4c   :  { %207 = vmatprep.mubr.f32.mxu0 %v9257_v0  ;;  %417 = vmatprep.mubr.f32.mxu1 %v9257_v0  ;;  %v100_v3 = vld [vmem:[#allocation7] sm:$0xff]  ;;  %v4444_v4 = vpack.c.bf16 %v103_v2, %v101_v1  ;;  %v102_v5 = vld [vmem:[#allocation7 + $0x10] sm:$0xff]  ;;  %v105_v6 = vld [vmem:[#allocation7 + $0x28] sm:$0xff]  ;;  %vm230_vm1 = vcmask 1043456   ;;  %vm214_vm2 = vcmask 31744  }
  0x4d   :  { %v107_v7 = vld [vmem:[#allocation7 + $0x38] sm:$0xff]  ;;  %v4446_v8 = vpack.c.bf16 %v102_v5, %v100_v3  ;;  %v104_v10 = vld [vmem:[#allocation7 + $0x20] sm:$0xff]  ;;  %v106_v11 = vld [vmem:[#allocation7 + $0x30] sm:$0xff] }
  0x4e   :  { %v4448_v9 = vpack.c.bf16 %v107_v7, %v105_v6  ;;  %v109_v12 = vld [vmem:[#allocation7 + $0x48] sm:$0xff]  ;;  %4445 = vmatprep.subr.bf16.mxu0 %v4444_v4  ;;  %v111_v13 = vld [vmem:[#allocation7 + $0x58] sm:$0xff]  ;;  %v4450_v14 = vpack.c.bf16 %v106_v11, %v104_v10  ;;  %v108_v16 = vld [vmem:[#allocation7 + $0x40] sm:$0xff] }
  0x4f   :  { %4447 = vmatpush1.bf16.msra.mxu0 %v4446_v8  ;;  %v4452_v15 = vpack.c.bf16 %v111_v13, %v109_v12  ;;  %v110_v17 = vld [vmem:[#allocation7 + $0x50] sm:$0xff]  ;;  %v113_v18 = vld [vmem:[#allocation7 + $0x68] sm:$0xff]  ;;  %v115_v19 = vld [vmem:[#allocation7 + $0x78] sm:$0xff] }
  0x50   :  { %4449 = vmatprep.subr.bf16.mxu0 %v4448_v9  ;;  %v4454_v20 = vpack.c.bf16 %v110_v17, %v108_v16  ;;  %v4456_v21 = vpack.c.bf16 %v115_v19, %v113_v18  ;;  %v112_v22 = vld [vmem:[#allocation7 + $0x60] sm:$0xff]  ;;  %v114_v23 = vld [vmem:[#allocation7 + $0x70] sm:$0xff]  ;;  %v137_v25 = vld [vmem:[#allocation2] sm:$0xf] }
  0x51   :  { %v4458_v24 = vpack.c.bf16 %v114_v23, %v112_v22  ;;  %v138_v26 = vld [vmem:[#allocation5] sm:$0xff]  ;;  %v116_v28 = vld [vmem:[%s9247_s4] sm:$0xff]  ;;  %v118_v30 = vld [vmem:[%s9247_s4 + $0x10] sm:$0xff] }
  0x52   :  { %v333_v27 = vcombine.high %v138_v26, %v138_v26  ;;  %v117_v29 = vld [vmem:[%s9247_s4 + $0x8] sm:$0xff]  ;;  %v119_v31 = vld [vmem:[%s9247_s4 + $0x18] sm:$0xff]  ;;  %v514_v32 = vld [vmem:[#allocation8 + $0x208] sm:$0xff] }
  0x53   :  { %4451 = vmatpush1.bf16.msra.mxu0 %v4450_v14  ;;  %v516_v33 = vld [vmem:[#allocation8 + $0x218] sm:$0xff]  ;;  %v513_v34 = vld [vmem:[#allocation8 + $0x200] sm:$0xff]  ;;  %v515_v35 = vld [vmem:[#allocation8 + $0x210] sm:$0xff] }
  0x54   :  { %4453 = vmatprep.subr.bf16.mxu0 %v4452_v15  ;;  %4408 = vmatprep.subr.msk.mxu1 %vm230_vm1, %v333_v27  ;;  %v518_v36 = vld [vmem:[#allocation8 + $0x228] sm:$0xff]  ;;  %v520_v37 = vld [vmem:[#allocation8 + $0x238] sm:$0xff]  ;;  %v7175_v39 = vpack.c.bf16 %v516_v33, %v514_v32  ;;  %v7180_v42 = vpack.c.bf16 %v515_v35, %v513_v34  ;;  %v517_v44 = vld [vmem:[#allocation8 + $0x220] sm:$0xff] }
  0x55   :  { %4409 = vmatpush1.msk.msra.mxu1 %vm230_vm1, %v138_v26  ;;  %v121_v41 = vld [vmem:[%s9248_s5] sm:$0xff]  ;;  %v7183_v43 = vpack.c.bf16 %v520_v37, %v518_v36  ;;  %v519_v45 = vld [vmem:[#allocation8 + $0x230] sm:$0xff]  ;;  %v524_v47 = vld [vmem:[#allocation8 + $0x258] sm:$0xff] }
  0x56   :  { %4410 = vmatmul.mubr.msk.f32.vlgmr.msra.gmra.mrb[0].mxu1 %vm214_vm2, %v116_v28  ;;  %5037 = vmatprep.subr.bf16.mxu1 %v4444_v4  ;;  %9811 = vst [vmem:[#allocation15_spill] sm:$0xff] %v7175_v39  ;;  %9812 = vst [vmem:[#allocation16_spill] sm:$0xff] %v7180_v42  ;;  %v522_v46 = vld [vmem:[#allocation8 + $0x248] sm:$0xff]  ;;  %v122_v48 = vld [vmem:[%s9248_s5 + $0x8] sm:$0xff]  ;;  %v7193_v49 = vpack.c.bf16 %v519_v45, %v517_v44 }
  0x57   :  { %4455 = vmatpush1.bf16.msra.mxu0 %v4454_v20  ;;  %423 = vmatprep.mubr.f32.mxu1 %v9257_v0  ;;  %9813 = vst [vmem:[#allocation17_spill] sm:$0xff] %v7183_v43  ;;  %v7196_v50 = vpack.c.bf16 %v524_v47, %v522_v46  ;;  %v521_v51 = vld [vmem:[#allocation8 + $0x240] sm:$0xff]  ;;  %v523_v52 = vld [vmem:[#allocation8 + $0x250] sm:$0xff]  ;;  %v526_v53 = vld [vmem:[#allocation8 + $0x268] sm:$0xff] }
  0x58   :  { %4457 = vmatprep.subr.bf16.mxu0 %v4456_v21  ;;  %5039 = vmatpush1.bf16.msra.mxu1 %v4446_v8  ;;  %9814 = vst [vmem:[#allocation18_spill] sm:$0xff] %v7193_v49  ;;  %v528_v54 = vld [vmem:[#allocation8 + $0x278] sm:$0xff]  ;;  %v7200_v55 = vpack.c.bf16 %v523_v52, %v521_v51  ;;  %v525_v58 = vld [vmem:[#allocation8 + $0x260] sm:$0xff]  ;;  %v527_v59 = vld [vmem:[#allocation8 + $0x270] sm:$0xff] }
  0x59   :  { %5041 = vmatprep.subr.bf16.mxu1 %v4448_v9  ;;  %9815 = vst [vmem:[#allocation19_spill] sm:$0xff] %v7196_v50  ;;  %v123_v56 = vld [vmem:[%s9248_s5 + $0x10] sm:$0xff]  ;;  %v7207_v57 = vpack.c.bf16 %v528_v54, %v526_v53  ;;  %v530_v60 = vld [vmem:[#allocation8 + $0x288] sm:$0xff]  ;;  %v7211_v62 = vpack.c.bf16 %v527_v59, %v525_v58  ;;  %v124_v63 = vld [vmem:[%s9248_s5 + $0x18] sm:$0xff] }
  0x5a   :  { %4411 = vmatmul.mubr.msk.f32.gmra.mrb[2].mxu1 %vm214_vm2, %v117_v29  ;;  %9816 = vst [vmem:[#allocation20_spill] sm:$0xff] %v7200_v55  ;;  %v532_v61 = vld [vmem:[#allocation8 + $0x298] sm:$0xff]  ;;  %v529_v2 = vld [vmem:[#allocation8 + $0x280] sm:$0xff]  ;;  %v531_v3 = vld [vmem:[#allocation8 + $0x290] sm:$0xff] }
  0x5b   :  { %4459 = vmatpush1.bf16.msra.mxu0 %v4458_v24  ;;  %429 = vmatprep.mubr.f32.mxu1 %v9257_v0  ;;  %9817 = vst [vmem:[#allocation21_spill] sm:$0xff] %v7207_v57  ;;  %9818 = vst [vmem:[#allocation22_spill] sm:$0xff] %v7211_v62  ;;  %v7218_v1 = vpack.c.bf16 %v532_v61, %v530_v60  ;;  %v534_v4 = vld [vmem:[#allocation8 + $0x2a8] sm:$0xff]  ;;  %v536_v5 = vld [vmem:[#allocation8 + $0x2b8] sm:$0xff]  ;;  %v7222_v6 = vpack.c.bf16 %v531_v3, %v529_v2 }
  0x5c   :  { %5043 = vmatpush1.bf16.msra.mxu1 %v4450_v14  ;;  %v7226_v7 = vpack.c.bf16 %v536_v5, %v534_v4  ;;  %v533_v8 = vld [vmem:[#allocation8 + $0x2a0] sm:$0xff]  ;;  %v535_v9 = vld [vmem:[#allocation8 + $0x2b0] sm:$0xff]  ;;  %v538_v10 = vld [vmem:[#allocation8 + $0x2c8] sm:$0xff] }
  0x5d   :  { %5045 = vmatprep.subr.bf16.mxu1 %v4452_v15  ;;  %9819 = vst [vmem:[#allocation23_spill] sm:$0xff] %v7218_v1  ;;  %9820 = vst [vmem:[#allocation24_spill] sm:$0xff] %v7222_v6  ;;  %v540_v11 = vld [vmem:[#allocation8 + $0x2d8] sm:$0xff]  ;;  %v7229_v12 = vpack.c.bf16 %v535_v9, %v533_v8  ;;  %v537_v14 = vld [vmem:[#allocation8 + $0x2c0] sm:$0xff] }
  0x5e   :  { %4400 = vmatmul.mubr.msk.f32.vlgmr.msra.gmra.mrb[0].mxu0 %vm139_vm0, %v137_v25  ;;  %4412 = vmatmul.mubr.msk.f32.gmra.mrb[4].mxu1 %vm214_vm2, %v118_v30  ;;  %9821 = vst [vmem:[#allocation25_spill] sm:$0xff] %v7226_v7  ;;  %v7232_v13 = vpack.c.bf16 %v540_v11, %v538_v10  ;;  %v539_v15 = vld [vmem:[#allocation8 + $0x2d0] sm:$0xff]  ;;  %v542_v16 = vld [vmem:[#allocation8 + $0x2e8] sm:$0xff]  ;;  %v544_v17 = vld [vmem:[#allocation8 + $0x2f8] sm:$0xff] }
  0x5f   :  { %301 = vmatprep.mubr.f32.mxu0 %v9257_v0  ;;  %435 = vmatprep.mubr.f32.mxu1 %v9257_v0  ;;  %9822 = vst [vmem:[#allocation26_spill] sm:$0xff] %v7229_v12  ;;  %v7235_v18 = vpack.c.bf16 %v539_v15, %v537_v14  ;;  %v7238_v19 = vpack.c.bf16 %v544_v17, %v542_v16  ;;  %v546_v22 = vld [vmem:[#allocation8 + $0x308] sm:$0xff]  ;;  %v548_v23 = vld [vmem:[#allocation8 + $0x318] sm:$0xff]  ;;  %v545_v26 = vld [vmem:[#allocation8 + $0x300] sm:$0xff] }
  0x60   :  { %5047 = vmatpush1.bf16.msra.mxu1 %v4454_v20  ;;  %9823 = vst [vmem:[#allocation27_spill] sm:$0xff] %v7232_v13  ;;  %v541_v20 = vld [vmem:[#allocation8 + $0x2e0] sm:$0xff]  ;;  %v7244_v25 = vpack.c.bf16 %v548_v23, %v546_v22  ;;  %v547_v27 = vld [vmem:[#allocation8 + $0x310] sm:$0xff]  ;;  %v550_v28 = vld [vmem:[#allocation8 + $0x328] sm:$0xff] }
  0x61   :  { %5049 = vmatprep.subr.bf16.mxu1 %v4456_v21  ;;  %9824 = vst [vmem:[#allocation28_spill] sm:$0xff] %v7235_v18  ;;  %9825 = vst [vmem:[#allocation29_spill] sm:$0xff] %v7238_v19  ;;  %v543_v21 = vld [vmem:[#allocation8 + $0x2f0] sm:$0xff]  ;;  %v552_v29 = vld [vmem:[#allocation8 + $0x338] sm:$0xff]  ;;  %v7247_v30 = vpack.c.bf16 %v547_v27, %v545_v26 }
  0x62   :  { %4413 = vmatmul.mubr.msk.f32.gmra.mrb[6].mxu1 %vm214_vm2, %v119_v31  ;;  %9827 = vst [vmem:[#allocation31_spill] sm:$0xff] %v7244_v25  ;;  %v7250_v31 = vpack.c.bf16 %v552_v29, %v550_v28  ;;  %v549_v32 = vld [vmem:[#allocation8 + $0x320] sm:$0xff]  ;;  %v551_v33 = vld [vmem:[#allocation8 + $0x330] sm:$0xff]  ;;  %v554_v34 = vld [vmem:[#allocation8 + $0x348] sm:$0xff] }
  0x63   :  { %441 = vmatprep.mubr.f32.mxu1 %v9257_v0  ;;  %9828 = vst [vmem:[#allocation32_spill] sm:$0xff] %v7247_v30  ;;  %v556_v35 = vld [vmem:[#allocation8 + $0x358] sm:$0xff]  ;;  %v7253_v36 = vpack.c.bf16 %v551_v33, %v549_v32  ;;  %v557_v47 = vld [vmem:[#allocation8 + $0x360] sm:$0xff]  ;;  %v562_v51 = vld [vmem:[#allocation8 + $0x388] sm:$0xff] }
  0x64   :  { %5051 = vmatpush1.bf16.msra.mxu1 %v4458_v24  ;;  %v7241_v24 = vpack.c.bf16 %v543_v21, %v541_v20  ;;  %9829 = vst [vmem:[#allocation33_spill] sm:$0xff] %v7250_v31  ;;  %v7256_v37 = vpack.c.bf16 %v556_v35, %v554_v34  ;;  %v560_v44 = vld [vmem:[#allocation8 + $0x378] sm:$0xff]  ;;  %v563_v58 = vld [vmem:[#allocation8 + $0x390] sm:$0xff]  ;;  %v566_v59 = vld [vmem:[#allocation8 + $0x3a8] sm:$0xff] }
  0x65   :  { %9830 = vst [vmem:[#allocation34_spill] sm:$0xff] %v7253_v36  ;;  %v564_v52 = vld [vmem:[#allocation8 + $0x398] sm:$0xff]  ;;  %v565_v2 = vld [vmem:[#allocation8 + $0x3a0] sm:$0xff]  ;;  %v567_v3 = vld [vmem:[#allocation8 + $0x3b0] sm:$0xff] }
  0x66   :  { %9826 = vst [vmem:[#allocation30_spill] sm:$0xff] %v7241_v24  ;;  %9831 = vst [vmem:[#allocation35_spill] sm:$0xff] %v7256_v37  ;;  %v7268_v54 = vpack.c.bf16 %v564_v52, %v562_v51  ;;  %v568_v60 = vld [vmem:[#allocation8 + $0x3b8] sm:$0xff]  ;;  %v570_v4 = vld [vmem:[#allocation8 + $0x3c8] sm:$0xff]  ;;  %v7277_v8 = vpack.c.bf16 %v567_v3, %v565_v2 }
  0x67   :  { %v572_v5 = vld [vmem:[#allocation8 + $0x3d8] sm:$0xff]  ;;  %v569_v10 = vld [vmem:[#allocation8 + $0x3c0] sm:$0xff]  ;;  %v571_v11 = vld [vmem:[#allocation8 + $0x3d0] sm:$0xff] }
  0x68   :  { %9835 = vst [vmem:[#allocation39_spill] sm:$0xff] %v7268_v54  ;;  %9838 = vst [vmem:[#allocation42_spill] sm:$0xff] %v7277_v8  ;;  %v7280_v9 = vpack.c.bf16 %v572_v5, %v570_v4  ;;  %v7283_v14 = vpack.c.bf16 %v571_v11, %v569_v10  ;;  %v574_v16 = vld [vmem:[#allocation8 + $0x3e8] sm:$0xff]  ;;  %v576_v17 = vld [vmem:[#allocation8 + $0x3f8] sm:$0xff] }
  0x69   :  { %v7287_v21 = vpack.c.bf16 %v576_v17, %v574_v16  ;;  %v573_v22 = vld [vmem:[#allocation8 + $0x3e0] sm:$0xff]  ;;  %v575_v23 = vld [vmem:[#allocation8 + $0x3f0] sm:$0xff]  ;;  %v125_v26 = vld [vmem:[%s9248_s5 + $0x20] sm:$0xf] }
  0x6a   :  { %9839 = vst [vmem:[#allocation43_spill] sm:$0xff] %v7280_v9  ;;  %9840 = vst [vmem:[#allocation44_spill] sm:$0xff] %v7283_v14  ;;  %v120_v27 = vld [vmem:[%s9247_s4 + $0x20] sm:$0xf]  ;;  %v7295_v28 = vpack.c.bf16 %v575_v23, %v573_v22  ;;  %v451_v32 = vld [vmem:[#allocation8 + $0x18] sm:$0xff] }
  0x6b   :  { %9841 = vst [vmem:[#allocation45_spill] sm:$0xff] %v7287_v21  ;;  %4414 = vmatmul.mubr.msk.f32.gmra.mrb[8].mxu1 %vm214_vm2, %v120_v27  ;;  %v449_v29 = vld [vmem:[#allocation8 + $0x8] sm:$0xff]  ;;  %v455_v52 = vld [vmem:[#allocation8 + $0x38] sm:$0xff]  ;;  %v452_v3 = vld [vmem:[#allocation8 + $0x20] sm:$0xff] }
  0x6c   :  { %9842 = vst [vmem:[#allocation46_spill] sm:$0xff] %v7295_v28  ;;  %1787 = vmatprep.mubr.f32.mxu1 %v9257_v0  ;;  %v7302_v33 = vpack.c.bf16 %v451_v32, %v449_v29  ;;  %v453_v51 = vld [vmem:[#allocation8 + $0x28] sm:$0xff]  ;;  %v454_v4 = vld [vmem:[#allocation8 + $0x30] sm:$0xff]  ;;  %v456_v22 = vld [vmem:[#allocation8 + $0x40] sm:$0xff] }
  0x6d   :  { %v7310_v2 = vpack.c.bf16 %v455_v52, %v453_v51  ;;  %v457_v11 = vld [vmem:[#allocation8 + $0x48] sm:$0xff]  ;;  %v7317_v17 = vpack.c.bf16 %v454_v4, %v452_v3  ;;  %v458_v23 = vld [vmem:[#allocation8 + $0x50] sm:$0xff]  ;;  %v463_v27 = vld [vmem:[#allocation8 + $0x78] sm:$0xff] }
  0x6e   :  { %9843 = vst [vmem:[#allocation47_spill] sm:$0xff] %v7302_v33  ;;  %v7323_v29 = vpack.c.bf16 %v458_v23, %v456_v22  ;;  %v466_v51 = vld [vmem:[#allocation8 + $0x90] sm:$0xff]  ;;  %v469_v52 = vld [vmem:[#allocation8 + $0xa8] sm:$0xff]  ;;  %v468_v3 = vld [vmem:[#allocation8 + $0xa0] sm:$0xff] }
  0x6f   :  { %v470_v4 = vld [vmem:[#allocation8 + $0xb0] sm:$0xff]  ;;  %v472_v23 = vld [vmem:[#allocation8 + $0xc0] sm:$0xff] }
 0x129   :  { %v419_v15 = vpop.f32.mrb[0].mxu1 }
 0x12a   :  { %v421_v20 = vpop.f32.mrb[1].mxu1 }
 0x12d   :  { %v425_v35 = vpop.f32.mrb[2].mxu1 }
 0x131   :  { %v209_v38 = vpop.f32.mrb[0].mxu0 }
 0x132   :  { %v211_v40 = vpop.f32.mrb[1].mxu0 }
 0x133   :  { %4401 = vmatprep.subr.msk.mxu0 %vm230_vm1, %v211_v40  ;;  %v555_v40 = vld [vmem:[#allocation8 + $0x350] sm:$0xff] }
 0x134   :  { %4402 = vmatpush1.msk.msra.mxu0 %vm230_vm1, %v209_v38  ;;  %v553_v38 = vld [vmem:[#allocation8 + $0x340] sm:$0xff] }
 0x135   :  { %4403 = vmatmul.mubr.msk.f32.vlgmr.msra.gmra.mrb[2].mxu0 %vm214_vm2, %v121_v41  ;;  %4461 = vmatprep.subr.bf16.mxu0 %v7175_v39  ;;  %v558_v41 = vld [vmem:[#allocation8 + $0x368] sm:$0xff]  ;;  %v7259_v45 = vpack.c.bf16 %v555_v40, %v553_v38 }
 0x136   :  { %307 = vmatprep.mubr.f32.mxu0 %v9257_v0  ;;  %4463 = vmatpush1.bf16.msra.mxu0 %v7180_v42  ;;  %v7262_v46 = vpack.c.bf16 %v560_v44, %v558_v41  ;;  %v448_v41 = vld [vmem:[#allocation8] sm:$0xff]  ;;  %v450_v44 = vld [vmem:[#allocation8 + $0x10] sm:$0xff] }
 0x137   :  { %4465 = vmatprep.subr.bf16.mxu0 %v7183_v43  ;;  %9832 = vst [vmem:[#allocation36_spill] sm:$0xff] %v7259_v45 }
 0x138   :  { %9833 = vst [vmem:[#allocation37_spill] sm:$0xff] %v7262_v46 }
 0x139   :  { %4404 = vmatmul.mubr.msk.f32.gmra.mrb[4].mxu0 %vm214_vm2, %v122_v48  ;;  %v559_v48 = vld [vmem:[#allocation8 + $0x370] sm:$0xff] }
 0x13a   :  { %4467 = vmatpush1.bf16.msra.mxu0 %v7193_v49  ;;  %313 = vmatprep.mubr.f32.mxu0 %v9257_v0  ;;  %v7265_v53 = vpack.c.bf16 %v559_v48, %v557_v47  ;;  %v427_v47 = vpop.f32.mrb[3].mxu1 }
 0x13b   :  { %4469 = vmatprep.subr.bf16.mxu0 %v7196_v50 }
 0x13c   :  { %9834 = vst [vmem:[#allocation38_spill] sm:$0xff] %v7265_v53 }
 0x13d   :  { %4405 = vmatmul.mubr.msk.f32.gmra.mrb[6].mxu0 %vm214_vm2, %v123_v56  ;;  %v561_v56 = vld [vmem:[#allocation8 + $0x380] sm:$0xff] }
 0x13e   :  { %4471 = vmatpush1.bf16.msra.mxu0 %v7200_v55  ;;  %319 = vmatprep.mubr.f32.mxu0 %v9257_v0  ;;  %v7271_v61 = vpack.c.bf16 %v563_v58, %v561_v56  ;;  %v7307_v58 = vpack.c.bf16 %v450_v44, %v448_v41  ;;  %v467_v41 = vld [vmem:[#allocation8 + $0x98] sm:$0xff] }
 0x13f   :  { %4473 = vmatprep.subr.bf16.mxu0 %v7207_v57 }
 0x140   :  { %9836 = vst [vmem:[#allocation40_spill] sm:$0xff] %v7271_v61 }
 0x141   :  { %4406 = vmatmul.mubr.msk.f32.gmra.mrb[8].mxu0 %vm214_vm2, %v124_v63  ;;  %v7274_v63 = vpack.c.bf16 %v568_v60, %v566_v59 }
 0x142   :  { %4475 = vmatpush1.bf16.msra.mxu0 %v7211_v62  ;;  %325 = vmatprep.mubr.f32.mxu0 %v9257_v0  ;;  %v486_v0 = vld [vmem:[#allocation8 + $0x130] sm:$0xff] }
 0x143   :  { %4477 = vmatprep.subr.bf16.mxu0 %v7218_v1  ;;  %9837 = vst [vmem:[#allocation41_spill] sm:$0xff] %v7274_v63 }
 0x145   :  { %4407 = vmatmul.mubr.msk.f32.gmra.mrb[10].mxu0 %vm214_vm2, %v125_v26  ;;  %v461_v26 = vld [vmem:[#allocation8 + $0x68] sm:$0xff] }
 0x146   :  { %4479 = vmatpush1.bf16.msra.mxu0 %v7222_v6  ;;  %v7326_v32 = vpack.c.bf16 %v463_v27, %v461_v26  ;;  %v474_v26 = vld [vmem:[#allocation8 + $0xd0] sm:$0xff]  ;;  %v477_v27 = vld [vmem:[#allocation8 + $0xe8] sm:$0xff] }
 0x147   :  { %4481 = vmatprep.subr.bf16.mxu0 %v7226_v7 }
 0x14a   :  { %4483 = vmatpush1.bf16.msra.mxu0 %v7229_v12 }
 0x14b   :  { %4485 = vmatprep.subr.bf16.mxu0 %v7232_v13 }
 0x14e   :  { %4487 = vmatpush1.bf16.msra.mxu0 %v7235_v18 }
 0x14f   :  { %4489 = vmatprep.subr.bf16.mxu0 %v7238_v19 }
 0x152   :  { %4491 = vmatpush1.bf16.msra.mxu0 %v7241_v24 }
 0x153   :  { %4493 = vmatprep.subr.bf16.mxu0 %v7244_v25 }
 0x156   :  { %4495 = vmatpush1.bf16.msra.mxu0 %v7247_v30 }
 0x157   :  { %4497 = vmatprep.subr.bf16.mxu0 %v7250_v31 }
 0x15a   :  { %4499 = vmatpush1.bf16.msra.mxu0 %v7253_v36 }
 0x15b   :  { %4501 = vmatprep.subr.bf16.mxu0 %v7256_v37 }
 0x15e   :  { %4503 = vmatpush1.bf16.msra.mxu0 %v7259_v45 }
 0x15f   :  { %4505 = vmatprep.subr.bf16.mxu0 %v7262_v46 }
 0x162   :  { %4507 = vmatpush1.bf16.msra.mxu0 %v7265_v53 }
 0x163   :  { %4509 = vmatprep.subr.bf16.mxu0 %v7268_v54 }
 0x166   :  { %4511 = vmatpush1.bf16.msra.mxu0 %v7271_v61 }
 0x167   :  { %4513 = vmatprep.subr.bf16.mxu0 %v7274_v63 }
 0x16a   :  { %4515 = vmatpush1.bf16.msra.mxu0 %v7277_v8 }
 0x16b   :  { %4517 = vmatprep.subr.bf16.mxu0 %v7280_v9 }
 0x16e   :  { %4519 = vmatpush1.bf16.msra.mxu0 %v7283_v14 }
 0x16f   :  { %4521 = vmatprep.subr.bf16.mxu0 %v7287_v21 }
 0x172   :  { %4523 = vmatpush1.bf16.msra.mxu0 %v7295_v28 }
 0x173   :  { %4525 = vmatprep.subr.bf16.mxu0 %v7302_v33 }
 0x208   :  { %v303_v34 = vpop.f32.mrb[2].mxu0 }
 0x209   :  { %v7305_v38 = vadd.f32 %v419_v15, %v303_v34  ;;  %v305_v40 = vpop.f32.mrb[3].mxu0  ;;  %v459_v15 = vld [vmem:[#allocation8 + $0x58] sm:$0xff]  ;;  %v460_v34 = vld [vmem:[#allocation8 + $0x60] sm:$0xff] }
 0x20a   :  { %v422_v48 = vadd.f32 %v421_v20, %v305_v40  ;;  %v7320_v20 = vpack.c.bf16 %v459_v15, %v457_v11  ;;  %v465_v40 = vld [vmem:[#allocation8 + $0x88] sm:$0xff]  ;;  %v475_v11 = vld [vmem:[#allocation8 + $0xd8] sm:$0xff]  ;;  %v7341_v15 = vpack.c.bf16 %v470_v4, %v468_v3  ;;  %v480_v4 = vld [vmem:[#allocation8 + $0x100] sm:$0xff] }
 0x20b   :  { %v579_v60 = vrot.slane %v7305_v38, 4 }
 0x20c   :  { %v580_v56 = vrot.slane %v422_v48, 4  ;;  %v309_v59 = vpop.f32.mrb[4].mxu0  ;;  %9848 = vst [vmem:[#allocation52_spill] sm:$0xff] %v7341_v15 }
 0x20d   :  { %v7312_v5 = vadd.f32 %v425_v35, %v309_v59  ;;  %v311_v10 = vpop.f32.mrb[5].mxu0  ;;  %v462_v35 = vld [vmem:[#allocation8 + $0x70] sm:$0xff] }
 0x20e   :  { %647 = vmatprep.mubr.f32.mxu0 %v580_v56  ;;  %v7314_v16 = vadd.f32 %v427_v47, %v311_v10  ;;  %v7329_v44 = vpack.c.bf16 %v462_v35, %v460_v34  ;;  %v7332_v47 = vpack.c.bf16 %v467_v41, %v465_v40  ;;  %v471_v56 = vld [vmem:[#allocation8 + $0xb8] sm:$0xff]  ;;  %v473_v10 = vld [vmem:[#allocation8 + $0xc8] sm:$0xff]  ;;  %v7347_v35 = vpack.c.bf16 %v474_v26, %v472_v23  ;;  %v476_v41 = vld [vmem:[#allocation8 + $0xe0] sm:$0xff] }
 0x20f   :  { %648 = vmatmul.mubr.f32.vlgmr.msra.gmra.mrb[12].mxu0 %v579_v60  ;;  %v7338_v60 = vpack.c.bf16 %v471_v56, %v469_v52  ;;  %v7344_v22 = vpack.c.bf16 %v475_v11, %v473_v10  ;;  %v479_v34 = vld [vmem:[#allocation8 + $0xf8] sm:$0xff]  ;;  %v482_v10 = vld [vmem:[#allocation8 + $0x110] sm:$0xff]  ;;  %v485_v11 = vld [vmem:[#allocation8 + $0x128] sm:$0xff] }
 0x210   :  { %4527 = vmatpush1.bf16.msra.mxu0 %v7307_v58  ;;  %718 = vmatprep.mubr.f32.mxu0 %v422_v48  ;;  %9844 = vst [vmem:[#allocation48_spill] sm:$0xff] %v7329_v44  ;;  %9845 = vst [vmem:[#allocation49_spill] sm:$0xff] %v7332_v47  ;;  %v464_v48 = vld [vmem:[#allocation8 + $0x80] sm:$0xff]  ;;  %v7350_v40 = vpack.c.bf16 %v479_v34, %v477_v27  ;;  %v483_v52 = vld [vmem:[#allocation8 + $0x118] sm:$0xff]  ;;  %v7359_v26 = vpack.c.bf16 %v482_v10, %v480_v4 }
 0x211   :  { %4529 = vmatprep.subr.bf16.mxu0 %v7310_v2  ;;  %v7335_v59 = vpack.c.bf16 %v466_v51, %v464_v48  ;;  %9847 = vst [vmem:[#allocation51_spill] sm:$0xff] %v7338_v60  ;;  %9849 = vst [vmem:[#allocation53_spill] sm:$0xff] %v7344_v22  ;;  %v478_v48 = vld [vmem:[#allocation8 + $0xf0] sm:$0xff]  ;;  %v481_v51 = vld [vmem:[#allocation8 + $0x108] sm:$0xff] }
 0x212   :  { %9850 = vst [vmem:[#allocation54_spill] sm:$0xff] %v7347_v35  ;;  %9851 = vst [vmem:[#allocation55_spill] sm:$0xff] %v7350_v40  ;;  %v7353_v56 = vpack.c.bf16 %v478_v48, %v476_v41  ;;  %v7356_v3 = vpack.c.bf16 %v483_v52, %v481_v51  ;;  %v487_v23 = vld [vmem:[#allocation8 + $0x138] sm:$0xff]  ;;  %v484_v34 = vld [vmem:[#allocation8 + $0x120] sm:$0xff] }
 0x213   :  { %9846 = vst [vmem:[#allocation50_spill] sm:$0xff] %v7335_v59  ;;  %9854 = vst [vmem:[#allocation58_spill] sm:$0xff] %v7359_v26  ;;  %v7362_v27 = vpack.c.bf16 %v487_v23, %v485_v11  ;;  %v489_v41 = vld [vmem:[#allocation8 + $0x148] sm:$0xff]  ;;  %v491_v48 = vld [vmem:[#allocation8 + $0x158] sm:$0xff]  ;;  %v7365_v51 = vpack.c.bf16 %v486_v0, %v484_v34 }
 0x214   :  { %4531 = vmatpush1.bf16.msra.mxu0 %v7317_v17  ;;  %9852 = vst [vmem:[#allocation56_spill] sm:$0xff] %v7353_v56  ;;  %9853 = vst [vmem:[#allocation57_spill] sm:$0xff] %v7356_v3  ;;  %v7368_v52 = vpack.c.bf16 %v491_v48, %v489_v41  ;;  %v493_v4 = vld [vmem:[#allocation8 + $0x168] sm:$0xff]  ;;  %v495_v10 = vld [vmem:[#allocation8 + $0x178] sm:$0xff] }
 0x215   :  { %4533 = vmatprep.subr.bf16.mxu0 %v7320_v20  ;;  %9855 = vst [vmem:[#allocation59_spill] sm:$0xff] %v7362_v27  ;;  %9856 = vst [vmem:[#allocation60_spill] sm:$0xff] %v7365_v51  ;;  %v7374_v23 = vpack.c.bf16 %v495_v10, %v493_v4  ;;  %v497_v0 = vld [vmem:[#allocation8 + $0x188] sm:$0xff]  ;;  %v499_v34 = vld [vmem:[#allocation8 + $0x198] sm:$0xff] }
 0x216   :  { %9857 = vst [vmem:[#allocation61_spill] sm:$0xff] %v7368_v52  ;;  %v7380_v48 = vpack.c.bf16 %v499_v34, %v497_v0 }
 0x217   :  { %9859 = vst [vmem:[#allocation63_spill] sm:$0xff] %v7374_v23 }
 0x218   :  { %4535 = vmatpush1.bf16.msra.mxu0 %v7323_v29  ;;  %9861 = vst [vmem:[#allocation65_spill] sm:$0xff] %v7380_v48 }
 0x219   :  { %4537 = vmatprep.subr.bf16.mxu0 %v7326_v32 }
 0x21c   :  { %4539 = vmatpush1.bf16.msra.mxu0 %v7329_v44 }
 0x21d   :  { %4541 = vmatprep.subr.bf16.mxu0 %v7332_v47 }
 0x220   :  { %4543 = vmatpush1.bf16.msra.mxu0 %v7335_v59  ;;  %v749_v59 = vld [vmem:[#allocation8 + $0x4b8] sm:$0xff] }
 0x221   :  { %4545 = vmatprep.subr.bf16.mxu0 %v7338_v60  ;;  %v747_v60 = vld [vmem:[#allocation8 + $0x4a8] sm:$0xff] }
 0x224   :  { %4547 = vmatpush1.bf16.msra.mxu0 %v7341_v15 }
 0x225   :  { %4549 = vmatprep.subr.bf16.mxu0 %v7344_v22 }
 0x228   :  { %4551 = vmatpush1.bf16.msra.mxu0 %v7347_v35  ;;  %v745_v35 = vld [vmem:[#allocation8 + $0x498] sm:$0xff] }
 0x229   :  { %4553 = vmatprep.subr.bf16.mxu0 %v7350_v40  ;;  %v488_v40 = vld [vmem:[#allocation8 + $0x140] sm:$0xff] }
 0x22c   :  { %4555 = vmatpush1.bf16.msra.mxu0 %v7353_v56  ;;  %v490_v56 = vld [vmem:[#allocation8 + $0x150] sm:$0xff] }
 0x22d   :  { %4557 = vmatprep.subr.bf16.mxu0 %v7356_v3  ;;  %v7371_v11 = vpack.c.bf16 %v490_v56, %v488_v40  ;;  %v492_v3 = vld [vmem:[#allocation8 + $0x160] sm:$0xff]  ;;  %v501_v40 = vld [vmem:[#allocation8 + $0x1a8] sm:$0xff]  ;;  %v503_v56 = vld [vmem:[#allocation8 + $0x1b8] sm:$0xff] }
 0x22e   :  { %v7386_v10 = vpack.c.bf16 %v503_v56, %v501_v40 }
 0x22f   :  { %9858 = vst [vmem:[#allocation62_spill] sm:$0xff] %v7371_v11 }
 0x230   :  { %4559 = vmatpush1.bf16.msra.mxu0 %v7359_v26  ;;  %v494_v26 = vld [vmem:[#allocation8 + $0x170] sm:$0xff]  ;;  %9863 = vst [vmem:[#allocation67_spill] sm:$0xff] %v7386_v10 }
 0x231   :  { %4561 = vmatprep.subr.bf16.mxu0 %v7362_v27  ;;  %v7377_v41 = vpack.c.bf16 %v494_v26, %v492_v3  ;;  %v496_v27 = vld [vmem:[#allocation8 + $0x180] sm:$0xff]  ;;  %v505_v3 = vld [vmem:[#allocation8 + $0x1c8] sm:$0xff]  ;;  %v507_v26 = vld [vmem:[#allocation8 + $0x1d8] sm:$0xff] }
 0x232   :  { %v7392_v34 = vpack.c.bf16 %v507_v26, %v505_v3 }
 0x233   :  { %9860 = vst [vmem:[#allocation64_spill] sm:$0xff] %v7377_v41 }
 0x234   :  { %4563 = vmatpush1.bf16.msra.mxu0 %v7365_v51  ;;  %v498_v51 = vld [vmem:[#allocation8 + $0x190] sm:$0xff]  ;;  %9865 = vst [vmem:[#allocation69_spill] sm:$0xff] %v7392_v34 }
 0x235   :  { %4565 = vmatprep.subr.bf16.mxu0 %v7368_v52  ;;  %v7383_v4 = vpack.c.bf16 %v498_v51, %v496_v27  ;;  %v500_v52 = vld [vmem:[#allocation8 + $0x1a0] sm:$0xff]  ;;  %v509_v27 = vld [vmem:[#allocation8 + $0x1e8] sm:$0xff]  ;;  %v511_v51 = vld [vmem:[#allocation8 + $0x1f8] sm:$0xff] }
 0x236   :  { %v7398_v56 = vpack.c.bf16 %v511_v51, %v509_v27 }
 0x237   :  { %9862 = vst [vmem:[#allocation66_spill] sm:$0xff] %v7383_v4 }
 0x238   :  { %4567 = vmatpush1.bf16.msra.mxu0 %v7371_v11  ;;  %v502_v11 = vld [vmem:[#allocation8 + $0x1b0] sm:$0xff]  ;;  %9867 = vst [vmem:[#allocation71_spill] sm:$0xff] %v7398_v56 }
 0x239   :  { %4569 = vmatprep.subr.bf16.mxu0 %v7374_v23  ;;  %v7389_v0 = vpack.c.bf16 %v502_v11, %v500_v52  ;;  %v504_v23 = vld [vmem:[#allocation8 + $0x1c0] sm:$0xff]  ;;  %v727_v52 = vld [vmem:[#allocation8 + $0x408] sm:$0xff]  ;;  %v729_v11 = vld [vmem:[#allocation8 + $0x418] sm:$0xff] }
 0x23a   :  { %v7404_v26 = vpack.c.bf16 %v729_v11, %v727_v52  ;;  %v736_v11 = vld [vmem:[#allocation8 + $0x450] sm:$0xff] }
 0x23b   :  { %9864 = vst [vmem:[#allocation68_spill] sm:$0xff] %v7389_v0 }
 0x23c   :  { %4571 = vmatpush1.bf16.msra.mxu0 %v7377_v41  ;;  %v506_v41 = vld [vmem:[#allocation8 + $0x1d0] sm:$0xff]  ;;  %9869 = vst [vmem:[#allocation73_spill] sm:$0xff] %v7404_v26 }
 0x23d   :  { %4573 = vmatprep.subr.bf16.mxu0 %v7380_v48  ;;  %v7395_v40 = vpack.c.bf16 %v506_v41, %v504_v23  ;;  %v508_v48 = vld [vmem:[#allocation8 + $0x1e0] sm:$0xff]  ;;  %v731_v23 = vld [vmem:[#allocation8 + $0x428] sm:$0xff]  ;;  %v733_v41 = vld [vmem:[#allocation8 + $0x438] sm:$0xff] }
 0x23e   :  { %v7410_v51 = vpack.c.bf16 %v733_v41, %v731_v23  ;;  %v739_v23 = vld [vmem:[#allocation8 + $0x468] sm:$0xff]  ;;  %v741_v41 = vld [vmem:[#allocation8 + $0x478] sm:$0xff] }
 0x23f   :  { %9866 = vst [vmem:[#allocation70_spill] sm:$0xff] %v7395_v40 }
 0x240   :  { %4575 = vmatpush1.bf16.msra.mxu0 %v7383_v4  ;;  %v510_v4 = vld [vmem:[#allocation8 + $0x1f0] sm:$0xff]  ;;  %9871 = vst [vmem:[#allocation75_spill] sm:$0xff] %v7410_v51 }
 0x241   :  { %4577 = vmatprep.subr.bf16.mxu0 %v7386_v10  ;;  %v7401_v3 = vpack.c.bf16 %v510_v4, %v508_v48  ;;  %v726_v10 = vld [vmem:[#allocation8 + $0x400] sm:$0xff]  ;;  %v735_v48 = vld [vmem:[#allocation8 + $0x448] sm:$0xff]  ;;  %v737_v4 = vld [vmem:[#allocation8 + $0x458] sm:$0xff] }
 0x243   :  { %9868 = vst [vmem:[#allocation72_spill] sm:$0xff] %v7401_v3 }
 0x244   :  { %4579 = vmatpush1.bf16.msra.mxu0 %v7389_v0  ;;  %v728_v0 = vld [vmem:[#allocation8 + $0x410] sm:$0xff] }
 0x245   :  { %4581 = vmatprep.subr.bf16.mxu0 %v7392_v34  ;;  %v7407_v27 = vpack.c.bf16 %v728_v0, %v726_v10  ;;  %v730_v34 = vld [vmem:[#allocation8 + $0x420] sm:$0xff]  ;;  %v7418_v10 = vpack.c.bf16 %v737_v4, %v735_v48 }
 0x246   :  { %v734_v0 = vld [vmem:[#allocation8 + $0x440] sm:$0xff] }
 0x247   :  { %9870 = vst [vmem:[#allocation74_spill] sm:$0xff] %v7407_v27  ;;  %9873 = vst [vmem:[#allocation77_spill] sm:$0xff] %v7418_v10 }
 0x248   :  { %4583 = vmatpush1.bf16.msra.mxu0 %v7395_v40  ;;  %v732_v40 = vld [vmem:[#allocation8 + $0x430] sm:$0xff] }
 0x249   :  { %4585 = vmatprep.subr.bf16.mxu0 %v7398_v56  ;;  %v7414_v52 = vpack.c.bf16 %v732_v40, %v730_v34  ;;  %v7424_v34 = vpack.c.bf16 %v741_v41, %v739_v23  ;;  %v738_v40 = vld [vmem:[#allocation8 + $0x460] sm:$0xff] }
 0x24a   :  { %v742_v41 = vld [vmem:[#allocation8 + $0x480] sm:$0xff] }
 0x24b   :  { %9872 = vst [vmem:[#allocation76_spill] sm:$0xff] %v7414_v52  ;;  %9875 = vst [vmem:[#allocation79_spill] sm:$0xff] %v7424_v34 }
 0x24c   :  { %4587 = vmatpush1.bf16.msra.mxu0 %v7401_v3  ;;  %v315_v3 = vpop.f32.mrb[6].mxu0 }
 0x24d   :  { %4589 = vmatprep.subr.bf16.mxu0 %v7404_v26  ;;  %v7421_v26 = vpack.c.bf16 %v736_v11, %v734_v0  ;;  %v317_v48 = vpop.f32.mrb[7].mxu0 }
 0x24e   :  { %v321_v11 = vpop.f32.mrb[8].mxu0 }
 0x24f   :  { %719 = vmatmul.mubr.f32.vlgmr.msra.gmra.mrb[12].mxu0 %v7305_v38  ;;  %9874 = vst [vmem:[#allocation78_spill] sm:$0xff] %v7421_v26  ;;  %v431_v38 = vpop.f32.mrb[4].mxu1 }
 0x250   :  { %4591 = vmatpush1.bf16.msra.mxu0 %v7407_v27  ;;  %854 = vmatprep.mubr.f32.mxu0 %v7314_v16  ;;  %v740_v27 = vld [vmem:[#allocation8 + $0x470] sm:$0xff]  ;;  %v7426_v56 = vadd.f32 %v431_v38, %v315_v3  ;;  %v433_v4 = vpop.f32.mrb[5].mxu1  ;;  %v323_v38 = vpop.f32.mrb[9].mxu0 }
 0x251   :  { %4593 = vmatprep.subr.bf16.mxu0 %v7410_v51  ;;  %v743_v51 = vld [vmem:[#allocation8 + $0x488] sm:$0xff]  ;;  %v7428_v22 = vadd.f32 %v433_v4, %v317_v48  ;;  %v7431_v0 = vpack.c.bf16 %v740_v27, %v738_v40  ;;  %v7444_v40 = vpack.c.bf16 %v749_v59, %v747_v60  ;;  %v327_v4 = vpop.f32.mrb[10].mxu0  ;;  %v750_v60 = vld [vmem:[#allocation8 + $0x4c0] sm:$0xff] }
 0x252   :  { %v7434_v23 = vpack.c.bf16 %v745_v35, %v743_v51  ;;  %v746_v35 = vld [vmem:[#allocation8 + $0x4a0] sm:$0xff]  ;;  %v748_v51 = vld [vmem:[#allocation8 + $0x4b0] sm:$0xff]  ;;  %v329_v47 = vpop.f32.mrb[11].mxu0 }
 0x253   :  { %9876 = vst [vmem:[#allocation80_spill] sm:$0xff] %v7431_v0  ;;  %9879 = vst [vmem:[#allocation83_spill] sm:$0xff] %v7444_v40 }
 0x254   :  { %4595 = vmatpush1.bf16.msra.mxu0 %v7414_v52  ;;  %v437_v52 = vpop.f32.mrb[6].mxu1  ;;  %9877 = vst [vmem:[#allocation81_spill] sm:$0xff] %v7434_v23 }
 0x255   :  { %4597 = vmatprep.subr.bf16.mxu0 %v7418_v10  ;;  %v744_v10 = vld [vmem:[#allocation8 + $0x490] sm:$0xff]  ;;  %v7436_v3 = vadd.f32 %v437_v52, %v321_v11  ;;  %v439_v15 = vpop.f32.mrb[7].mxu1  ;;  %v751_v52 = vld [vmem:[#allocation8 + $0x4c8] sm:$0xff]  ;;  %v753_v11 = vld [vmem:[#allocation8 + $0x4d8] sm:$0xff] }
 0x256   :  { %v7438_v48 = vadd.f32 %v439_v15, %v323_v38  ;;  %v7441_v27 = vpack.c.bf16 %v744_v10, %v742_v41  ;;  %v7451_v10 = vpack.c.bf16 %v748_v51, %v746_v35  ;;  %v7454_v59 = vpack.c.bf16 %v753_v11, %v751_v52  ;;  %v752_v41 = vld [vmem:[#allocation8 + $0x4d0] sm:$0xff]  ;;  %v755_v38 = vld [vmem:[#allocation8 + $0x4e8] sm:$0xff]  ;;  %v761_v51 = vld [vmem:[#allocation8 + $0x518] sm:$0xff] }
 0x257   :  { %v759_v35 = vld [vmem:[#allocation8 + $0x508] sm:$0xff] }
 0x258   :  { %4599 = vmatpush1.bf16.msra.mxu0 %v7421_v26  ;;  %9878 = vst [vmem:[#allocation82_spill] sm:$0xff] %v7441_v27  ;;  %9880 = vst [vmem:[#allocation84_spill] sm:$0xff] %v7451_v10  ;;  %v7466_v11 = vpack.c.bf16 %v761_v51, %v759_v35 }
 0x259   :  { %4601 = vmatprep.subr.bf16.mxu0 %v7424_v34  ;;  %v443_v34 = vpop.f32.mrb[8].mxu1  ;;  %9881 = vst [vmem:[#allocation85_spill] sm:$0xff] %v7454_v59 }
 0x25a   :  { %v7446_v26 = vadd.f32 %v443_v34, %v327_v4  ;;  %v445_v44 = vpop.f32.mrb[9].mxu1  ;;  %v7457_v34 = vpack.c.bf16 %v752_v41, %v750_v60  ;;  %v756_v4 = vld [vmem:[#allocation8 + $0x4f0] sm:$0xff]  ;;  %9885 = vst [vmem:[#allocation89_spill] sm:$0xff] %v7466_v11  ;;  %v763_v60 = vld [vmem:[#allocation8 + $0x528] sm:$0xff]  ;;  %v765_v41 = vld [vmem:[#allocation8 + $0x538] sm:$0xff] }
 0x25b   :  { %v7448_v15 = vadd.f32 %v445_v44, %v329_v47  ;;  %v754_v47 = vld [vmem:[#allocation8 + $0x4e0] sm:$0xff] }
 0x25c   :  { %4603 = vmatpush1.bf16.msra.mxu0 %v7431_v0  ;;  %9882 = vst [vmem:[#allocation86_spill] sm:$0xff] %v7457_v34  ;;  %v7463_v52 = vpack.c.bf16 %v756_v4, %v754_v47  ;;  %v767_v47 = vld [vmem:[#allocation8 + $0x548] sm:$0xff]  ;;  %v769_v4 = vld [vmem:[#allocation8 + $0x558] sm:$0xff] }
 0x25d   :  { %4605 = vmatprep.subr.bf16.mxu0 %v7434_v23  ;;  %v757_v23 = vld [vmem:[#allocation8 + $0x4f8] sm:$0xff]  ;;  %v7478_v51 = vpack.c.bf16 %v769_v4, %v767_v47 }
 0x25e   :  { %v7460_v44 = vpack.c.bf16 %v757_v23, %v755_v38  ;;  %9884 = vst [vmem:[#allocation88_spill] sm:$0xff] %v7463_v52  ;;  %v7472_v38 = vpack.c.bf16 %v765_v41, %v763_v60 }
 0x25f   :  { %9889 = vst [vmem:[#allocation93_spill] sm:$0xff] %v7478_v51 }
 0x260   :  { %4607 = vmatpush1.bf16.msra.mxu0 %v7441_v27  ;;  %9883 = vst [vmem:[#allocation87_spill] sm:$0xff] %v7460_v44  ;;  %9887 = vst [vmem:[#allocation91_spill] sm:$0xff] %v7472_v38 }
 0x261   :  { %4609 = vmatprep.subr.bf16.mxu0 %v7444_v40  ;;  %v758_v40 = vld [vmem:[#allocation8 + $0x500] sm:$0xff] }
 0x264   :  { %4611 = vmatpush1.bf16.msra.mxu0 %v7451_v10  ;;  %v760_v10 = vld [vmem:[#allocation8 + $0x510] sm:$0xff] }
 0x265   :  { %4613 = vmatprep.subr.bf16.mxu0 %v7454_v59  ;;  %v7469_v23 = vpack.c.bf16 %v760_v10, %v758_v40  ;;  %v762_v59 = vld [vmem:[#allocation8 + $0x520] sm:$0xff]  ;;  %v771_v40 = vld [vmem:[#allocation8 + $0x568] sm:$0xff]  ;;  %v773_v10 = vld [vmem:[#allocation8 + $0x578] sm:$0xff] }
 0x266   :  { %v7484_v41 = vpack.c.bf16 %v773_v10, %v771_v40 }
 0x267   :  { %9886 = vst [vmem:[#allocation90_spill] sm:$0xff] %v7469_v23 }
 0x268   :  { %4615 = vmatpush1.bf16.msra.mxu0 %v7457_v34  ;;  %v764_v34 = vld [vmem:[#allocation8 + $0x530] sm:$0xff]  ;;  %9891 = vst [vmem:[#allocation95_spill] sm:$0xff] %v7484_v41 }
 0x269   :  { %4617 = vmatprep.subr.bf16.mxu0 %v7460_v44  ;;  %v7475_v35 = vpack.c.bf16 %v764_v34, %v762_v59  ;;  %v766_v44 = vld [vmem:[#allocation8 + $0x540] sm:$0xff]  ;;  %v775_v59 = vld [vmem:[#allocation8 + $0x588] sm:$0xff]  ;;  %v777_v34 = vld [vmem:[#allocation8 + $0x598] sm:$0xff] }
 0x26a   :  { %v7490_v4 = vpack.c.bf16 %v777_v34, %v775_v59 }
 0x26b   :  { %9888 = vst [vmem:[#allocation92_spill] sm:$0xff] %v7475_v35 }
 0x26c   :  { %4619 = vmatpush1.bf16.msra.mxu0 %v7463_v52  ;;  %v768_v52 = vld [vmem:[#allocation8 + $0x550] sm:$0xff]  ;;  %9893 = vst [vmem:[#allocation97_spill] sm:$0xff] %v7490_v4 }
 0x26d   :  { %4621 = vmatprep.subr.bf16.mxu0 %v7466_v11  ;;  %v7481_v60 = vpack.c.bf16 %v768_v52, %v766_v44  ;;  %v770_v11 = vld [vmem:[#allocation8 + $0x560] sm:$0xff]  ;;  %v779_v44 = vld [vmem:[#allocation8 + $0x5a8] sm:$0xff]  ;;  %v781_v52 = vld [vmem:[#allocation8 + $0x5b8] sm:$0xff] }
 0x26e   :  { %v7496_v10 = vpack.c.bf16 %v781_v52, %v779_v44 }
 0x26f   :  { %9890 = vst [vmem:[#allocation94_spill] sm:$0xff] %v7481_v60 }
 0x270   :  { %4623 = vmatpush1.bf16.msra.mxu0 %v7469_v23  ;;  %v772_v23 = vld [vmem:[#allocation8 + $0x570] sm:$0xff]  ;;  %9895 = vst [vmem:[#allocation99_spill] sm:$0xff] %v7496_v10 }
 0x271   :  { %4625 = vmatprep.subr.bf16.mxu0 %v7472_v38  ;;  %v7487_v47 = vpack.c.bf16 %v772_v23, %v770_v11  ;;  %v774_v38 = vld [vmem:[#allocation8 + $0x580] sm:$0xff]  ;;  %v783_v11 = vld [vmem:[#allocation8 + $0x5c8] sm:$0xff]  ;;  %v785_v23 = vld [vmem:[#allocation8 + $0x5d8] sm:$0xff] }
 0x272   :  { %v7502_v34 = vpack.c.bf16 %v785_v23, %v783_v11 }
 0x273   :  { %9892 = vst [vmem:[#allocation96_spill] sm:$0xff] %v7487_v47 }
 0x274   :  { %4627 = vmatpush1.bf16.msra.mxu0 %v7475_v35  ;;  %v776_v35 = vld [vmem:[#allocation8 + $0x590] sm:$0xff]  ;;  %9897 = vst [vmem:[#allocation101_spill] sm:$0xff] %v7502_v34 }
 0x275   :  { %4629 = vmatprep.subr.bf16.mxu0 %v7478_v51  ;;  %v7493_v40 = vpack.c.bf16 %v776_v35, %v774_v38  ;;  %v778_v51 = vld [vmem:[#allocation8 + $0x5a0] sm:$0xff]  ;;  %v787_v38 = vld [vmem:[#allocation8 + $0x5e8] sm:$0xff]  ;;  %v789_v35 = vld [vmem:[#allocation8 + $0x5f8] sm:$0xff] }
 0x276   :  { %v7508_v52 = vpack.c.bf16 %v789_v35, %v787_v38 }
 0x277   :  { %9894 = vst [vmem:[#allocation98_spill] sm:$0xff] %v7493_v40 }
 0x278   :  { %4631 = vmatpush1.bf16.msra.mxu0 %v7481_v60  ;;  %v780_v60 = vld [vmem:[#allocation8 + $0x5b0] sm:$0xff]  ;;  %9899 = vst [vmem:[#allocation103_spill] sm:$0xff] %v7508_v52 }
 0x279   :  { %4633 = vmatprep.subr.bf16.mxu0 %v7484_v41  ;;  %v7499_v59 = vpack.c.bf16 %v780_v60, %v778_v51  ;;  %v782_v41 = vld [vmem:[#allocation8 + $0x5c0] sm:$0xff]  ;;  %v865_v51 = vld [vmem:[#allocation8 + $0x608] sm:$0xff]  ;;  %v867_v60 = vld [vmem:[#allocation8 + $0x618] sm:$0xff] }
 0x27a   :  { %v7514_v23 = vpack.c.bf16 %v867_v60, %v865_v51  ;;  %v877_v60 = vld [vmem:[#allocation8 + $0x668] sm:$0xff] }
 0x27b   :  { %9896 = vst [vmem:[#allocation100_spill] sm:$0xff] %v7499_v59 }
 0x27c   :  { %4635 = vmatpush1.bf16.msra.mxu0 %v7487_v47  ;;  %v784_v47 = vld [vmem:[#allocation8 + $0x5d0] sm:$0xff]  ;;  %9901 = vst [vmem:[#allocation105_spill] sm:$0xff] %v7514_v23 }
 0x27d   :  { %4637 = vmatprep.subr.bf16.mxu0 %v7490_v4  ;;  %v7505_v44 = vpack.c.bf16 %v784_v47, %v782_v41  ;;  %v786_v4 = vld [vmem:[#allocation8 + $0x5e0] sm:$0xff]  ;;  %v869_v41 = vld [vmem:[#allocation8 + $0x628] sm:$0xff]  ;;  %v871_v47 = vld [vmem:[#allocation8 + $0x638] sm:$0xff] }
 0x27e   :  { %v7521_v35 = vpack.c.bf16 %v871_v47, %v869_v41  ;;  %v879_v41 = vld [vmem:[#allocation8 + $0x678] sm:$0xff] }
 0x27f   :  { %9898 = vst [vmem:[#allocation102_spill] sm:$0xff] %v7505_v44 }
 0x280   :  { %4639 = vmatpush1.bf16.msra.mxu0 %v7493_v40  ;;  %v788_v40 = vld [vmem:[#allocation8 + $0x5f0] sm:$0xff]  ;;  %9903 = vst [vmem:[#allocation107_spill] sm:$0xff] %v7521_v35 }
 0x281   :  { %4641 = vmatprep.subr.bf16.mxu0 %v7496_v10  ;;  %v7511_v11 = vpack.c.bf16 %v788_v40, %v786_v4  ;;  %v864_v10 = vld [vmem:[#allocation8 + $0x600] sm:$0xff]  ;;  %v870_v40 = vld [vmem:[#allocation8 + $0x630] sm:$0xff] }
 0x282   :  { %v868_v4 = vld [vmem:[#allocation8 + $0x620] sm:$0xff] }
 0x283   :  { %9900 = vst [vmem:[#allocation104_spill] sm:$0xff] %v7511_v11  ;;  %v7525_v51 = vpack.c.bf16 %v870_v40, %v868_v4  ;;  %v881_v4 = vld [vmem:[#allocation8 + $0x688] sm:$0xff]  ;;  %v883_v40 = vld [vmem:[#allocation8 + $0x698] sm:$0xff] }
 0x284   :  { %4643 = vmatpush1.bf16.msra.mxu0 %v7499_v59  ;;  %v866_v59 = vld [vmem:[#allocation8 + $0x610] sm:$0xff] }
 0x285   :  { %4645 = vmatprep.subr.bf16.mxu0 %v7502_v34  ;;  %v931_v34 = vrot.slane %v7314_v16, 4  ;;  %v7518_v38 = vpack.c.bf16 %v866_v59, %v864_v10  ;;  %9904 = vst [vmem:[#allocation108_spill] sm:$0xff] %v7525_v51  ;;  %v872_v10 = vld [vmem:[#allocation8 + $0x640] sm:$0xff]  ;;  %v874_v59 = vld [vmem:[#allocation8 + $0x650] sm:$0xff] }
 0x286   :  { %v7531_v47 = vpack.c.bf16 %v874_v59, %v872_v10  ;;  %v885_v10 = vld [vmem:[#allocation8 + $0x6a8] sm:$0xff]  ;;  %v887_v59 = vld [vmem:[#allocation8 + $0x6b8] sm:$0xff] }
 0x287   :  { %9902 = vst [vmem:[#allocation106_spill] sm:$0xff] %v7518_v38 }
 0x288   :  { %4647 = vmatpush1.bf16.msra.mxu0 %v7505_v44  ;;  %v873_v44 = vld [vmem:[#allocation8 + $0x648] sm:$0xff]  ;;  %9906 = vst [vmem:[#allocation110_spill] sm:$0xff] %v7531_v47 }
 0x289   :  { %4649 = vmatprep.subr.bf16.mxu0 %v7508_v52  ;;  %v875_v52 = vld [vmem:[#allocation8 + $0x658] sm:$0xff] }
 0x28a   :  { %v7528_v16 = vpack.c.bf16 %v875_v52, %v873_v44  ;;  %v7540_v52 = vpack.c.bf16 %v883_v40, %v881_v4  ;;  %v9912_v4 = vmov 0.0  }
 0x28c   :  { %4651 = vmatpush1.bf16.msra.mxu0 %v7511_v11  ;;  %9905 = vst [vmem:[#allocation109_spill] sm:$0xff] %v7528_v16  ;;  %9909 = vst [vmem:[#allocation113_spill] sm:$0xff] %v7540_v52  ;;  %v891_v11 = vld [vmem:[#allocation8 + $0x6d8] sm:$0xff] }
 0x28d   :  { %4653 = vmatprep.subr.bf16.mxu0 %v7514_v23  ;;  %v7534_v23 = vpack.c.bf16 %v879_v41, %v877_v60  ;;  %v7546_v41 = vpack.c.bf16 %v887_v59, %v885_v10  ;;  %v890_v10 = vld [vmem:[#allocation8 + $0x6d0] sm:$0xff]  ;;  %v893_v59 = vld [vmem:[#allocation8 + $0x6e8] sm:$0xff] }
 0x28f   :  { %855 = vmatmul.mubr.f32.vlgmr.msra.gmra.mrb[12].mxu0 %v7312_v5  ;;  %9907 = vst [vmem:[#allocation111_spill] sm:$0xff] %v7534_v23  ;;  %9911 = vst [vmem:[#allocation115_spill] sm:$0xff] %v7546_v41 }
 0x290   :  { %4655 = vmatpush1.bf16.msra.mxu0 %v7518_v38  ;;  %998 = vmatprep.mubr.f32.mxu0 %v931_v34  ;;  %v876_v38 = vld [vmem:[#allocation8 + $0x660] sm:$0xff]  ;;  %v878_v34 = vld [vmem:[#allocation8 + $0x670] sm:$0xff] }
 0x291   :  { %4657 = vmatprep.subr.bf16.mxu0 %v7521_v35  ;;  %v7537_v44 = vpack.c.bf16 %v878_v34, %v876_v38  ;;  %v880_v35 = vld [vmem:[#allocation8 + $0x680] sm:$0xff]  ;;  %v1717_v38 = vld [vmem:[#allocation2 + $0x4] sm:$0xf] }
 0x292   :  { %v889_v34 = vld [vmem:[#allocation8 + $0x6c8] sm:$0xff]  ;;  %4415 = vmatmul.mubr.msk.f32.vlgmr.msra.gmra.mrb[10].mxu1 %vm139_vm0, %v1717_v38 }
 0x293   :  { %9908 = vst [vmem:[#allocation112_spill] sm:$0xff] %v7537_v44  ;;  %1882 = vmatprep.mubr.f32.mxu1 %v9912_v4 }
 0x294   :  { %4659 = vmatpush1.bf16.msra.mxu0 %v7525_v51  ;;  %v882_v51 = vld [vmem:[#allocation8 + $0x690] sm:$0xff] }
 0x295   :  { %4661 = vmatprep.subr.bf16.mxu0 %v7528_v16  ;;  %v7543_v60 = vpack.c.bf16 %v882_v51, %v880_v35  ;;  %v884_v16 = vld [vmem:[#allocation8 + $0x6a0] sm:$0xff]  ;;  %v7554_v35 = vpack.c.bf16 %v891_v11, %v889_v34 }
 0x296   :  { %v888_v51 = vld [vmem:[#allocation8 + $0x6c0] sm:$0xff] }
 0x297   :  { %9910 = vst [vmem:[#allocation114_spill] sm:$0xff] %v7543_v60  ;;  %9914 = vst [vmem:[#allocation117_spill] sm:$0xff] %v7554_v35 }
 0x298   :  { %4663 = vmatpush1.bf16.msra.mxu0 %v7531_v47  ;;  %v886_v47 = vld [vmem:[#allocation8 + $0x6b0] sm:$0xff] }
 0x299   :  { %4665 = vmatprep.subr.bf16.mxu0 %v7534_v23  ;;  %v7551_v40 = vpack.c.bf16 %v886_v47, %v884_v16  ;;  %v892_v23 = vld [vmem:[#allocation8 + $0x6e0] sm:$0xff]  ;;  %v897_v16 = vld [vmem:[#allocation8 + $0x708] sm:$0xff]  ;;  %v899_v47 = vld [vmem:[#allocation8 + $0x718] sm:$0xff] }
 0x29a   :  { %v7566_v34 = vpack.c.bf16 %v899_v47, %v897_v16 }
 0x29b   :  { %9913 = vst [vmem:[#allocation116_spill] sm:$0xff] %v7551_v40 }
 0x29c   :  { %4667 = vmatpush1.bf16.msra.mxu0 %v7537_v44  ;;  %v7557_v44 = vpack.c.bf16 %v890_v10, %v888_v51  ;;  %9918 = vst [vmem:[#allocation121_spill] sm:$0xff] %v7566_v34  ;;  %v901_v51 = vld [vmem:[#allocation8 + $0x728] sm:$0xff]  ;;  %v903_v10 = vld [vmem:[#allocation8 + $0x738] sm:$0xff] }
 0x29d   :  { %4669 = vmatprep.subr.bf16.mxu0 %v7540_v52  ;;  %v895_v52 = vld [vmem:[#allocation8 + $0x6f8] sm:$0xff] }
 0x29e   :  { %9915 = vst [vmem:[#allocation118_spill] sm:$0xff] %v7557_v44  ;;  %v7560_v38 = vpack.c.bf16 %v895_v52, %v893_v59  ;;  %v7572_v59 = vpack.c.bf16 %v903_v10, %v901_v51 }
 0x2a0   :  { %4671 = vmatpush1.bf16.msra.mxu0 %v7543_v60  ;;  %9916 = vst [vmem:[#allocation119_spill] sm:$0xff] %v7560_v38  ;;  %v894_v60 = vld [vmem:[#allocation8 + $0x6f0] sm:$0xff]  ;;  %9920 = vst [vmem:[#allocation123_spill] sm:$0xff] %v7572_v59 }
 0x2a1   :  { %4673 = vmatprep.subr.bf16.mxu0 %v7546_v41  ;;  %v7563_v11 = vpack.c.bf16 %v894_v60, %v892_v23  ;;  %v896_v41 = vld [vmem:[#allocation8 + $0x700] sm:$0xff]  ;;  %v905_v23 = vld [vmem:[#allocation8 + $0x748] sm:$0xff]  ;;  %v907_v60 = vld [vmem:[#allocation8 + $0x758] sm:$0xff] }
 0x2a2   :  { %v7578_v47 = vpack.c.bf16 %v907_v60, %v905_v23 }
 0x2a3   :  { %9917 = vst [vmem:[#allocation120_spill] sm:$0xff] %v7563_v11 }
 0x2a4   :  { %4675 = vmatpush1.bf16.msra.mxu0 %v7551_v40  ;;  %v898_v40 = vld [vmem:[#allocation8 + $0x710] sm:$0xff]  ;;  %9922 = vst [vmem:[#allocation125_spill] sm:$0xff] %v7578_v47 }
 0x2a5   :  { %4677 = vmatprep.subr.bf16.mxu0 %v7554_v35  ;;  %v7569_v52 = vpack.c.bf16 %v898_v40, %v896_v41  ;;  %v900_v35 = vld [vmem:[#allocation8 + $0x720] sm:$0xff]  ;;  %v909_v41 = vld [vmem:[#allocation8 + $0x768] sm:$0xff]  ;;  %v911_v40 = vld [vmem:[#allocation8 + $0x778] sm:$0xff] }
 0x2a6   :  { %v7584_v10 = vpack.c.bf16 %v911_v40, %v909_v41 }
 0x2a7   :  { %9919 = vst [vmem:[#allocation122_spill] sm:$0xff] %v7569_v52 }
 0x2a8   :  { %4679 = vmatpush1.bf16.msra.mxu0 %v7557_v44  ;;  %v902_v44 = vld [vmem:[#allocation8 + $0x730] sm:$0xff]  ;;  %9924 = vst [vmem:[#allocation127_spill] sm:$0xff] %v7584_v10 }
 0x2a9   :  { %4681 = vmatprep.subr.bf16.mxu0 %v7560_v38  ;;  %v7575_v16 = vpack.c.bf16 %v902_v44, %v900_v35  ;;  %v904_v38 = vld [vmem:[#allocation8 + $0x740] sm:$0xff]  ;;  %v913_v44 = vld [vmem:[#allocation8 + $0x788] sm:$0xff]  ;;  %v915_v35 = vld [vmem:[#allocation8 + $0x798] sm:$0xff] }
 0x2aa   :  { %v7590_v60 = vpack.c.bf16 %v915_v35, %v913_v44 }
 0x2ab   :  { %9921 = vst [vmem:[#allocation124_spill] sm:$0xff] %v7575_v16 }
 0x2ac   :  { %4683 = vmatpush1.bf16.msra.mxu0 %v7563_v11  ;;  %v906_v11 = vld [vmem:[#allocation8 + $0x750] sm:$0xff]  ;;  %9926 = vst [vmem:[#allocation129_spill] sm:$0xff] %v7590_v60 }
 0x2ad   :  { %4685 = vmatprep.subr.bf16.mxu0 %v7566_v34  ;;  %v7581_v51 = vpack.c.bf16 %v906_v11, %v904_v38  ;;  %v908_v34 = vld [vmem:[#allocation8 + $0x760] sm:$0xff]  ;;  %v917_v38 = vld [vmem:[#allocation8 + $0x7a8] sm:$0xff]  ;;  %v919_v11 = vld [vmem:[#allocation8 + $0x7b8] sm:$0xff] }
 0x2ae   :  { %v7596_v40 = vpack.c.bf16 %v919_v11, %v917_v38 }
 0x2af   :  { %9923 = vst [vmem:[#allocation126_spill] sm:$0xff] %v7581_v51 }
 0x2b0   :  { %4687 = vmatpush1.bf16.msra.mxu0 %v7569_v52  ;;  %v910_v52 = vld [vmem:[#allocation8 + $0x770] sm:$0xff]  ;;  %9928 = vst [vmem:[#allocation131_spill] sm:$0xff] %v7596_v40 }
 0x2b1   :  { %4689 = vmatprep.subr.bf16.mxu0 %v7572_v59  ;;  %v7587_v23 = vpack.c.bf16 %v910_v52, %v908_v34  ;;  %v912_v59 = vld [vmem:[#allocation8 + $0x780] sm:$0xff]  ;;  %v921_v34 = vld [vmem:[#allocation8 + $0x7c8] sm:$0xff]  ;;  %v923_v52 = vld [vmem:[#allocation8 + $0x7d8] sm:$0xff] }
 0x2b2   :  { %v7602_v35 = vpack.c.bf16 %v923_v52, %v921_v34 }
 0x2b3   :  { %9925 = vst [vmem:[#allocation128_spill] sm:$0xff] %v7587_v23 }
 0x2b4   :  { %4691 = vmatpush1.bf16.msra.mxu0 %v7575_v16  ;;  %v914_v16 = vld [vmem:[#allocation8 + $0x790] sm:$0xff]  ;;  %9930 = vst [vmem:[#allocation133_spill] sm:$0xff] %v7602_v35 }
 0x2b5   :  { %4693 = vmatprep.subr.bf16.mxu0 %v7578_v47  ;;  %v7593_v41 = vpack.c.bf16 %v914_v16, %v912_v59  ;;  %v916_v47 = vld [vmem:[#allocation8 + $0x7a0] sm:$0xff]  ;;  %v925_v59 = vld [vmem:[#allocation8 + $0x7e8] sm:$0xff]  ;;  %v927_v16 = vld [vmem:[#allocation8 + $0x7f8] sm:$0xff] }
 0x2b6   :  { %v7608_v11 = vpack.c.bf16 %v927_v16, %v925_v59  ;;  %v930_v16 = vrot.slane %v7312_v5, 4  ;;  %v1016_v5 = vld [vmem:[#allocation8 + $0x840] sm:$0xff] }
 0x2b7   :  { %9927 = vst [vmem:[#allocation130_spill] sm:$0xff] %v7593_v41 }
 0x2b8   :  { %4695 = vmatpush1.bf16.msra.mxu0 %v7581_v51  ;;  %v918_v51 = vld [vmem:[#allocation8 + $0x7b0] sm:$0xff]  ;;  %9932 = vst [vmem:[#allocation135_spill] sm:$0xff] %v7608_v11 }
 0x2b9   :  { %4697 = vmatprep.subr.bf16.mxu0 %v7584_v10  ;;  %v7599_v44 = vpack.c.bf16 %v918_v51, %v916_v47  ;;  %v920_v10 = vld [vmem:[#allocation8 + $0x7c0] sm:$0xff]  ;;  %v1009_v47 = vld [vmem:[#allocation8 + $0x808] sm:$0xff]  ;;  %v1011_v51 = vld [vmem:[#allocation8 + $0x818] sm:$0xff] }
 0x2ba   :  { %v7614_v52 = vpack.c.bf16 %v1011_v51, %v1009_v47  ;;  %v1021_v51 = vld [vmem:[#allocation8 + $0x868] sm:$0xff] }
 0x2bb   :  { %9929 = vst [vmem:[#allocation132_spill] sm:$0xff] %v7599_v44 }
 0x2bc   :  { %4699 = vmatpush1.bf16.msra.mxu0 %v7587_v23  ;;  %v922_v23 = vld [vmem:[#allocation8 + $0x7d0] sm:$0xff]  ;;  %9934 = vst [vmem:[#allocation137_spill] sm:$0xff] %v7614_v52 }
 0x2bd   :  { %4701 = vmatprep.subr.bf16.mxu0 %v7590_v60  ;;  %v7605_v38 = vpack.c.bf16 %v922_v23, %v920_v10  ;;  %v924_v60 = vld [vmem:[#allocation8 + $0x7e0] sm:$0xff]  ;;  %v1013_v10 = vld [vmem:[#allocation8 + $0x828] sm:$0xff]  ;;  %v1015_v23 = vld [vmem:[#allocation8 + $0x838] sm:$0xff] }
 0x2bf   :  { %9931 = vst [vmem:[#allocation134_spill] sm:$0xff] %v7605_v38 }
 0x2c0   :  { %4703 = vmatpush1.bf16.msra.mxu0 %v7593_v41  ;;  %v926_v41 = vld [vmem:[#allocation8 + $0x7f0] sm:$0xff] }
 0x2c1   :  { %4705 = vmatprep.subr.bf16.mxu0 %v7596_v40  ;;  %v7611_v34 = vpack.c.bf16 %v926_v41, %v924_v60  ;;  %v1008_v40 = vld [vmem:[#allocation8 + $0x800] sm:$0xff]  ;;  %v1014_v41 = vld [vmem:[#allocation8 + $0x830] sm:$0xff] }
 0x2c2   :  { %v1012_v60 = vld [vmem:[#allocation8 + $0x820] sm:$0xff] }
 0x2c3   :  { %9933 = vst [vmem:[#allocation136_spill] sm:$0xff] %v7611_v34  ;;  %v7624_v47 = vpack.c.bf16 %v1014_v41, %v1012_v60  ;;  %v1020_v60 = vld [vmem:[#allocation8 + $0x860] sm:$0xff]  ;;  %v1022_v41 = vld [vmem:[#allocation8 + $0x870] sm:$0xff] }
 0x2c4   :  { %4707 = vmatpush1.bf16.msra.mxu0 %v7599_v44  ;;  %v1010_v44 = vld [vmem:[#allocation8 + $0x810] sm:$0xff] }
 0x2c5   :  { %4709 = vmatprep.subr.bf16.mxu0 %v7602_v35  ;;  %v7617_v59 = vpack.c.bf16 %v1010_v44, %v1008_v40  ;;  %v7621_v35 = vpack.c.bf16 %v1015_v23, %v1013_v10  ;;  %9937 = vst [vmem:[#allocation140_spill] sm:$0xff] %v7624_v47  ;;  %v1018_v44 = vld [vmem:[#allocation8 + $0x850] sm:$0xff]  ;;  %v1023_v10 = vld [vmem:[#allocation8 + $0x878] sm:$0xff] }
 0x2c6   :  { %v7631_v23 = vpack.c.bf16 %v1018_v44, %v1016_v5  ;;  %v1029_v5 = vld [vmem:[#allocation8 + $0x8a8] sm:$0xff]  ;;  %v1031_v44 = vld [vmem:[#allocation8 + $0x8b8] sm:$0xff] }
 0x2c7   :  { %9935 = vst [vmem:[#allocation138_spill] sm:$0xff] %v7617_v59  ;;  %9936 = vst [vmem:[#allocation139_spill] sm:$0xff] %v7621_v35 }
 0x2c8   :  { %4711 = vmatpush1.bf16.msra.mxu0 %v7605_v38  ;;  %v1017_v38 = vld [vmem:[#allocation8 + $0x848] sm:$0xff]  ;;  %9939 = vst [vmem:[#allocation142_spill] sm:$0xff] %v7631_v23 }
 0x2c9   :  { %4713 = vmatprep.subr.bf16.mxu0 %v7608_v11  ;;  %v1019_v11 = vld [vmem:[#allocation8 + $0x858] sm:$0xff] }
 0x2ca   :  { %v7628_v40 = vpack.c.bf16 %v1019_v11, %v1017_v38  ;;  %v7637_v38 = vpack.c.bf16 %v1022_v41, %v1020_v60  ;;  %v1033_v60 = vld [vmem:[#allocation8 + $0x8c8] sm:$0xff]  ;;  %v1035_v41 = vld [vmem:[#allocation8 + $0x8d8] sm:$0xff] }
 0x2cc   :  { %4715 = vmatpush1.bf16.msra.mxu0 %v7611_v34  ;;  %9938 = vst [vmem:[#allocation141_spill] sm:$0xff] %v7628_v40  ;;  %9941 = vst [vmem:[#allocation144_spill] sm:$0xff] %v7637_v38 }
 0x2cd   :  { %4717 = vmatprep.subr.bf16.mxu0 %v7614_v52  ;;  %v1027_v52 = vld [vmem:[#allocation8 + $0x898] sm:$0xff] }
 0x2cf   :  { %999 = vmatmul.mubr.f32.vlgmr.msra.gmra.mrb[12].mxu0 %v930_v16  ;;  %v7634_v16 = vpack.c.bf16 %v1023_v10, %v1021_v51  ;;  %v7646_v10 = vpack.c.bf16 %v1031_v44, %v1029_v5 }
 0x2d0   :  { %4719 = vmatpush1.bf16.msra.mxu0 %v7617_v59  ;;  %1136 = vmatprep.mubr.f32.mxu0 %v7428_v22  ;;  %v1025_v59 = vld [vmem:[#allocation8 + $0x888] sm:$0xff] }
 0x2d1   :  { %4721 = vmatprep.subr.bf16.mxu0 %v7621_v35  ;;  %9940 = vst [vmem:[#allocation143_spill] sm:$0xff] %v7634_v16  ;;  %v7640_v11 = vpack.c.bf16 %v1027_v52, %v1025_v59  ;;  %v1024_v35 = vld [vmem:[#allocation8 + $0x880] sm:$0xff]  ;;  %9944 = vst [vmem:[#allocation147_spill] sm:$0xff] %v7646_v10  ;;  %v7652_v59 = vpack.c.bf16 %v1035_v41, %v1033_v60 }
 0x2d3   :  { %9942 = vst [vmem:[#allocation145_spill] sm:$0xff] %v7640_v11  ;;  %9946 = vst [vmem:[#allocation149_spill] sm:$0xff] %v7652_v59 }
 0x2d4   :  { %4723 = vmatpush1.bf16.msra.mxu0 %v7624_v47  ;;  %v1026_v47 = vld [vmem:[#allocation8 + $0x890] sm:$0xff] }
 0x2d5   :  { %4725 = vmatprep.subr.bf16.mxu0 %v7628_v40  ;;  %v7643_v51 = vpack.c.bf16 %v1026_v47, %v1024_v35  ;;  %v1028_v40 = vld [vmem:[#allocation8 + $0x8a0] sm:$0xff]  ;;  %v1037_v35 = vld [vmem:[#allocation8 + $0x8e8] sm:$0xff]  ;;  %v1039_v47 = vld [vmem:[#allocation8 + $0x8f8] sm:$0xff] }
 0x2d6   :  { %v7658_v44 = vpack.c.bf16 %v1039_v47, %v1037_v35 }
 0x2d7   :  { %9943 = vst [vmem:[#allocation146_spill] sm:$0xff] %v7643_v51 }
 0x2d8   :  { %4727 = vmatpush1.bf16.msra.mxu0 %v7631_v23  ;;  %v1030_v23 = vld [vmem:[#allocation8 + $0x8b0] sm:$0xff]  ;;  %9948 = vst [vmem:[#allocation151_spill] sm:$0xff] %v7658_v44 }
 0x2d9   :  { %4729 = vmatprep.subr.bf16.mxu0 %v7634_v16  ;;  %v7649_v52 = vpack.c.bf16 %v1030_v23, %v1028_v40  ;;  %v1032_v16 = vld [vmem:[#allocation8 + $0x8c0] sm:$0xff]  ;;  %v1041_v40 = vld [vmem:[#allocation8 + $0x908] sm:$0xff]  ;;  %v1043_v23 = vld [vmem:[#allocation8 + $0x918] sm:$0xff] }
 0x2da   :  { %v7664_v41 = vpack.c.bf16 %v1043_v23, %v1041_v40 }
 0x2db   :  { %9945 = vst [vmem:[#allocation148_spill] sm:$0xff] %v7649_v52 }
 0x2dc   :  { %4731 = vmatpush1.bf16.msra.mxu0 %v7637_v38  ;;  %v1034_v38 = vld [vmem:[#allocation8 + $0x8d0] sm:$0xff]  ;;  %9950 = vst [vmem:[#allocation153_spill] sm:$0xff] %v7664_v41 }
 0x2dd   :  { %4733 = vmatprep.subr.bf16.mxu0 %v7640_v11  ;;  %v7655_v5 = vpack.c.bf16 %v1034_v38, %v1032_v16  ;;  %v1036_v11 = vld [vmem:[#allocation8 + $0x8e0] sm:$0xff]  ;;  %v1045_v16 = vld [vmem:[#allocation8 + $0x928] sm:$0xff]  ;;  %v1047_v38 = vld [vmem:[#allocation8 + $0x938] sm:$0xff] }
 0x2de   :  { %v7670_v47 = vpack.c.bf16 %v1047_v38, %v1045_v16 }
 0x2df   :  { %9947 = vst [vmem:[#allocation150_spill] sm:$0xff] %v7655_v5 }
 0x2e0   :  { %4735 = vmatpush1.bf16.msra.mxu0 %v7643_v51  ;;  %v1038_v51 = vld [vmem:[#allocation8 + $0x8f0] sm:$0xff]  ;;  %9952 = vst [vmem:[#allocation155_spill] sm:$0xff] %v7670_v47 }
 0x2e1   :  { %4737 = vmatprep.subr.bf16.mxu0 %v7646_v10  ;;  %v7661_v60 = vpack.c.bf16 %v1038_v51, %v1036_v11  ;;  %v1040_v10 = vld [vmem:[#allocation8 + $0x900] sm:$0xff]  ;;  %v1049_v11 = vld [vmem:[#allocation8 + $0x948] sm:$0xff]  ;;  %v1051_v51 = vld [vmem:[#allocation8 + $0x958] sm:$0xff] }
 0x2e2   :  { %v7676_v23 = vpack.c.bf16 %v1051_v51, %v1049_v11 }
 0x2e3   :  { %9949 = vst [vmem:[#allocation152_spill] sm:$0xff] %v7661_v60 }
 0x2e4   :  { %4739 = vmatpush1.bf16.msra.mxu0 %v7649_v52  ;;  %v1042_v52 = vld [vmem:[#allocation8 + $0x910] sm:$0xff]  ;;  %9954 = vst [vmem:[#allocation157_spill] sm:$0xff] %v7676_v23 }
 0x2e5   :  { %4741 = vmatprep.subr.bf16.mxu0 %v7652_v59  ;;  %v7667_v35 = vpack.c.bf16 %v1042_v52, %v1040_v10  ;;  %v1044_v59 = vld [vmem:[#allocation8 + $0x920] sm:$0xff]  ;;  %v1053_v10 = vld [vmem:[#allocation8 + $0x968] sm:$0xff]  ;;  %v1055_v52 = vld [vmem:[#allocation8 + $0x978] sm:$0xff] }
 0x2e6   :  { %v7682_v38 = vpack.c.bf16 %v1055_v52, %v1053_v10 }
 0x2e7   :  { %9951 = vst [vmem:[#allocation154_spill] sm:$0xff] %v7667_v35 }
 0x2e8   :  { %4743 = vmatpush1.bf16.msra.mxu0 %v7655_v5  ;;  %v1046_v5 = vld [vmem:[#allocation8 + $0x930] sm:$0xff]  ;;  %9956 = vst [vmem:[#allocation159_spill] sm:$0xff] %v7682_v38 }
 0x2e9   :  { %4745 = vmatprep.subr.bf16.mxu0 %v7658_v44  ;;  %v7673_v40 = vpack.c.bf16 %v1046_v5, %v1044_v59  ;;  %v1048_v44 = vld [vmem:[#allocation8 + $0x940] sm:$0xff]  ;;  %v1057_v59 = vld [vmem:[#allocation8 + $0x988] sm:$0xff]  ;;  %v1059_v5 = vld [vmem:[#allocation8 + $0x998] sm:$0xff] }
 0x2ea   :  { %v7688_v51 = vpack.c.bf16 %v1059_v5, %v1057_v59 }
 0x2eb   :  { %9953 = vst [vmem:[#allocation156_spill] sm:$0xff] %v7673_v40 }
 0x2ec   :  { %4747 = vmatpush1.bf16.msra.mxu0 %v7661_v60  ;;  %v1050_v60 = vld [vmem:[#allocation8 + $0x950] sm:$0xff]  ;;  %9958 = vst [vmem:[#allocation161_spill] sm:$0xff] %v7688_v51 }
 0x2ed   :  { %4749 = vmatprep.subr.bf16.mxu0 %v7664_v41  ;;  %v7679_v16 = vpack.c.bf16 %v1050_v60, %v1048_v44  ;;  %v1052_v41 = vld [vmem:[#allocation8 + $0x960] sm:$0xff]  ;;  %v1061_v44 = vld [vmem:[#allocation8 + $0x9a8] sm:$0xff]  ;;  %v1063_v60 = vld [vmem:[#allocation8 + $0x9b8] sm:$0xff] }
 0x2ee   :  { %v7694_v52 = vpack.c.bf16 %v1063_v60, %v1061_v44 }
 0x2ef   :  { %9955 = vst [vmem:[#allocation158_spill] sm:$0xff] %v7679_v16 }
 0x2f0   :  { %4751 = vmatpush1.bf16.msra.mxu0 %v7667_v35  ;;  %v1054_v35 = vld [vmem:[#allocation8 + $0x970] sm:$0xff]  ;;  %9960 = vst [vmem:[#allocation163_spill] sm:$0xff] %v7694_v52 }
 0x2f1   :  { %4753 = vmatprep.subr.bf16.mxu0 %v7670_v47  ;;  %v7685_v11 = vpack.c.bf16 %v1054_v35, %v1052_v41  ;;  %v1056_v47 = vld [vmem:[#allocation8 + $0x980] sm:$0xff]  ;;  %v1065_v41 = vld [vmem:[#allocation8 + $0x9c8] sm:$0xff]  ;;  %v1067_v35 = vld [vmem:[#allocation8 + $0x9d8] sm:$0xff] }
 0x2f2   :  { %v7700_v5 = vpack.c.bf16 %v1067_v35, %v1065_v41 }
 0x2f3   :  { %9957 = vst [vmem:[#allocation160_spill] sm:$0xff] %v7685_v11 }
 0x2f4   :  { %4755 = vmatpush1.bf16.msra.mxu0 %v7673_v40  ;;  %v1058_v40 = vld [vmem:[#allocation8 + $0x990] sm:$0xff]  ;;  %9962 = vst [vmem:[#allocation165_spill] sm:$0xff] %v7700_v5 }
 0x2f5   :  { %4757 = vmatprep.subr.bf16.mxu0 %v7676_v23  ;;  %v7691_v10 = vpack.c.bf16 %v1058_v40, %v1056_v47  ;;  %v1060_v23 = vld [vmem:[#allocation8 + $0x9a0] sm:$0xff]  ;;  %v1069_v47 = vld [vmem:[#allocation8 + $0x9e8] sm:$0xff]  ;;  %v1071_v40 = vld [vmem:[#allocation8 + $0x9f8] sm:$0xff] }
 0x2f6   :  { %v7706_v60 = vpack.c.bf16 %v1071_v40, %v1069_v47 }
 0x2f7   :  { %9959 = vst [vmem:[#allocation162_spill] sm:$0xff] %v7691_v10 }
 0x2f8   :  { %4759 = vmatpush1.bf16.msra.mxu0 %v7679_v16  ;;  %v1062_v16 = vld [vmem:[#allocation8 + $0x9b0] sm:$0xff]  ;;  %9964 = vst [vmem:[#allocation167_spill] sm:$0xff] %v7706_v60 }
 0x2f9   :  { %4761 = vmatprep.subr.bf16.mxu0 %v7682_v38  ;;  %v7697_v59 = vpack.c.bf16 %v1062_v16, %v1060_v23  ;;  %v1064_v38 = vld [vmem:[#allocation8 + $0x9c0] sm:$0xff]  ;;  %v1147_v23 = vld [vmem:[#allocation8 + $0xa08] sm:$0xff]  ;;  %v1149_v16 = vld [vmem:[#allocation8 + $0xa18] sm:$0xff] }
 0x2fa   :  { %v7712_v35 = vpack.c.bf16 %v1149_v16, %v1147_v23  ;;  %v1156_v16 = vld [vmem:[#allocation8 + $0xa50] sm:$0xff] }
 0x2fb   :  { %9961 = vst [vmem:[#allocation164_spill] sm:$0xff] %v7697_v59 }
 0x2fc   :  { %4763 = vmatpush1.bf16.msra.mxu0 %v7685_v11  ;;  %v1066_v11 = vld [vmem:[#allocation8 + $0x9d0] sm:$0xff]  ;;  %9966 = vst [vmem:[#allocation169_spill] sm:$0xff] %v7712_v35 }
 0x2fd   :  { %4765 = vmatprep.subr.bf16.mxu0 %v7688_v51  ;;  %v7703_v44 = vpack.c.bf16 %v1066_v11, %v1064_v38  ;;  %v1068_v51 = vld [vmem:[#allocation8 + $0x9e0] sm:$0xff]  ;;  %v1151_v38 = vld [vmem:[#allocation8 + $0xa28] sm:$0xff]  ;;  %v1153_v11 = vld [vmem:[#allocation8 + $0xa38] sm:$0xff] }
 0x2fe   :  { %v7718_v40 = vpack.c.bf16 %v1153_v11, %v1151_v38  ;;  %v1159_v38 = vld [vmem:[#allocation8 + $0xa68] sm:$0xff]  ;;  %v1161_v11 = vld [vmem:[#allocation8 + $0xa78] sm:$0xff] }
 0x2ff   :  { %9963 = vst [vmem:[#allocation166_spill] sm:$0xff] %v7703_v44 }
 0x300   :  { %4767 = vmatpush1.bf16.msra.mxu0 %v7691_v10  ;;  %v1070_v10 = vld [vmem:[#allocation8 + $0x9f0] sm:$0xff]  ;;  %9968 = vst [vmem:[#allocation171_spill] sm:$0xff] %v7718_v40 }
 0x301   :  { %4769 = vmatprep.subr.bf16.mxu0 %v7694_v52  ;;  %v7709_v41 = vpack.c.bf16 %v1070_v10, %v1068_v51  ;;  %v1146_v52 = vld [vmem:[#allocation8 + $0xa00] sm:$0xff]  ;;  %v1213_v51 = vrot.slane %v7428_v22, 4  ;;  %v1155_v10 = vld [vmem:[#allocation8 + $0xa48] sm:$0xff] }
 0x303   :  { %9965 = vst [vmem:[#allocation168_spill] sm:$0xff] %v7709_v41 }
 0x304   :  { %4771 = vmatpush1.bf16.msra.mxu0 %v7697_v59  ;;  %v1148_v59 = vld [vmem:[#allocation8 + $0xa10] sm:$0xff] }
 0x305   :  { %4773 = vmatprep.subr.bf16.mxu0 %v7700_v5  ;;  %v7715_v47 = vpack.c.bf16 %v1148_v59, %v1146_v52  ;;  %v1150_v5 = vld [vmem:[#allocation8 + $0xa20] sm:$0xff] }
 0x306   :  { %v1154_v59 = vld [vmem:[#allocation8 + $0xa40] sm:$0xff] }
 0x307   :  { %9967 = vst [vmem:[#allocation170_spill] sm:$0xff] %v7715_v47  ;;  %v7729_v22 = vpack.c.bf16 %v1156_v16, %v1154_v59  ;;  %v1167_v59 = vld [vmem:[#allocation8 + $0xaa8] sm:$0xff]  ;;  %v1169_v16 = vld [vmem:[#allocation8 + $0xab8] sm:$0xff] }
 0x308   :  { %4775 = vmatpush1.bf16.msra.mxu0 %v7703_v44  ;;  %v1152_v44 = vld [vmem:[#allocation8 + $0xa30] sm:$0xff] }
 0x309   :  { %4777 = vmatprep.subr.bf16.mxu0 %v7706_v60  ;;  %v1157_v60 = vld [vmem:[#allocation8 + $0xa58] sm:$0xff]  ;;  %v7723_v23 = vpack.c.bf16 %v1152_v44, %v1150_v5  ;;  %9971 = vst [vmem:[#allocation174_spill] sm:$0xff] %v7729_v22  ;;  %v1163_v5 = vld [vmem:[#allocation8 + $0xa88] sm:$0xff] }
 0x30a   :  { %v7726_v52 = vpack.c.bf16 %v1157_v60, %v1155_v10  ;;  %v1165_v44 = vld [vmem:[#allocation8 + $0xa98] sm:$0xff] }
 0x30b   :  { %9969 = vst [vmem:[#allocation172_spill] sm:$0xff] %v7723_v23  ;;  %v7738_v10 = vpack.c.bf16 %v1165_v44, %v1163_v5 }
 0x30c   :  { %4779 = vmatpush1.bf16.msra.mxu0 %v7709_v41  ;;  %9970 = vst [vmem:[#allocation173_spill] sm:$0xff] %v7726_v52 }
 0x30d   :  { %4781 = vmatprep.subr.bf16.mxu0 %v7712_v35  ;;  %v7732_v35 = vpack.c.bf16 %v1161_v11, %v1159_v38  ;;  %9974 = vst [vmem:[#allocation177_spill] sm:$0xff] %v7738_v10  ;;  %v7744_v11 = vpack.c.bf16 %v1169_v16, %v1167_v59 }
 0x30f   :  { %1137 = vmatmul.mubr.f32.vlgmr.msra.gmra.mrb[12].mxu0 %v7426_v56  ;;  %9972 = vst [vmem:[#allocation175_spill] sm:$0xff] %v7732_v35  ;;  %9976 = vst [vmem:[#allocation179_spill] sm:$0xff] %v7744_v11 }
 0x310   :  { %4783 = vmatpush1.bf16.msra.mxu0 %v7715_v47  ;;  %1280 = vmatprep.mubr.f32.mxu0 %v1213_v51  ;;  %v1158_v47 = vld [vmem:[#allocation8 + $0xa60] sm:$0xff]  ;;  %v1160_v51 = vld [vmem:[#allocation8 + $0xa70] sm:$0xff] }
 0x311   :  { %4785 = vmatprep.subr.bf16.mxu0 %v7718_v40  ;;  %v7735_v60 = vpack.c.bf16 %v1160_v51, %v1158_v47  ;;  %v1162_v40 = vld [vmem:[#allocation8 + $0xa80] sm:$0xff]  ;;  %v1171_v47 = vld [vmem:[#allocation8 + $0xac8] sm:$0xff]  ;;  %v1173_v51 = vld [vmem:[#allocation8 + $0xad8] sm:$0xff] }
 0x312   :  { %v7750_v44 = vpack.c.bf16 %v1173_v51, %v1171_v47 }
 0x313   :  { %9973 = vst [vmem:[#allocation176_spill] sm:$0xff] %v7735_v60 }
 0x314   :  { %4787 = vmatpush1.bf16.msra.mxu0 %v7723_v23  ;;  %v1164_v23 = vld [vmem:[#allocation8 + $0xa90] sm:$0xff]  ;;  %9978 = vst [vmem:[#allocation181_spill] sm:$0xff] %v7750_v44 }
 0x315   :  { %4789 = vmatprep.subr.bf16.mxu0 %v7726_v52  ;;  %v7741_v38 = vpack.c.bf16 %v1164_v23, %v1162_v40  ;;  %v1166_v52 = vld [vmem:[#allocation8 + $0xaa0] sm:$0xff]  ;;  %v1175_v40 = vld [vmem:[#allocation8 + $0xae8] sm:$0xff]  ;;  %v1177_v23 = vld [vmem:[#allocation8 + $0xaf8] sm:$0xff] }
 0x316   :  { %v7756_v16 = vpack.c.bf16 %v1177_v23, %v1175_v40 }
 0x317   :  { %9975 = vst [vmem:[#allocation178_spill] sm:$0xff] %v7741_v38 }
 0x318   :  { %4791 = vmatpush1.bf16.msra.mxu0 %v7729_v22  ;;  %v1168_v22 = vld [vmem:[#allocation8 + $0xab0] sm:$0xff]  ;;  %9980 = vst [vmem:[#allocation183_spill] sm:$0xff] %v7756_v16 }
 0x319   :  { %4793 = vmatprep.subr.bf16.mxu0 %v7732_v35  ;;  %v7747_v5 = vpack.c.bf16 %v1168_v22, %v1166_v52  ;;  %v1170_v35 = vld [vmem:[#allocation8 + $0xac0] sm:$0xff]  ;;  %v1179_v52 = vld [vmem:[#allocation8 + $0xb08] sm:$0xff]  ;;  %v1181_v22 = vld [vmem:[#allocation8 + $0xb18] sm:$0xff] }
 0x31a   :  { %v7762_v51 = vpack.c.bf16 %v1181_v22, %v1179_v52 }
 0x31b   :  { %9977 = vst [vmem:[#allocation180_spill] sm:$0xff] %v7747_v5 }
 0x31c   :  { %4795 = vmatpush1.bf16.msra.mxu0 %v7735_v60  ;;  %v1172_v60 = vld [vmem:[#allocation8 + $0xad0] sm:$0xff]  ;;  %9982 = vst [vmem:[#allocation185_spill] sm:$0xff] %v7762_v51 }
 0x31d   :  { %4797 = vmatprep.subr.bf16.mxu0 %v7738_v10  ;;  %v7753_v59 = vpack.c.bf16 %v1172_v60, %v1170_v35  ;;  %v1174_v10 = vld [vmem:[#allocation8 + $0xae0] sm:$0xff]  ;;  %v1183_v35 = vld [vmem:[#allocation8 + $0xb28] sm:$0xff]  ;;  %v1185_v60 = vld [vmem:[#allocation8 + $0xb38] sm:$0xff] }
 0x31e   :  { %v7768_v23 = vpack.c.bf16 %v1185_v60, %v1183_v35 }
 0x31f   :  { %9979 = vst [vmem:[#allocation182_spill] sm:$0xff] %v7753_v59 }
 0x320   :  { %4799 = vmatpush1.bf16.msra.mxu0 %v7741_v38  ;;  %v1176_v38 = vld [vmem:[#allocation8 + $0xaf0] sm:$0xff]  ;;  %9984 = vst [vmem:[#allocation187_spill] sm:$0xff] %v7768_v23 }
 0x321   :  { %4801 = vmatprep.subr.bf16.mxu0 %v7744_v11  ;;  %v7759_v47 = vpack.c.bf16 %v1176_v38, %v1174_v10  ;;  %v1178_v11 = vld [vmem:[#allocation8 + $0xb00] sm:$0xff]  ;;  %v1187_v10 = vld [vmem:[#allocation8 + $0xb48] sm:$0xff]  ;;  %v1189_v38 = vld [vmem:[#allocation8 + $0xb58] sm:$0xff] }
 0x322   :  { %v7774_v22 = vpack.c.bf16 %v1189_v38, %v1187_v10 }
 0x323   :  { %9981 = vst [vmem:[#allocation184_spill] sm:$0xff] %v7759_v47 }
 0x324   :  { %4803 = vmatpush1.bf16.msra.mxu0 %v7747_v5  ;;  %v1180_v5 = vld [vmem:[#allocation8 + $0xb10] sm:$0xff]  ;;  %9986 = vst [vmem:[#allocation189_spill] sm:$0xff] %v7774_v22 }
 0x325   :  { %4805 = vmatprep.subr.bf16.mxu0 %v7750_v44  ;;  %v7765_v40 = vpack.c.bf16 %v1180_v5, %v1178_v11  ;;  %v1182_v44 = vld [vmem:[#allocation8 + $0xb20] sm:$0xff]  ;;  %v1191_v11 = vld [vmem:[#allocation8 + $0xb68] sm:$0xff]  ;;  %v1193_v5 = vld [vmem:[#allocation8 + $0xb78] sm:$0xff] }
 0x326   :  { %v7780_v60 = vpack.c.bf16 %v1193_v5, %v1191_v11 }
 0x327   :  { %9983 = vst [vmem:[#allocation186_spill] sm:$0xff] %v7765_v40 }
 0x328   :  { %4807 = vmatpush1.bf16.msra.mxu0 %v7753_v59  ;;  %v1184_v59 = vld [vmem:[#allocation8 + $0xb30] sm:$0xff]  ;;  %9988 = vst [vmem:[#allocation191_spill] sm:$0xff] %v7780_v60 }
 0x329   :  { %4809 = vmatprep.subr.bf16.mxu0 %v7756_v16  ;;  %v7771_v52 = vpack.c.bf16 %v1184_v59, %v1182_v44  ;;  %v1186_v16 = vld [vmem:[#allocation8 + $0xb40] sm:$0xff]  ;;  %v1195_v44 = vld [vmem:[#allocation8 + $0xb88] sm:$0xff]  ;;  %v1197_v59 = vld [vmem:[#allocation8 + $0xb98] sm:$0xff] }
 0x32a   :  { %v7786_v38 = vpack.c.bf16 %v1197_v59, %v1195_v44 }
 0x32b   :  { %9985 = vst [vmem:[#allocation188_spill] sm:$0xff] %v7771_v52 }
 0x32c   :  { %4811 = vmatpush1.bf16.msra.mxu0 %v7759_v47  ;;  %v1188_v47 = vld [vmem:[#allocation8 + $0xb50] sm:$0xff]  ;;  %9990 = vst [vmem:[#allocation193_spill] sm:$0xff] %v7786_v38 }
 0x32d   :  { %4813 = vmatprep.subr.bf16.mxu0 %v7762_v51  ;;  %v7777_v35 = vpack.c.bf16 %v1188_v47, %v1186_v16  ;;  %v1190_v51 = vld [vmem:[#allocation8 + $0xb60] sm:$0xff]  ;;  %v1199_v16 = vld [vmem:[#allocation8 + $0xba8] sm:$0xff]  ;;  %v1201_v47 = vld [vmem:[#allocation8 + $0xbb8] sm:$0xff] }
 0x32e   :  { %v7792_v5 = vpack.c.bf16 %v1201_v47, %v1199_v16 }
 0x32f   :  { %9987 = vst [vmem:[#allocation190_spill] sm:$0xff] %v7777_v35 }
 0x330   :  { %4815 = vmatpush1.bf16.msra.mxu0 %v7765_v40  ;;  %v1192_v40 = vld [vmem:[#allocation8 + $0xb70] sm:$0xff]  ;;  %9992 = vst [vmem:[#allocation195_spill] sm:$0xff] %v7792_v5 }
 0x331   :  { %4817 = vmatprep.subr.bf16.mxu0 %v7768_v23  ;;  %v7783_v10 = vpack.c.bf16 %v1192_v40, %v1190_v51  ;;  %v1194_v23 = vld [vmem:[#allocation8 + $0xb80] sm:$0xff]  ;;  %v1203_v51 = vld [vmem:[#allocation8 + $0xbc8] sm:$0xff]  ;;  %v1205_v40 = vld [vmem:[#allocation8 + $0xbd8] sm:$0xff] }
 0x332   :  { %v7798_v59 = vpack.c.bf16 %v1205_v40, %v1203_v51 }
 0x333   :  { %9989 = vst [vmem:[#allocation192_spill] sm:$0xff] %v7783_v10 }
 0x334   :  { %4819 = vmatpush1.bf16.msra.mxu0 %v7771_v52  ;;  %v1196_v52 = vld [vmem:[#allocation8 + $0xb90] sm:$0xff]  ;;  %9994 = vst [vmem:[#allocation197_spill] sm:$0xff] %v7798_v59 }
 0x335   :  { %4821 = vmatprep.subr.bf16.mxu0 %v7774_v22  ;;  %v7789_v11 = vpack.c.bf16 %v1196_v52, %v1194_v23  ;;  %v1198_v22 = vld [vmem:[#allocation8 + $0xba0] sm:$0xff]  ;;  %v1207_v23 = vld [vmem:[#allocation8 + $0xbe8] sm:$0xff]  ;;  %v1209_v52 = vld [vmem:[#allocation8 + $0xbf8] sm:$0xff] }
 0x336   :  { %v7804_v47 = vpack.c.bf16 %v1209_v52, %v1207_v23  ;;  %v1212_v52 = vrot.slane %v7426_v56, 4  ;;  %v1298_v56 = vld [vmem:[#allocation8 + $0xc40] sm:$0xff] }
 0x337   :  { %9991 = vst [vmem:[#allocation194_spill] sm:$0xff] %v7789_v11 }
 0x338   :  { %4823 = vmatpush1.bf16.msra.mxu0 %v7777_v35  ;;  %v1200_v35 = vld [vmem:[#allocation8 + $0xbb0] sm:$0xff]  ;;  %9996 = vst [vmem:[#allocation199_spill] sm:$0xff] %v7804_v47 }
 0x339   :  { %4825 = vmatprep.subr.bf16.mxu0 %v7780_v60  ;;  %v7795_v44 = vpack.c.bf16 %v1200_v35, %v1198_v22  ;;  %v1202_v60 = vld [vmem:[#allocation8 + $0xbc0] sm:$0xff]  ;;  %v1291_v22 = vld [vmem:[#allocation8 + $0xc08] sm:$0xff]  ;;  %v1293_v35 = vld [vmem:[#allocation8 + $0xc18] sm:$0xff] }
 0x33a   :  { %v7810_v40 = vpack.c.bf16 %v1293_v35, %v1291_v22  ;;  %v1303_v35 = vld [vmem:[#allocation8 + $0xc68] sm:$0xff] }
 0x33b   :  { %9993 = vst [vmem:[#allocation196_spill] sm:$0xff] %v7795_v44 }
 0x33c   :  { %4827 = vmatpush1.bf16.msra.mxu0 %v7783_v10  ;;  %v1204_v10 = vld [vmem:[#allocation8 + $0xbd0] sm:$0xff]  ;;  %9998 = vst [vmem:[#allocation201_spill] sm:$0xff] %v7810_v40 }
 0x33d   :  { %4829 = vmatprep.subr.bf16.mxu0 %v7786_v38  ;;  %v7801_v16 = vpack.c.bf16 %v1204_v10, %v1202_v60  ;;  %v1206_v38 = vld [vmem:[#allocation8 + $0xbe0] sm:$0xff]  ;;  %v1295_v60 = vld [vmem:[#allocation8 + $0xc28] sm:$0xff]  ;;  %v1297_v10 = vld [vmem:[#allocation8 + $0xc38] sm:$0xff] }
 0x33f   :  { %9995 = vst [vmem:[#allocation198_spill] sm:$0xff] %v7801_v16 }
 0x340   :  { %4831 = vmatpush1.bf16.msra.mxu0 %v7789_v11  ;;  %v1208_v11 = vld [vmem:[#allocation8 + $0xbf0] sm:$0xff] }
 0x341   :  { %4833 = vmatprep.subr.bf16.mxu0 %v7792_v5  ;;  %v7807_v51 = vpack.c.bf16 %v1208_v11, %v1206_v38  ;;  %v1290_v5 = vld [vmem:[#allocation8 + $0xc00] sm:$0xff]  ;;  %v1296_v11 = vld [vmem:[#allocation8 + $0xc30] sm:$0xff] }
 0x342   :  { %v1294_v38 = vld [vmem:[#allocation8 + $0xc20] sm:$0xff] }
 0x343   :  { %9997 = vst [vmem:[#allocation200_spill] sm:$0xff] %v7807_v51  ;;  %v7821_v22 = vpack.c.bf16 %v1296_v11, %v1294_v38  ;;  %v1307_v38 = vld [vmem:[#allocation8 + $0xc88] sm:$0xff]  ;;  %v1309_v11 = vld [vmem:[#allocation8 + $0xc98] sm:$0xff] }
 0x344   :  { %4835 = vmatpush1.bf16.msra.mxu0 %v7795_v44  ;;  %v1292_v44 = vld [vmem:[#allocation8 + $0xc10] sm:$0xff] }
 0x345   :  { %4837 = vmatprep.subr.bf16.mxu0 %v7798_v59  ;;  %v7813_v23 = vpack.c.bf16 %v1292_v44, %v1290_v5  ;;  %v7817_v59 = vpack.c.bf16 %v1297_v10, %v1295_v60  ;;  %10001 = vst [vmem:[#allocation204_spill] sm:$0xff] %v7821_v22  ;;  %v1300_v44 = vld [vmem:[#allocation8 + $0xc50] sm:$0xff]  ;;  %v1305_v60 = vld [vmem:[#allocation8 + $0xc78] sm:$0xff] }
 0x346   :  { %v7827_v10 = vpack.c.bf16 %v1300_v44, %v1298_v56  ;;  %v1311_v56 = vld [vmem:[#allocation8 + $0xca8] sm:$0xff]  ;;  %v1313_v44 = vld [vmem:[#allocation8 + $0xcb8] sm:$0xff] }
 0x347   :  { %9999 = vst [vmem:[#allocation202_spill] sm:$0xff] %v7813_v23  ;;  %10000 = vst [vmem:[#allocation203_spill] sm:$0xff] %v7817_v59 }
 0x348   :  { %4839 = vmatpush1.bf16.msra.mxu0 %v7801_v16  ;;  %v1299_v16 = vld [vmem:[#allocation8 + $0xc48] sm:$0xff]  ;;  %10003 = vst [vmem:[#allocation206_spill] sm:$0xff] %v7827_v10 }
 0x349   :  { %4841 = vmatprep.subr.bf16.mxu0 %v7804_v47  ;;  %v1301_v47 = vld [vmem:[#allocation8 + $0xc58] sm:$0xff] }
 0x34a   :  { %v7824_v5 = vpack.c.bf16 %v1301_v47, %v1299_v16  ;;  %v7836_v47 = vpack.c.bf16 %v1309_v11, %v1307_v38 }
 0x34c   :  { %4843 = vmatpush1.bf16.msra.mxu0 %v7807_v51  ;;  %10002 = vst [vmem:[#allocation205_spill] sm:$0xff] %v7824_v5  ;;  %10006 = vst [vmem:[#allocation209_spill] sm:$0xff] %v7836_v47  ;;  %v1345_v51 = vld [vmem:[#allocation8 + $0xdb8] sm:$0xff] }
 0x34d   :  { %4845 = vmatprep.subr.bf16.mxu0 %v7810_v40  ;;  %v1304_v40 = vld [vmem:[#allocation8 + $0xc70] sm:$0xff] }
 0x34f   :  { %1281 = vmatmul.mubr.f32.vlgmr.msra.gmra.mrb[12].mxu0 %v1212_v52  ;;  %v7830_v52 = vpack.c.bf16 %v1305_v60, %v1303_v35  ;;  %v7842_v60 = vpack.c.bf16 %v1313_v44, %v1311_v56 }
 0x350   :  { %4847 = vmatpush1.bf16.msra.mxu0 %v7813_v23  ;;  %1418 = vmatprep.mubr.f32.mxu0 %v7438_v48  ;;  %v1302_v23 = vld [vmem:[#allocation8 + $0xc60] sm:$0xff] }
 0x351   :  { %4849 = vmatprep.subr.bf16.mxu0 %v7817_v59  ;;  %10004 = vst [vmem:[#allocation207_spill] sm:$0xff] %v7830_v52  ;;  %v7833_v16 = vpack.c.bf16 %v1304_v40, %v1302_v23  ;;  %v1306_v59 = vld [vmem:[#allocation8 + $0xc80] sm:$0xff]  ;;  %10008 = vst [vmem:[#allocation211_spill] sm:$0xff] %v7842_v60  ;;  %v1315_v40 = vld [vmem:[#allocation8 + $0xcc8] sm:$0xff] }
 0x352   :  { %v1317_v23 = vld [vmem:[#allocation8 + $0xcd8] sm:$0xff] }
 0x353   :  { %10005 = vst [vmem:[#allocation208_spill] sm:$0xff] %v7833_v16  ;;  %v7848_v11 = vpack.c.bf16 %v1317_v23, %v1315_v40 }
 0x354   :  { %4851 = vmatpush1.bf16.msra.mxu0 %v7821_v22  ;;  %v1308_v22 = vld [vmem:[#allocation8 + $0xc90] sm:$0xff] }
 0x355   :  { %4853 = vmatprep.subr.bf16.mxu0 %v7824_v5  ;;  %v7839_v35 = vpack.c.bf16 %v1308_v22, %v1306_v59  ;;  %v1310_v5 = vld [vmem:[#allocation8 + $0xca0] sm:$0xff]  ;;  %10010 = vst [vmem:[#allocation213_spill] sm:$0xff] %v7848_v11  ;;  %v1319_v59 = vld [vmem:[#allocation8 + $0xce8] sm:$0xff]  ;;  %v1321_v22 = vld [vmem:[#allocation8 + $0xcf8] sm:$0xff] }
 0x356   :  { %v7854_v44 = vpack.c.bf16 %v1321_v22, %v1319_v59 }
 0x357   :  { %10007 = vst [vmem:[#allocation210_spill] sm:$0xff] %v7839_v35 }
 0x358   :  { %4855 = vmatpush1.bf16.msra.mxu0 %v7827_v10  ;;  %v1312_v10 = vld [vmem:[#allocation8 + $0xcb0] sm:$0xff]  ;;  %10012 = vst [vmem:[#allocation215_spill] sm:$0xff] %v7854_v44 }
 0x359   :  { %4857 = vmatprep.subr.bf16.mxu0 %v7830_v52  ;;  %v7845_v38 = vpack.c.bf16 %v1312_v10, %v1310_v5  ;;  %v1314_v52 = vld [vmem:[#allocation8 + $0xcc0] sm:$0xff]  ;;  %v1323_v5 = vld [vmem:[#allocation8 + $0xd08] sm:$0xff]  ;;  %v1325_v10 = vld [vmem:[#allocation8 + $0xd18] sm:$0xff] }
 0x35a   :  { %v7860_v23 = vpack.c.bf16 %v1325_v10, %v1323_v5 }
 0x35b   :  { %10009 = vst [vmem:[#allocation212_spill] sm:$0xff] %v7845_v38 }
 0x35c   :  { %4859 = vmatpush1.bf16.msra.mxu0 %v7833_v16  ;;  %v1316_v16 = vld [vmem:[#allocation8 + $0xcd0] sm:$0xff]  ;;  %10014 = vst [vmem:[#allocation217_spill] sm:$0xff] %v7860_v23 }
 0x35d   :  { %4861 = vmatprep.subr.bf16.mxu0 %v7836_v47  ;;  %v7851_v56 = vpack.c.bf16 %v1316_v16, %v1314_v52  ;;  %v1318_v47 = vld [vmem:[#allocation8 + $0xce0] sm:$0xff]  ;;  %v1327_v52 = vld [vmem:[#allocation8 + $0xd28] sm:$0xff]  ;;  %v1329_v16 = vld [vmem:[#allocation8 + $0xd38] sm:$0xff] }
 0x35e   :  { %v7866_v22 = vpack.c.bf16 %v1329_v16, %v1327_v52 }
 0x35f   :  { %10011 = vst [vmem:[#allocation214_spill] sm:$0xff] %v7851_v56 }
 0x360   :  { %4863 = vmatpush1.bf16.msra.mxu0 %v7839_v35  ;;  %v1320_v35 = vld [vmem:[#allocation8 + $0xcf0] sm:$0xff]  ;;  %10016 = vst [vmem:[#allocation219_spill] sm:$0xff] %v7866_v22 }
 0x361   :  { %4865 = vmatprep.subr.bf16.mxu0 %v7842_v60  ;;  %v7857_v40 = vpack.c.bf16 %v1320_v35, %v1318_v47  ;;  %v1322_v60 = vld [vmem:[#allocation8 + $0xd00] sm:$0xff]  ;;  %v1331_v47 = vld [vmem:[#allocation8 + $0xd48] sm:$0xff]  ;;  %v1333_v35 = vld [vmem:[#allocation8 + $0xd58] sm:$0xff] }
 0x362   :  { %v7872_v10 = vpack.c.bf16 %v1333_v35, %v1331_v47  ;;  %v1336_v47 = vld [vmem:[#allocation8 + $0xd70] sm:$0xff]  ;;  %v6887_v35 = vld [vmem:[%s9248_s5 + $0x18] sm:$0xff] }
 0x363   :  { %10013 = vst [vmem:[#allocation216_spill] sm:$0xff] %v7857_v40 }
 0x364   :  { %4867 = vmatpush1.bf16.msra.mxu0 %v7845_v38  ;;  %v1324_v38 = vld [vmem:[#allocation8 + $0xd10] sm:$0xff]  ;;  %10018 = vst [vmem:[#allocation221_spill] sm:$0xff] %v7872_v10 }
 0x365   :  { %4869 = vmatprep.subr.bf16.mxu0 %v7848_v11  ;;  %v7863_v59 = vpack.c.bf16 %v1324_v38, %v1322_v60  ;;  %v1326_v11 = vld [vmem:[#allocation8 + $0xd20] sm:$0xff]  ;;  %v7874_v60 = vpop.f32.mrb[10].mxu1  ;;  %v1335_v38 = vld [vmem:[#allocation8 + $0xd68] sm:$0xff] }
 0x366   :  { %v7876_v52 = vpop.f32.mrb[11].mxu1 }
 0x367   :  { %10015 = vst [vmem:[#allocation218_spill] sm:$0xff] %v7863_v59  ;;  %6780 = vmatprep.subr.msk.mxu1 %vm230_vm1, %v7876_v52 }
 0x368   :  { %4871 = vmatpush1.bf16.msra.mxu0 %v7851_v56  ;;  %v1328_v56 = vld [vmem:[#allocation8 + $0xd30] sm:$0xff]  ;;  %6781 = vmatpush1.msk.msra.mxu1 %vm230_vm1, %v7874_v60 }
 0x369   :  { %4873 = vmatprep.subr.bf16.mxu0 %v7854_v44  ;;  %v7869_v5 = vpack.c.bf16 %v1328_v56, %v1326_v11  ;;  %v1330_v44 = vld [vmem:[#allocation8 + $0xd40] sm:$0xff]  ;;  %4421 = vmatmul.mubr.msk.f32.vlgmr.msra.gmra.mrb[12].mxu1 %vm214_vm2, %v6887_v35  ;;  %v1719_v35 = vld [vmem:[#allocation5 + $0x8] sm:$0xff] }
 0x36a   :  { %v1334_v56 = vld [vmem:[#allocation8 + $0xd60] sm:$0xff]  ;;  %1888 = vmatprep.mubr.f32.mxu1 %v9912_v4  ;;  %v1896_v41 = vcombine.high %v1719_v35, %v1719_v35 }
 0x36b   :  { %10017 = vst [vmem:[#allocation220_spill] sm:$0xff] %v7869_v5 }
 0x36c   :  { %4875 = vmatpush1.bf16.msra.mxu0 %v7857_v40  ;;  %v1332_v40 = vld [vmem:[#allocation8 + $0xd50] sm:$0xff]  ;;  %4423 = vmatprep.subr.msk.mxu1 %vm230_vm1, %v1896_v41 }
 0x36d   :  { %4877 = vmatprep.subr.bf16.mxu0 %v7860_v23  ;;  %v1337_v23 = vld [vmem:[#allocation8 + $0xd78] sm:$0xff]  ;;  %v7881_v16 = vpack.c.bf16 %v1332_v40, %v1330_v44  ;;  %v7894_v44 = vpack.c.bf16 %v1336_v47, %v1334_v56  ;;  %v1344_v47 = vld [vmem:[#allocation8 + $0xdb0] sm:$0xff]  ;;  %4424 = vmatpush1.msk.msra.mxu1 %vm230_vm1, %v1719_v35 }
 0x36e   :  { %v7886_v11 = vpack.c.bf16 %v1337_v23, %v1335_v38  ;;  %v1338_v23 = vld [vmem:[#allocation8 + $0xd80] sm:$0xff]  ;;  %v1340_v38 = vld [vmem:[#allocation8 + $0xd90] sm:$0xff]  ;;  %5053 = vmatprep.subr.bf16.mxu1 %v7175_v39 }
 0x36f   :  { %10019 = vst [vmem:[#allocation222_spill] sm:$0xff] %v7881_v16  ;;  %10021 = vst [vmem:[#allocation224_spill] sm:$0xff] %v7894_v44  ;;  %v7905_v56 = vpack.c.bf16 %v1340_v38, %v1338_v23  ;;  %v1348_v23 = vld [vmem:[#allocation8 + $0xdd0] sm:$0xff]  ;;  %v1351_v38 = vld [vmem:[#allocation8 + $0xde8] sm:$0xff] }
 0x370   :  { %4879 = vmatpush1.bf16.msra.mxu0 %v7863_v59  ;;  %10020 = vst [vmem:[#allocation223_spill] sm:$0xff] %v7886_v11  ;;  %v1341_v59 = vld [vmem:[#allocation8 + $0xd98] sm:$0xff]  ;;  %v6890_v35 = vld [vmem:[%s9247_s4 + $0x8] sm:$0xff]  ;;  %v1488_v39 = vld [vmem:[#allocation8 + $0xfe0] sm:$0xff] }
 0x371   :  { %4881 = vmatprep.subr.bf16.mxu0 %v7866_v22  ;;  %v1339_v22 = vld [vmem:[#allocation8 + $0xd88] sm:$0xff] }
 0x372   :  { %v7897_v40 = vpack.c.bf16 %v1341_v59, %v1339_v22  ;;  %v1342_v22 = vld [vmem:[#allocation8 + $0xda0] sm:$0xff] }
 0x373   :  { %v7920_v41 = vpack.c.bf16 %v1344_v47, %v1342_v22  ;;  %v1350_v47 = vld [vmem:[#allocation8 + $0xde0] sm:$0xff] }
 0x374   :  { %4883 = vmatpush1.bf16.msra.mxu0 %v7869_v5  ;;  %v1343_v5 = vld [vmem:[#allocation8 + $0xda8] sm:$0xff] }
 0x375   :  { %4885 = vmatprep.subr.bf16.mxu0 %v7872_v10  ;;  %v6888_v10 = vld [vmem:[%s9248_s5 + $0x20] sm:$0xf]  ;;  %v7909_v59 = vpack.c.bf16 %v1345_v51, %v1343_v5  ;;  %v1346_v5 = vld [vmem:[#allocation8 + $0xdc0] sm:$0xff] }
 0x376   :  { %4422 = vmatmul.mubr.msk.f32.gmra.mrb[14].mxu1 %vm214_vm2, %v6888_v10  ;;  %v1347_v10 = vld [vmem:[#allocation8 + $0xdc8] sm:$0xff]  ;;  %v7933_v22 = vpack.c.bf16 %v1348_v23, %v1346_v5 }
 0x377   :  { %1965 = vmatprep.mubr.f32.mxu1 %v9912_v4 }
 0x378   :  { %4887 = vmatpush1.bf16.msra.mxu0 %v7881_v16  ;;  %v6889_v16 = vld [vmem:[%s9247_s4] sm:$0xff] }
 0x379   :  { %4889 = vmatprep.subr.bf16.mxu0 %v7886_v11  ;;  %v1349_v11 = vld [vmem:[#allocation8 + $0xdd8] sm:$0xff] }
 0x37a   :  { %4425 = vmatmul.mubr.msk.f32.vlgmr.msra.gmra.mrb[16].mxu1 %vm214_vm2, %v6889_v16  ;;  %v7924_v51 = vpack.c.bf16 %v1349_v11, %v1347_v10  ;;  %v1353_v16 = vld [vmem:[#allocation8 + $0xdf8] sm:$0xff]  ;;  %v1352_v10 = vld [vmem:[#allocation8 + $0xdf0] sm:$0xff] }
 0x37b   :  { %1971 = vmatprep.mubr.f32.mxu1 %v9912_v4  ;;  %5055 = vmatpush1.bf16.msra.mxu1 %v7180_v42  ;;  %v7937_v11 = vpack.c.bf16 %v1353_v16, %v1351_v38  ;;  %v1431_v42 = vld [vmem:[#allocation8 + $0xe18] sm:$0xff]  ;;  %v7946_v5 = vpack.c.bf16 %v1352_v10, %v1350_v47  ;;  %v1428_v38 = vld [vmem:[#allocation8 + $0xe00] sm:$0xff]  ;;  %v1430_v16 = vld [vmem:[#allocation8 + $0xe10] sm:$0xff] }
 0x37c   :  { %4891 = vmatpush1.bf16.msra.mxu0 %v7894_v44  ;;  %5057 = vmatprep.subr.bf16.mxu1 %v7183_v43  ;;  %v1429_v43 = vld [vmem:[#allocation8 + $0xe08] sm:$0xff]  ;;  %v7959_v47 = vpack.c.bf16 %v1430_v16, %v1428_v38  ;;  %v1434_v10 = vld [vmem:[#allocation8 + $0xe30] sm:$0xff] }
 0x37d   :  { %4893 = vmatprep.subr.bf16.mxu0 %v7897_v40  ;;  %v7950_v23 = vpack.c.bf16 %v1431_v42, %v1429_v43  ;;  %v1432_v43 = vld [vmem:[#allocation8 + $0xe20] sm:$0xff]  ;;  %v1438_v38 = vld [vmem:[#allocation8 + $0xe50] sm:$0xff]  ;;  %v1441_v16 = vld [vmem:[#allocation8 + $0xe68] sm:$0xff] }
 0x37e   :  { %4426 = vmatmul.mubr.msk.f32.gmra.mrb[18].mxu1 %vm214_vm2, %v6890_v35  ;;  %v6891_v35 = vld [vmem:[%s9247_s4 + $0x10] sm:$0xff]  ;;  %10023 = vst [vmem:[#allocation226_spill] sm:$0xff] %v7959_v47 }
 0x37f   :  { %1977 = vmatprep.mubr.f32.mxu1 %v9912_v4  ;;  %5059 = vmatpush1.bf16.msra.mxu1 %v7193_v49  ;;  %10022 = vst [vmem:[#allocation225_spill] sm:$0xff] %v7950_v23  ;;  %v1435_v49 = vld [vmem:[#allocation8 + $0xe38] sm:$0xff] }
 0x380   :  { %4895 = vmatpush1.bf16.msra.mxu0 %v7905_v56  ;;  %5061 = vmatprep.subr.bf16.mxu1 %v7196_v50  ;;  %v1433_v50 = vld [vmem:[#allocation8 + $0xe28] sm:$0xff] }
 0x381   :  { %4897 = vmatprep.subr.bf16.mxu0 %v7909_v59  ;;  %v7963_v42 = vpack.c.bf16 %v1435_v49, %v1433_v50  ;;  %v7973_v49 = vpack.c.bf16 %v1434_v10, %v1432_v43  ;;  %v7026_v43 = vmov 0   ;;  %v1440_v10 = vld [vmem:[#allocation8 + $0xe60] sm:$0xff] }
 0x382   :  { %4427 = vmatmul.mubr.msk.f32.gmra.mrb[20].mxu1 %vm214_vm2, %v6891_v35  ;;  %v6892_v35 = vld [vmem:[%s9247_s4 + $0x18] sm:$0xff]  ;;  %6879 = vset.pattern.permute.xlu0 %v7026_v43 }
 0x383   :  { %1983 = vmatprep.mubr.f32.mxu1 %v9912_v4  ;;  %5063 = vmatpush1.bf16.msra.mxu1 %v7200_v55  ;;  %10024 = vst [vmem:[#allocation227_spill] sm:$0xff] %v7963_v42  ;;  %v1437_v55 = vld [vmem:[#allocation8 + $0xe48] sm:$0xff]  ;;  %10025 = vst [vmem:[#allocation228_spill] sm:$0xff] %v7973_v49 }
 0x384   :  { %4899 = vmatpush1.bf16.msra.mxu0 %v7920_v41  ;;  %5065 = vmatprep.subr.bf16.mxu1 %v7207_v57  ;;  %v1495_v57 = vrot.slane %v7438_v48, 4  ;;  %v1436_v48 = vld [vmem:[#allocation8 + $0xe40] sm:$0xff] }
 0x385   :  { %4901 = vmatprep.subr.bf16.mxu0 %v7924_v51  ;;  %6880 = vset.pattern.permute.xlu1 %v7026_v43 }
 0x386   :  { %4428 = vmatmul.mubr.msk.f32.gmra.mrb[12].mxu1 %vm214_vm2, %v6892_v35  ;;  %v1439_v35 = vld [vmem:[#allocation8 + $0xe58] sm:$0xff] }
 0x387   :  { %1989 = vmatprep.mubr.f32.mxu1 %v9912_v4  ;;  %5067 = vmatpush1.bf16.msra.mxu1 %v7211_v62  ;;  %v6893_v62 = vld [vmem:[%s9247_s4 + $0x20] sm:$0xf]  ;;  %v7976_v50 = vpack.c.bf16 %v1439_v35, %v1437_v55  ;;  %v1442_v35 = vld [vmem:[#allocation8 + $0xe70] sm:$0xff] }
 0x388   :  { %4903 = vmatpush1.bf16.msra.mxu0 %v7933_v22  ;;  %5069 = vmatprep.subr.bf16.mxu1 %v7218_v1  ;;  %v1443_v1 = vld [vmem:[#allocation8 + $0xe78] sm:$0xff] }
 0x389   :  { %4905 = vmatprep.subr.bf16.mxu0 %v7937_v11  ;;  %10026 = vst [vmem:[#allocation229_spill] sm:$0xff] %v7976_v50  ;;  %v7987_v55 = vpack.c.bf16 %v1443_v1, %v1441_v16  ;;  %v1446_v16 = vld [vmem:[#allocation8 + $0xe90] sm:$0xff] }
 0x38a   :  { %4429 = vmatmul.mubr.msk.f32.gmra.mrb[14].mxu1 %vm214_vm2, %v6893_v62  ;;  %v131_v62 = vld [vmem:[%s9249_s6] sm:$0xf] }
 0x38b   :  { %5071 = vmatpush1.bf16.msra.mxu1 %v7222_v6  ;;  %10028 = vst [vmem:[#allocation231_spill] sm:$0xff] %v7987_v55  ;;  %1711 = vperm.xlu0 %6879, %v131_v62   ;;  %v1447_v6 = vld [vmem:[#allocation8 + $0xe98] sm:$0xff]  ;;  %v1449_v62 = vld [vmem:[#allocation8 + $0xea8] sm:$0xff] }
 0x38c   :  { %4907 = vmatpush1.bf16.msra.mxu0 %v7946_v5  ;;  %5073 = vmatprep.subr.bf16.mxu1 %v7226_v7  ;;  %v1445_v7 = vld [vmem:[#allocation8 + $0xe88] sm:$0xff] }
 0x38d   :  { %4909 = vmatprep.subr.bf16.mxu0 %v7950_v23  ;;  %v7996_v1 = vpack.c.bf16 %v1447_v6, %v1445_v7  ;;  %v1453_v6 = vld [vmem:[#allocation8 + $0xec8] sm:$0xff]  ;;  %v1455_v7 = vld [vmem:[#allocation8 + $0xed8] sm:$0xff] }
 0x38f   :  { %1419 = vmatmul.mubr.f32.vlgmr.msra.gmra.mrb[12].mxu0 %v7436_v3  ;;  %5075 = vmatpush1.bf16.msra.mxu1 %v7229_v12  ;;  %10030 = vst [vmem:[#allocation233_spill] sm:$0xff] %v7996_v1  ;;  %v1451_v12 = vld [vmem:[#allocation8 + $0xeb8] sm:$0xff] }
 0x390   :  { %4911 = vmatpush1.bf16.msra.mxu0 %v7959_v47  ;;  %1562 = vmatprep.mubr.f32.mxu0 %v1495_v57  ;;  %v7984_v57 = vpack.c.bf16 %v1438_v38, %v1436_v48  ;;  %v7992_v48 = vpack.c.bf16 %v1442_v35, %v1440_v10  ;;  %v1444_v38 = vld [vmem:[#allocation8 + $0xe80] sm:$0xff]  ;;  %v8004_v10 = vpack.c.bf16 %v1451_v12, %v1449_v62  ;;  %v1457_v12 = vld [vmem:[#allocation8 + $0xee8] sm:$0xff]  ;;  %v1459_v62 = vld [vmem:[#allocation8 + $0xef8] sm:$0xff] }
 0x391   :  { %4913 = vmatprep.subr.bf16.mxu0 %v7963_v42  ;;  %5077 = vmatprep.subr.bf16.mxu1 %v7232_v13  ;;  %v8000_v43 = vpack.c.bf16 %v1446_v16, %v1444_v38  ;;  %v1448_v35 = vld [vmem:[#allocation8 + $0xea0] sm:$0xff]  ;;  %v8012_v38 = vpack.c.bf16 %v1455_v7, %v1453_v6  ;;  %v1461_v6 = vld [vmem:[#allocation8 + $0xf08] sm:$0xff]  ;;  %v1463_v7 = vld [vmem:[#allocation8 + $0xf18] sm:$0xff] }
 0x392   :  { %10027 = vst [vmem:[#allocation230_spill] sm:$0xff] %v7984_v57  ;;  %10029 = vst [vmem:[#allocation232_spill] sm:$0xff] %v7992_v48  ;;  %v1452_v16 = vld [vmem:[#allocation8 + $0xec0] sm:$0xff]  ;;  %v1489_v13 = vld [vmem:[#allocation8 + $0xfe8] sm:$0xff] }
 0x393   :  { %5079 = vmatpush1.bf16.msra.mxu1 %v7235_v18  ;;  %10031 = vst [vmem:[#allocation234_spill] sm:$0xff] %v8000_v43  ;;  %10032 = vst [vmem:[#allocation235_spill] sm:$0xff] %v8004_v10 }
 0x394   :  { %4915 = vmatpush1.bf16.msra.mxu0 %v7973_v49  ;;  %5081 = vmatprep.subr.bf16.mxu1 %v7238_v19  ;;  %v1450_v19 = vld [vmem:[#allocation8 + $0xeb0] sm:$0xff]  ;;  %10034 = vst [vmem:[#allocation237_spill] sm:$0xff] %v8012_v38 }
 0x395   :  { %4917 = vmatprep.subr.bf16.mxu0 %v7976_v50  ;;  %v8008_v18 = vpack.c.bf16 %v1450_v19, %v1448_v35  ;;  %v8020_v19 = vpack.c.bf16 %v1459_v62, %v1457_v12  ;;  %v1456_v35 = vld [vmem:[#allocation8 + $0xee0] sm:$0xff]  ;;  %v1465_v12 = vld [vmem:[#allocation8 + $0xf28] sm:$0xff]  ;;  %v1467_v62 = vld [vmem:[#allocation8 + $0xf38] sm:$0xff] }
 0x397   :  { %5083 = vmatpush1.bf16.msra.mxu1 %v7241_v24  ;;  %10033 = vst [vmem:[#allocation236_spill] sm:$0xff] %v8008_v18  ;;  %10036 = vst [vmem:[#allocation239_spill] sm:$0xff] %v8020_v19 }
 0x398   :  { %4919 = vmatpush1.bf16.msra.mxu0 %v7984_v57  ;;  %5085 = vmatprep.subr.bf16.mxu1 %v7244_v25  ;;  %v1454_v25 = vld [vmem:[#allocation8 + $0xed0] sm:$0xff] }
 0x399   :  { %4921 = vmatprep.subr.bf16.mxu0 %v7987_v55  ;;  %v8016_v24 = vpack.c.bf16 %v1454_v25, %v1452_v16  ;;  %v8028_v25 = vpack.c.bf16 %v1463_v7, %v1461_v6  ;;  %v1460_v16 = vld [vmem:[#allocation8 + $0xf00] sm:$0xff]  ;;  %v1469_v6 = vld [vmem:[#allocation8 + $0xf48] sm:$0xff]  ;;  %v1471_v7 = vld [vmem:[#allocation8 + $0xf58] sm:$0xff] }
 0x39b   :  { %5087 = vmatpush1.bf16.msra.mxu1 %v7247_v30  ;;  %10035 = vst [vmem:[#allocation238_spill] sm:$0xff] %v8016_v24  ;;  %10038 = vst [vmem:[#allocation241_spill] sm:$0xff] %v8028_v25 }
 0x39c   :  { %4923 = vmatpush1.bf16.msra.mxu0 %v7992_v48  ;;  %5089 = vmatprep.subr.bf16.mxu1 %v7250_v31  ;;  %v1458_v31 = vld [vmem:[#allocation8 + $0xef0] sm:$0xff] }
 0x39d   :  { %4925 = vmatprep.subr.bf16.mxu0 %v7996_v1  ;;  %v8024_v30 = vpack.c.bf16 %v1458_v31, %v1456_v35  ;;  %v8036_v31 = vpack.c.bf16 %v1467_v62, %v1465_v12  ;;  %v1464_v35 = vld [vmem:[#allocation8 + $0xf20] sm:$0xff]  ;;  %v1473_v12 = vld [vmem:[#allocation8 + $0xf68] sm:$0xff]  ;;  %v1475_v62 = vld [vmem:[#allocation8 + $0xf78] sm:$0xff] }
 0x39f   :  { %5091 = vmatpush1.bf16.msra.mxu1 %v7253_v36  ;;  %10037 = vst [vmem:[#allocation240_spill] sm:$0xff] %v8024_v30  ;;  %10040 = vst [vmem:[#allocation243_spill] sm:$0xff] %v8036_v31 }
 0x3a0   :  { %4927 = vmatpush1.bf16.msra.mxu0 %v8000_v43  ;;  %5093 = vmatprep.subr.bf16.mxu1 %v7256_v37  ;;  %v1462_v37 = vld [vmem:[#allocation8 + $0xf10] sm:$0xff] }
 0x3a1   :  { %4929 = vmatprep.subr.bf16.mxu0 %v8004_v10  ;;  %v8032_v36 = vpack.c.bf16 %v1462_v37, %v1460_v16  ;;  %v8044_v37 = vpack.c.bf16 %v1471_v7, %v1469_v6  ;;  %v1468_v16 = vld [vmem:[#allocation8 + $0xf40] sm:$0xff]  ;;  %v1477_v6 = vld [vmem:[#allocation8 + $0xf88] sm:$0xff]  ;;  %v1479_v7 = vld [vmem:[#allocation8 + $0xf98] sm:$0xff] }
 0x3a3   :  { %5095 = vmatpush1.bf16.msra.mxu1 %v7259_v45  ;;  %10039 = vst [vmem:[#allocation242_spill] sm:$0xff] %v8032_v36  ;;  %10042 = vst [vmem:[#allocation245_spill] sm:$0xff] %v8044_v37 }
 0x3a4   :  { %4931 = vmatpush1.bf16.msra.mxu0 %v8008_v18  ;;  %5097 = vmatprep.subr.bf16.mxu1 %v7262_v46  ;;  %v1466_v46 = vld [vmem:[#allocation8 + $0xf30] sm:$0xff] }
 0x3a5   :  { %4933 = vmatprep.subr.bf16.mxu0 %v8012_v38  ;;  %v8040_v45 = vpack.c.bf16 %v1466_v46, %v1464_v35  ;;  %v8052_v46 = vpack.c.bf16 %v1475_v62, %v1473_v12  ;;  %v1472_v35 = vld [vmem:[#allocation8 + $0xf60] sm:$0xff]  ;;  %v1481_v12 = vld [vmem:[#allocation8 + $0xfa8] sm:$0xff]  ;;  %v1483_v62 = vld [vmem:[#allocation8 + $0xfb8] sm:$0xff] }
 0x3a7   :  { %5099 = vmatpush1.bf16.msra.mxu1 %v7265_v53  ;;  %10041 = vst [vmem:[#allocation244_spill] sm:$0xff] %v8040_v45  ;;  %10044 = vst [vmem:[#allocation247_spill] sm:$0xff] %v8052_v46 }
 0x3a8   :  { %4935 = vmatpush1.bf16.msra.mxu0 %v8016_v24  ;;  %5101 = vmatprep.subr.bf16.mxu1 %v7268_v54  ;;  %v1470_v54 = vld [vmem:[#allocation8 + $0xf50] sm:$0xff] }
 0x3a9   :  { %4937 = vmatprep.subr.bf16.mxu0 %v8020_v19  ;;  %v8048_v53 = vpack.c.bf16 %v1470_v54, %v1468_v16  ;;  %v8060_v54 = vpack.c.bf16 %v1479_v7, %v1477_v6  ;;  %v1476_v16 = vld [vmem:[#allocation8 + $0xf80] sm:$0xff]  ;;  %v1485_v6 = vld [vmem:[#allocation8 + $0xfc8] sm:$0xff]  ;;  %v1487_v7 = vld [vmem:[#allocation8 + $0xfd8] sm:$0xff] }
 0x3ab   :  { %5103 = vmatpush1.bf16.msra.mxu1 %v7271_v61  ;;  %10043 = vst [vmem:[#allocation246_spill] sm:$0xff] %v8048_v53  ;;  %10046 = vst [vmem:[#allocation249_spill] sm:$0xff] %v8060_v54 }
 0x3ac   :  { %4939 = vmatpush1.bf16.msra.mxu0 %v8024_v30  ;;  %5105 = vmatprep.subr.bf16.mxu1 %v7274_v63  ;;  %v1474_v63 = vld [vmem:[#allocation8 + $0xf70] sm:$0xff] }
 0x3ad   :  { %4941 = vmatprep.subr.bf16.mxu0 %v8028_v25  ;;  %v8056_v61 = vpack.c.bf16 %v1474_v63, %v1472_v35  ;;  %v8068_v63 = vpack.c.bf16 %v1483_v62, %v1481_v12  ;;  %v1480_v35 = vld [vmem:[#allocation8 + $0xfa0] sm:$0xff] }
 0x3af   :  { %5107 = vmatpush1.bf16.msra.mxu1 %v7277_v8  ;;  %10045 = vst [vmem:[#allocation248_spill] sm:$0xff] %v8056_v61  ;;  %10048 = vst [vmem:[#allocation251_spill] sm:$0xff] %v8068_v63 }
 0x3b0   :  { %4943 = vmatpush1.bf16.msra.mxu0 %v8032_v36  ;;  %5109 = vmatprep.subr.bf16.mxu1 %v7280_v9  ;;  %v1478_v9 = vld [vmem:[#allocation8 + $0xf90] sm:$0xff] }
 0x3b1   :  { %4945 = vmatprep.subr.bf16.mxu0 %v8036_v31  ;;  %v8064_v8 = vpack.c.bf16 %v1478_v9, %v1476_v16  ;;  %v1484_v9 = vld [vmem:[#allocation8 + $0xfc0] sm:$0xff]  ;;  %v1486_v16 = vld [vmem:[#allocation8 + $0xfd0] sm:$0xff] }
 0x3b2   :  { %v8077_v12 = vpack.c.bf16 %v1486_v16, %v1484_v9  ;;  %v1577_v9 = vld [vmem:[#allocation8 + $0x1028] sm:$0xff]  ;;  %v1579_v16 = vld [vmem:[#allocation8 + $0x1038] sm:$0xff] }
 0x3b3   :  { %5111 = vmatpush1.bf16.msra.mxu1 %v7283_v14  ;;  %10047 = vst [vmem:[#allocation250_spill] sm:$0xff] %v8064_v8 }
 0x3b4   :  { %4947 = vmatpush1.bf16.msra.mxu0 %v8040_v45  ;;  %5113 = vmatprep.subr.bf16.mxu1 %v7287_v21  ;;  %v1482_v21 = vld [vmem:[#allocation8 + $0xfb0] sm:$0xff]  ;;  %10051 = vst [vmem:[#allocation254_spill] sm:$0xff] %v8077_v12 }
 0x3b5   :  { %4949 = vmatprep.subr.bf16.mxu0 %v8044_v37  ;;  %v8071_v14 = vpack.c.bf16 %v1482_v21, %v1480_v35  ;;  %v1573_v21 = vld [vmem:[#allocation8 + $0x1008] sm:$0xff]  ;;  %v1575_v35 = vld [vmem:[#allocation8 + $0x1018] sm:$0xff] }
 0x3b7   :  { %5115 = vmatpush1.bf16.msra.mxu1 %v7295_v28  ;;  %10049 = vst [vmem:[#allocation252_spill] sm:$0xff] %v8071_v14  ;;  %v8074_v28 = vpack.c.bf16 %v1487_v7, %v1485_v6  ;;  %v8086_v7 = vpack.c.bf16 %v1575_v35, %v1573_v21  ;;  %v1585_v35 = vld [vmem:[#allocation8 + $0x1068] sm:$0xff] }
 0x3b8   :  { %4951 = vmatpush1.bf16.msra.mxu0 %v8048_v53  ;;  %5117 = vmatprep.subr.bf16.mxu1 %v7302_v33  ;;  %v1491_v33 = vld [vmem:[#allocation8 + $0xff8] sm:$0xff] }
 0x3b9   :  { %4953 = vmatprep.subr.bf16.mxu0 %v8052_v46  ;;  %10050 = vst [vmem:[#allocation253_spill] sm:$0xff] %v8074_v28  ;;  %v8080_v62 = vpack.c.bf16 %v1491_v33, %v1489_v13  ;;  %10054 = vst [vmem:[#allocation257_spill] sm:$0xff] %v8086_v7  ;;  %v1494_v33 = vrot.slane %v7436_v3, 4  ;;  %v1580_v3 = vld [vmem:[#allocation8 + $0x1040] sm:$0xff] }
 0x3bb   :  { %10052 = vst [vmem:[#allocation255_spill] sm:$0xff] %v8080_v62 }
 0x3bc   :  { %4955 = vmatpush1.bf16.msra.mxu0 %v8056_v61 }
 0x3bd   :  { %4957 = vmatprep.subr.bf16.mxu0 %v8060_v54 }
 0x3c0   :  { %4959 = vmatpush1.bf16.msra.mxu0 %v8064_v8  ;;  %v1490_v8 = vld [vmem:[#allocation8 + $0xff0] sm:$0xff] }
 0x3c1   :  { %4961 = vmatprep.subr.bf16.mxu0 %v8068_v63  ;;  %v8083_v6 = vpack.c.bf16 %v1490_v8, %v1488_v39  ;;  %v1572_v63 = vld [vmem:[#allocation8 + $0x1000] sm:$0xff]  ;;  %v1578_v8 = vld [vmem:[#allocation8 + $0x1030] sm:$0xff] }
 0x3c2   :  { %v1576_v39 = vld [vmem:[#allocation8 + $0x1020] sm:$0xff] }
 0x3c3   :  { %10053 = vst [vmem:[#allocation256_spill] sm:$0xff] %v8083_v6  ;;  %v8097_v21 = vpack.c.bf16 %v1578_v8, %v1576_v39  ;;  %v1589_v39 = vld [vmem:[#allocation8 + $0x1088] sm:$0xff]  ;;  %v1591_v8 = vld [vmem:[#allocation8 + $0x1098] sm:$0xff] }
 0x3c4   :  { %4963 = vmatpush1.bf16.msra.mxu0 %v8071_v14  ;;  %v1574_v14 = vld [vmem:[#allocation8 + $0x1010] sm:$0xff] }
 0x3c5   :  { %4965 = vmatprep.subr.bf16.mxu0 %v8074_v28  ;;  %v8089_v13 = vpack.c.bf16 %v1574_v14, %v1572_v63  ;;  %v8093_v28 = vpack.c.bf16 %v1579_v16, %v1577_v9  ;;  %10057 = vst [vmem:[#allocation260_spill] sm:$0xff] %v8097_v21  ;;  %v1582_v63 = vld [vmem:[#allocation8 + $0x1050] sm:$0xff]  ;;  %v1587_v9 = vld [vmem:[#allocation8 + $0x1078] sm:$0xff] }
 0x3c6   :  { %v8103_v16 = vpack.c.bf16 %v1582_v63, %v1580_v3  ;;  %v1593_v3 = vld [vmem:[#allocation8 + $0x10a8] sm:$0xff]  ;;  %v1595_v63 = vld [vmem:[#allocation8 + $0x10b8] sm:$0xff] }
 0x3c7   :  { %10055 = vst [vmem:[#allocation258_spill] sm:$0xff] %v8089_v13  ;;  %10056 = vst [vmem:[#allocation259_spill] sm:$0xff] %v8093_v28 }
 0x3c8   :  { %4967 = vmatpush1.bf16.msra.mxu0 %v8077_v12  ;;  %v1581_v12 = vld [vmem:[#allocation8 + $0x1048] sm:$0xff]  ;;  %10059 = vst [vmem:[#allocation262_spill] sm:$0xff] %v8103_v16 }
 0x3c9   :  { %4969 = vmatprep.subr.bf16.mxu0 %v8080_v62  ;;  %v1583_v62 = vld [vmem:[#allocation8 + $0x1058] sm:$0xff] }
 0x3ca   :  { %v8100_v14 = vpack.c.bf16 %v1583_v62, %v1581_v12  ;;  %v8112_v62 = vpack.c.bf16 %v1591_v8, %v1589_v39 }
 0x3cc   :  { %4971 = vmatpush1.bf16.msra.mxu0 %v8083_v6  ;;  %10058 = vst [vmem:[#allocation261_spill] sm:$0xff] %v8100_v14  ;;  %10062 = vst [vmem:[#allocation265_spill] sm:$0xff] %v8112_v62 }
 0x3cd   :  { %4973 = vmatprep.subr.bf16.mxu0 %v8086_v7 }
 0x3cf   :  { %1563 = vmatmul.mubr.f32.vlgmr.msra.gmra.mrb[12].mxu0 %v1494_v33  ;;  %v8106_v33 = vpack.c.bf16 %v1587_v9, %v1585_v35  ;;  %v8118_v9 = vpack.c.bf16 %v1595_v63, %v1593_v3 }
 0x3d0   :  { %4975 = vmatpush1.bf16.msra.mxu0 %v8089_v13  ;;  %1700 = vmatprep.mubr.f32.mxu0 %v7448_v15  ;;  %v1584_v13 = vld [vmem:[#allocation8 + $0x1060] sm:$0xff]  ;;  %v1586_v15 = vld [vmem:[#allocation8 + $0x1070] sm:$0xff] }
 0x3d1   :  { %4977 = vmatprep.subr.bf16.mxu0 %v8093_v28  ;;  %10060 = vst [vmem:[#allocation263_spill] sm:$0xff] %v8106_v33  ;;  %v8109_v12 = vpack.c.bf16 %v1586_v15, %v1584_v13  ;;  %v1588_v28 = vld [vmem:[#allocation8 + $0x1080] sm:$0xff]  ;;  %10064 = vst [vmem:[#allocation267_spill] sm:$0xff] %v8118_v9  ;;  %v1597_v13 = vld [vmem:[#allocation8 + $0x10c8] sm:$0xff] }
 0x3d2   :  { %v1599_v15 = vld [vmem:[#allocation8 + $0x10d8] sm:$0xff] }
 0x3d3   :  { %10061 = vst [vmem:[#allocation264_spill] sm:$0xff] %v8109_v12  ;;  %v8124_v8 = vpack.c.bf16 %v1599_v15, %v1597_v13 }
 0x3d4   :  { %4979 = vmatpush1.bf16.msra.mxu0 %v8097_v21  ;;  %v1590_v21 = vld [vmem:[#allocation8 + $0x1090] sm:$0xff] }
 0x3d5   :  { %4981 = vmatprep.subr.bf16.mxu0 %v8100_v14  ;;  %v8115_v35 = vpack.c.bf16 %v1590_v21, %v1588_v28  ;;  %v1592_v14 = vld [vmem:[#allocation8 + $0x10a0] sm:$0xff]  ;;  %10066 = vst [vmem:[#allocation269_spill] sm:$0xff] %v8124_v8  ;;  %v1601_v28 = vld [vmem:[#allocation8 + $0x10e8] sm:$0xff]  ;;  %v1603_v21 = vld [vmem:[#allocation8 + $0x10f8] sm:$0xff] }
 0x3d6   :  { %v8130_v63 = vpack.c.bf16 %v1603_v21, %v1601_v28 }
 0x3d7   :  { %10063 = vst [vmem:[#allocation266_spill] sm:$0xff] %v8115_v35 }
 0x3d8   :  { %4983 = vmatpush1.bf16.msra.mxu0 %v8103_v16  ;;  %v1594_v16 = vld [vmem:[#allocation8 + $0x10b0] sm:$0xff]  ;;  %10068 = vst [vmem:[#allocation271_spill] sm:$0xff] %v8130_v63 }
 0x3d9   :  { %4985 = vmatprep.subr.bf16.mxu0 %v8106_v33  ;;  %v8121_v39 = vpack.c.bf16 %v1594_v16, %v1592_v14  ;;  %v1596_v33 = vld [vmem:[#allocation8 + $0x10c0] sm:$0xff]  ;;  %v1605_v14 = vld [vmem:[#allocation8 + $0x1108] sm:$0xff]  ;;  %v1607_v16 = vld [vmem:[#allocation8 + $0x1118] sm:$0xff] }
 0x3da   :  { %v8136_v15 = vpack.c.bf16 %v1607_v16, %v1605_v14 }
 0x3db   :  { %10065 = vst [vmem:[#allocation268_spill] sm:$0xff] %v8121_v39 }
 0x3dc   :  { %4987 = vmatpush1.bf16.msra.mxu0 %v8109_v12  ;;  %v1598_v12 = vld [vmem:[#allocation8 + $0x10d0] sm:$0xff]  ;;  %10070 = vst [vmem:[#allocation273_spill] sm:$0xff] %v8136_v15 }
 0x3dd   :  { %4989 = vmatprep.subr.bf16.mxu0 %v8112_v62  ;;  %v8127_v3 = vpack.c.bf16 %v1598_v12, %v1596_v33  ;;  %v1600_v62 = vld [vmem:[#allocation8 + $0x10e0] sm:$0xff]  ;;  %v1609_v33 = vld [vmem:[#allocation8 + $0x1128] sm:$0xff]  ;;  %v1611_v12 = vld [vmem:[#allocation8 + $0x1138] sm:$0xff] }
 0x3de   :  { %v8142_v21 = vpack.c.bf16 %v1611_v12, %v1609_v33 }
 0x3df   :  { %10067 = vst [vmem:[#allocation270_spill] sm:$0xff] %v8127_v3 }
 0x3e0   :  { %4991 = vmatpush1.bf16.msra.mxu0 %v8115_v35  ;;  %v1602_v35 = vld [vmem:[#allocation8 + $0x10f0] sm:$0xff]  ;;  %10072 = vst [vmem:[#allocation275_spill] sm:$0xff] %v8142_v21 }
 0x3e1   :  { %4993 = vmatprep.subr.bf16.mxu0 %v8118_v9  ;;  %v8133_v13 = vpack.c.bf16 %v1602_v35, %v1600_v62  ;;  %v1604_v9 = vld [vmem:[#allocation8 + $0x1100] sm:$0xff]  ;;  %v1613_v62 = vld [vmem:[#allocation8 + $0x1148] sm:$0xff]  ;;  %v1615_v35 = vld [vmem:[#allocation8 + $0x1158] sm:$0xff] }
 0x3e2   :  { %v8148_v16 = vpack.c.bf16 %v1615_v35, %v1613_v62 }
 0x3e3   :  { %10069 = vst [vmem:[#allocation272_spill] sm:$0xff] %v8133_v13 }
 0x3e4   :  { %4995 = vmatpush1.bf16.msra.mxu0 %v8121_v39  ;;  %v1606_v39 = vld [vmem:[#allocation8 + $0x1110] sm:$0xff]  ;;  %10074 = vst [vmem:[#allocation277_spill] sm:$0xff] %v8148_v16 }
 0x3e5   :  { %4997 = vmatprep.subr.bf16.mxu0 %v8124_v8  ;;  %v8139_v28 = vpack.c.bf16 %v1606_v39, %v1604_v9  ;;  %v1608_v8 = vld [vmem:[#allocation8 + $0x1120] sm:$0xff]  ;;  %v1617_v9 = vld [vmem:[#allocation8 + $0x1168] sm:$0xff]  ;;  %v1619_v39 = vld [vmem:[#allocation8 + $0x1178] sm:$0xff] }
 0x3e6   :  { %v8154_v12 = vpack.c.bf16 %v1619_v39, %v1617_v9 }
 0x3e7   :  { %10071 = vst [vmem:[#allocation274_spill] sm:$0xff] %v8139_v28 }
 0x3e8   :  { %4999 = vmatpush1.bf16.msra.mxu0 %v8127_v3  ;;  %v1610_v3 = vld [vmem:[#allocation8 + $0x1130] sm:$0xff]  ;;  %10076 = vst [vmem:[#allocation279_spill] sm:$0xff] %v8154_v12 }
 0x3e9   :  { %5001 = vmatprep.subr.bf16.mxu0 %v8130_v63  ;;  %v8145_v14 = vpack.c.bf16 %v1610_v3, %v1608_v8  ;;  %v1612_v63 = vld [vmem:[#allocation8 + $0x1140] sm:$0xff]  ;;  %v1621_v8 = vld [vmem:[#allocation8 + $0x1188] sm:$0xff]  ;;  %v1623_v3 = vld [vmem:[#allocation8 + $0x1198] sm:$0xff] }
 0x3ea   :  { %v8160_v35 = vpack.c.bf16 %v1623_v3, %v1621_v8 }
 0x3eb   :  { %10073 = vst [vmem:[#allocation276_spill] sm:$0xff] %v8145_v14 }
 0x3ec   :  { %5003 = vmatpush1.bf16.msra.mxu0 %v8133_v13  ;;  %v1614_v13 = vld [vmem:[#allocation8 + $0x1150] sm:$0xff]  ;;  %10078 = vst [vmem:[#allocation281_spill] sm:$0xff] %v8160_v35 }
 0x3ed   :  { %5005 = vmatprep.subr.bf16.mxu0 %v8136_v15  ;;  %v8151_v33 = vpack.c.bf16 %v1614_v13, %v1612_v63  ;;  %v1616_v15 = vld [vmem:[#allocation8 + $0x1160] sm:$0xff]  ;;  %v1625_v63 = vld [vmem:[#allocation8 + $0x11a8] sm:$0xff]  ;;  %v1627_v13 = vld [vmem:[#allocation8 + $0x11b8] sm:$0xff] }
 0x3ee   :  { %v8166_v39 = vpack.c.bf16 %v1627_v13, %v1625_v63 }
 0x3ef   :  { %10075 = vst [vmem:[#allocation278_spill] sm:$0xff] %v8151_v33 }
 0x3f0   :  { %5007 = vmatpush1.bf16.msra.mxu0 %v8139_v28  ;;  %v1618_v28 = vld [vmem:[#allocation8 + $0x1170] sm:$0xff]  ;;  %10080 = vst [vmem:[#allocation283_spill] sm:$0xff] %v8166_v39 }
 0x3f1   :  { %5009 = vmatprep.subr.bf16.mxu0 %v8142_v21  ;;  %v8157_v62 = vpack.c.bf16 %v1618_v28, %v1616_v15  ;;  %v1620_v21 = vld [vmem:[#allocation8 + $0x1180] sm:$0xff]  ;;  %v1629_v15 = vld [vmem:[#allocation8 + $0x11c8] sm:$0xff]  ;;  %v1631_v28 = vld [vmem:[#allocation8 + $0x11d8] sm:$0xff] }
 0x3f2   :  { %v8172_v3 = vpack.c.bf16 %v1631_v28, %v1629_v15 }
 0x3f3   :  { %10077 = vst [vmem:[#allocation280_spill] sm:$0xff] %v8157_v62 }
 0x3f4   :  { %5011 = vmatpush1.bf16.msra.mxu0 %v8145_v14  ;;  %v1622_v14 = vld [vmem:[#allocation8 + $0x1190] sm:$0xff]  ;;  %10082 = vst [vmem:[#allocation285_spill] sm:$0xff] %v8172_v3 }
 0x3f5   :  { %5013 = vmatprep.subr.bf16.mxu0 %v8148_v16  ;;  %v8163_v9 = vpack.c.bf16 %v1622_v14, %v1620_v21  ;;  %v1624_v16 = vld [vmem:[#allocation8 + $0x11a0] sm:$0xff]  ;;  %v1633_v21 = vld [vmem:[#allocation8 + $0x11e8] sm:$0xff]  ;;  %v1635_v14 = vld [vmem:[#allocation8 + $0x11f8] sm:$0xff] }
 0x3f6   :  { %v8178_v13 = vpack.c.bf16 %v1635_v14, %v1633_v21 }
 0x3f7   :  { %10079 = vst [vmem:[#allocation282_spill] sm:$0xff] %v8163_v9 }
 0x3f8   :  { %5015 = vmatpush1.bf16.msra.mxu0 %v8151_v33  ;;  %v1626_v33 = vld [vmem:[#allocation8 + $0x11b0] sm:$0xff]  ;;  %10084 = vst [vmem:[#allocation287_spill] sm:$0xff] %v8178_v13 }
 0x3f9   :  { %5017 = vmatprep.subr.bf16.mxu0 %v8154_v12  ;;  %v8169_v8 = vpack.c.bf16 %v1626_v33, %v1624_v16  ;;  %v1628_v12 = vld [vmem:[#allocation8 + $0x11c0] sm:$0xff]  ;;  %v6894_v33 = vld [vmem:[%s9248_s5] sm:$0xff] }
 0x3fb   :  { %10081 = vst [vmem:[#allocation284_spill] sm:$0xff] %v8169_v8 }
 0x3fc   :  { %5019 = vmatpush1.bf16.msra.mxu0 %v8157_v62  ;;  %v1630_v62 = vld [vmem:[#allocation8 + $0x11d0] sm:$0xff] }
 0x3fd   :  { %5021 = vmatprep.subr.bf16.mxu0 %v8160_v35  ;;  %v8175_v63 = vpack.c.bf16 %v1630_v62, %v1628_v12  ;;  %v1632_v35 = vld [vmem:[#allocation8 + $0x11e0] sm:$0xff]  ;;  %v6895_v12 = vld [vmem:[%s9248_s5 + $0x8] sm:$0xff] }
 0x3ff   :  { %10083 = vst [vmem:[#allocation286_spill] sm:$0xff] %v8175_v63 }
 0x400   :  { %5023 = vmatpush1.bf16.msra.mxu0 %v8163_v9  ;;  %v1634_v9 = vld [vmem:[#allocation8 + $0x11f0] sm:$0xff] }
 0x401   :  { %5025 = vmatprep.subr.bf16.mxu0 %v8166_v39  ;;  %v8181_v16 = vpack.c.bf16 %v1634_v9, %v1632_v35 }
 0x403   :  { %10085 = vst [vmem:[#allocation288_spill] sm:$0xff] %v8181_v16 }
 0x404   :  { %5027 = vmatpush1.bf16.msra.mxu0 %v8169_v8 }
 0x405   :  { %5029 = vmatprep.subr.bf16.mxu0 %v8172_v3 }
 0x408   :  { %5031 = vmatpush1.bf16.msra.mxu0 %v8175_v63 }
 0x409   :  { %5033 = vmatprep.subr.bf16.mxu0 %v8178_v13 }
 0x40c   :  { %5035 = vmatpush1.bf16.msra.mxu0 %v8181_v16 }
 0x40d   :  { %4416 = vmatprep.subr.msk.mxu0 %vm230_vm1, %v7876_v52 }
 0x40f   :  { %1701 = vmatmul.mubr.f32.vlgmr.msra.gmra.mrb[12].mxu0 %v7446_v26  ;;  %v6896_v26 = vld [vmem:[%s9248_s5 + $0x10] sm:$0xff] }
 0x410   :  { %4417 = vmatpush1.msk.msra.mxu0 %vm230_vm1, %v7874_v60  ;;  %1864 = vmatprep.mubr.f32.mxu0 %v9912_v4 }
 0x413   :  { %4418 = vmatmul.mubr.msk.f32.vlgmr.msra.gmra.mrb[14].mxu0 %vm214_vm2, %v6894_v33 }
 0x414   :  { %1870 = vmatprep.mubr.f32.mxu0 %v9912_v4 }
 0x417   :  { %4419 = vmatmul.mubr.msk.f32.gmra.mrb[16].mxu0 %vm214_vm2, %v6895_v12  ;;  %v8218_v12 = vpop.permute.xlu0 %1711 }
 0x418   :  { %1876 = vmatprep.mubr.f32.mxu0 %v9912_v4  ;;  %10088 = vst [vmem:[#allocation291_spill] sm:$0xff] %v8218_v12 }
 0x41b   :  { %4420 = vmatmul.mubr.msk.f32.gmra.mrb[18].mxu0 %vm214_vm2, %v6896_v26 }
 0x41c   :  { %2818 = vmatprep.mubr.f32.mxu0 %v9912_v4 }
 0x44d   :  { %v1967_v60 = vpop.f32.mrb[16].mxu1 }
 0x44e   :  { %v1969_v52 = vpop.f32.mrb[17].mxu1 }
 0x451   :  { %v1973_v62 = vpop.f32.mrb[18].mxu1 }
 0x452   :  { %v1975_v35 = vpop.f32.mrb[19].mxu1 }
 0x455   :  { %v8206_v9 = vpop.f32.mrb[20].mxu1 }
 0x456   :  { %v8208_v15 = vpop.f32.mrb[21].mxu1 }
 0x459   :  { %v8210_v28 = vpop.f32.mrb[12].mxu1 }
 0x45a   :  { %v8212_v21 = vpop.f32.mrb[13].mxu1 }
 0x45d   :  { %v8214_v14 = vpop.f32.mrb[14].mxu1 }
 0x45e   :  { %10086 = vst [vmem:[#allocation289_spill] sm:$0xff] %v8214_v14  ;;  %v8216_v33 = vpop.f32.mrb[15].mxu1 }
 0x45f   :  { %10087 = vst [vmem:[#allocation290_spill] sm:$0xff] %v8216_v33 }
 0x4e2   :  { %v1702_v26 = vpop.f32.mrb[12].mxu0 }
 0x4e3   :  { %v8221_v4 = vadd.f32 %v8218_v12, %v1702_v26  ;;  %v1704_v16 = vpop.f32.mrb[13].mxu0 }
 0x4e4   :  { %v8224_v13 = vadd.f32 %v8218_v12, %v1704_v16 }
 0x4e5   :  { %10089 = vst [vmem:[#allocation292_spill] sm:$0xff] %v8221_v4  ;;  %v2675_v63 = vsel %vm230_vm1, %v8221_v4, 0.0  ;;  %v2680_v3 = vmul.f32 %v8221_v4, %v8221_v4 }
 0x4e6   :  { %v1866_v8 = vpop.f32.mrb[14].mxu0  ;;  %v2676_v14 = vsel %vm230_vm1, %v8224_v13, 0.0  ;;  %v2681_v39 = vmul.f32 %v8224_v13, %v8224_v13 }
 0x4e7   :  { %v1968_v33 = vadd.f32 %v1967_v60, %v1866_v8  ;;  %v1868_v26 = vpop.f32.mrb[15].mxu0  ;;  %v2677_v7 = vadd.f32 %v2676_v14, %v2675_v63  ;;  %v2682_v6 = vsel %vm230_vm1, %v2680_v3, 0.0  ;;  %v10098_v8 = vld [vmem:[#allocation56_spill] sm:$0xff]  ;;  %v10099_v3 = vld [vmem:[#allocation57_spill] sm:$0xff]  ;;  %v10100_v63 = vld [vmem:[#allocation58_spill] sm:$0xff] }
 0x4e8   :  { %v1970_v16 = vadd.f32 %v1969_v52, %v1868_v26  ;;  %v2683_v12 = vsel %vm230_vm1, %v2681_v39, 0.0  ;;  %v10097_v39 = vld [vmem:[#allocation55_spill] sm:$0xff]  ;;  %v10102_v52 = vld [vmem:[#allocation60_spill] sm:$0xff]  ;;  %v10107_v26 = vld [vmem:[#allocation65_spill] sm:$0xff] }
 0x4e9   :  { %2678 = vadd.xlane.f32.xlu0 %v2677_v7  ;;  %v2684_v54 = vadd.f32 %v2683_v12, %v2682_v6  ;;  %v1998_v4 = vrot.slane %v1968_v33, 4  ;;  %v10095_v6 = vld [vmem:[#allocation53_spill] sm:$0xff]  ;;  %v10096_v7 = vld [vmem:[#allocation54_spill] sm:$0xff]  ;;  %v10101_v60 = vld [vmem:[#allocation59_spill] sm:$0xff] }
 0x4ea   :  { %v1999_v61 = vrot.slane %v1970_v16, 4  ;;  %v1872_v46 = vpop.f32.mrb[16].mxu0  ;;  %v10105_v14 = vld [vmem:[#allocation63_spill] sm:$0xff]  ;;  %v10106_v12 = vld [vmem:[#allocation64_spill] sm:$0xff] }
 0x4eb   :  { %2685 = vadd.xlane.f32.xlu1 %v2684_v54  ;;  %v8236_v53 = vadd.f32 %v1973_v62, %v1872_v46  ;;  %v1874_v37 = vpop.f32.mrb[17].mxu0  ;;  %v10090_v46 = vld [vmem:[#allocation48_spill] sm:$0xff]  ;;  %v10091_v54 = vld [vmem:[#allocation49_spill] sm:$0xff] }
 0x4ec   :  { %2066 = vmatprep.mubr.f32.mxu1 %v1999_v61  ;;  %v8238_v45 = vadd.f32 %v1975_v35, %v1874_v37  ;;  %v10092_v61 = vld [vmem:[#allocation50_spill] sm:$0xff]  ;;  %v10094_v37 = vld [vmem:[#allocation52_spill] sm:$0xff]  ;;  %v10103_v62 = vld [vmem:[#allocation61_spill] sm:$0xff] }
 0x4ed   :  { %2067 = vmatmul.mubr.f32.vlgmr.msra.gmra.mrb[22].mxu1 %v1998_v4  ;;  %v10093_v4 = vld [vmem:[#allocation51_spill] sm:$0xff]  ;;  %v10104_v35 = vld [vmem:[#allocation62_spill] sm:$0xff] }
 0x4ee   :  { %5119 = vmatpush1.bf16.msra.mxu1 %v7307_v58  ;;  %2137 = vmatprep.mubr.f32.mxu1 %v1970_v16  ;;  %v10108_v16 = vld [vmem:[#allocation66_spill] sm:$0xff] }
 0x4ef   :  { %5121 = vmatprep.subr.bf16.mxu1 %v7310_v2 }
 0x4f2   :  { %5123 = vmatpush1.bf16.msra.mxu1 %v7317_v17 }
 0x4f3   :  { %5125 = vmatprep.subr.bf16.mxu1 %v7320_v20 }
 0x4f6   :  { %5127 = vmatpush1.bf16.msra.mxu1 %v7323_v29 }
 0x4f7   :  { %5129 = vmatprep.subr.bf16.mxu1 %v7326_v32 }
 0x4fa   :  { %5131 = vmatpush1.bf16.msra.mxu1 %v10090_v46 }
 0x4fb   :  { %5133 = vmatprep.subr.bf16.mxu1 %v10091_v54 }
 0x4fe   :  { %5135 = vmatpush1.bf16.msra.mxu1 %v10092_v61 }
 0x4ff   :  { %5137 = vmatprep.subr.bf16.mxu1 %v10093_v4 }
 0x502   :  { %5139 = vmatpush1.bf16.msra.mxu1 %v10094_v37 }
 0x503   :  { %5141 = vmatprep.subr.bf16.mxu1 %v10095_v6 }
 0x506   :  { %5143 = vmatpush1.bf16.msra.mxu1 %v10096_v7 }
 0x507   :  { %5145 = vmatprep.subr.bf16.mxu1 %v10097_v39 }
 0x50a   :  { %5147 = vmatpush1.bf16.msra.mxu1 %v10098_v8  ;;  %v10109_v8 = vld [vmem:[#allocation67_spill] sm:$0xff] }
 0x50b   :  { %5149 = vmatprep.subr.bf16.mxu1 %v10099_v3  ;;  %v10110_v3 = vld [vmem:[#allocation68_spill] sm:$0xff] }
 0x50e   :  { %5151 = vmatpush1.bf16.msra.mxu1 %v10100_v63  ;;  %v10111_v63 = vld [vmem:[#allocation69_spill] sm:$0xff] }
 0x50f   :  { %5153 = vmatprep.subr.bf16.mxu1 %v10101_v60  ;;  %v10112_v60 = vld [vmem:[#allocation70_spill] sm:$0xff] }
 0x512   :  { %5155 = vmatpush1.bf16.msra.mxu1 %v10102_v52  ;;  %v10113_v52 = vld [vmem:[#allocation71_spill] sm:$0xff] }
 0x513   :  { %5157 = vmatprep.subr.bf16.mxu1 %v10103_v62  ;;  %v10114_v62 = vld [vmem:[#allocation72_spill] sm:$0xff] }
 0x516   :  { %5159 = vmatpush1.bf16.msra.mxu1 %v10104_v35  ;;  %v10115_v35 = vld [vmem:[#allocation73_spill] sm:$0xff] }
 0x517   :  { %5161 = vmatprep.subr.bf16.mxu1 %v10105_v14 }
 0x51a   :  { %5163 = vmatpush1.bf16.msra.mxu1 %v10106_v12  ;;  %v10116_v12 = vld [vmem:[#allocation74_spill] sm:$0xff] }
 0x51b   :  { %5165 = vmatprep.subr.bf16.mxu1 %v10107_v26  ;;  %v10119_v26 = vld [vmem:[#allocation77_spill] sm:$0xff] }
 0x51e   :  { %5167 = vmatpush1.bf16.msra.mxu1 %v10108_v16  ;;  %v10117_v16 = vld [vmem:[#allocation75_spill] sm:$0xff] }
 0x51f   :  { %5169 = vmatprep.subr.bf16.mxu1 %v10109_v8  ;;  %v10118_v8 = vld [vmem:[#allocation76_spill] sm:$0xff] }
 0x522   :  { %5171 = vmatpush1.bf16.msra.mxu1 %v10110_v3  ;;  %v1878_v3 = vpop.f32.mrb[18].mxu0 }
 0x523   :  { %5173 = vmatprep.subr.bf16.mxu1 %v10111_v63 }
 0x526   :  { %5175 = vmatpush1.bf16.msra.mxu1 %v10112_v60  ;;  %v8278_v60 = vadd.f32 %v8206_v9, %v1878_v3  ;;  %v10125_v9 = vld [vmem:[#allocation85_spill] sm:$0xff]  ;;  %v10126_v3 = vld [vmem:[#allocation86_spill] sm:$0xff] }
 0x527   :  { %5177 = vmatprep.subr.bf16.mxu1 %v10113_v52  ;;  %v1880_v52 = vpop.f32.mrb[19].mxu0 }
 0x52a   :  { %5179 = vmatpush1.bf16.msra.mxu1 %v10114_v62  ;;  %v8281_v62 = vadd.f32 %v8208_v15, %v1880_v52  ;;  %v10127_v15 = vld [vmem:[#allocation87_spill] sm:$0xff]  ;;  %v10128_v52 = vld [vmem:[#allocation88_spill] sm:$0xff] }
 0x52b   :  { %5181 = vmatprep.subr.bf16.mxu1 %v10115_v35  ;;  %v10120_v35 = vld [vmem:[#allocation78_spill] sm:$0xff] }
 0x52d   :  { %2138 = vmatmul.mubr.f32.vlgmr.msra.gmra.mrb[22].mxu1 %v1968_v33  ;;  %v10121_v33 = vld [vmem:[#allocation79_spill] sm:$0xff] }
 0x52e   :  { %5183 = vmatpush1.bf16.msra.mxu1 %v10116_v12  ;;  %2208 = vmatprep.mubr.f32.mxu1 %v8238_v45  ;;  %v10122_v12 = vld [vmem:[#allocation81_spill] sm:$0xff] }
 0x52f   :  { %5185 = vmatprep.subr.bf16.mxu1 %v10117_v16 }
 0x532   :  { %5187 = vmatpush1.bf16.msra.mxu1 %v10118_v8  ;;  %v10123_v8 = vld [vmem:[#allocation83_spill] sm:$0xff] }
 0x533   :  { %5189 = vmatprep.subr.bf16.mxu1 %v10119_v26  ;;  %v10124_v26 = vld [vmem:[#allocation84_spill] sm:$0xff] }
 0x536   :  { %5191 = vmatpush1.bf16.msra.mxu1 %v10120_v35  ;;  %v10129_v35 = vld [vmem:[#allocation89_spill] sm:$0xff] }
 0x537   :  { %5193 = vmatprep.subr.bf16.mxu1 %v10121_v33  ;;  %v10130_v33 = vld [vmem:[#allocation90_spill] sm:$0xff] }
 0x53a   :  { %5195 = vmatpush1.bf16.msra.mxu1 %v7431_v0  ;;  %v10131_v0 = vld [vmem:[#allocation91_spill] sm:$0xff] }
 0x53b   :  { %5197 = vmatprep.subr.bf16.mxu1 %v10122_v12  ;;  %v10132_v12 = vld [vmem:[#allocation92_spill] sm:$0xff] }
 0x53e   :  { %5199 = vmatpush1.bf16.msra.mxu1 %v7441_v27  ;;  %v10133_v27 = vld [vmem:[#allocation93_spill] sm:$0xff] }
 0x53f   :  { %5201 = vmatprep.subr.bf16.mxu1 %v10123_v8  ;;  %v10134_v8 = vld [vmem:[#allocation94_spill] sm:$0xff] }
 0x542   :  { %5203 = vmatpush1.bf16.msra.mxu1 %v10124_v26  ;;  %v10135_v26 = vld [vmem:[#allocation95_spill] sm:$0xff] }
 0x543   :  { %5205 = vmatprep.subr.bf16.mxu1 %v10125_v9  ;;  %v10136_v9 = vld [vmem:[#allocation96_spill] sm:$0xff] }
 0x546   :  { %5207 = vmatpush1.bf16.msra.mxu1 %v10126_v3  ;;  %v10137_v3 = vld [vmem:[#allocation97_spill] sm:$0xff] }
 0x547   :  { %5209 = vmatprep.subr.bf16.mxu1 %v10127_v15  ;;  %v10138_v15 = vld [vmem:[#allocation98_spill] sm:$0xff] }
 0x54a   :  { %5211 = vmatpush1.bf16.msra.mxu1 %v10128_v52  ;;  %v10139_v52 = vld [vmem:[#allocation99_spill] sm:$0xff] }
 0x54b   :  { %5213 = vmatprep.subr.bf16.mxu1 %v10129_v35  ;;  %v10140_v35 = vld [vmem:[#allocation100_spill] sm:$0xff] }
 0x54e   :  { %5215 = vmatpush1.bf16.msra.mxu1 %v10130_v33  ;;  %v10141_v33 = vld [vmem:[#allocation101_spill] sm:$0xff] }
 0x54f   :  { %5217 = vmatprep.subr.bf16.mxu1 %v10131_v0  ;;  %v10142_v0 = vld [vmem:[#allocation102_spill] sm:$0xff] }
 0x552   :  { %5219 = vmatpush1.bf16.msra.mxu1 %v10132_v12  ;;  %v10143_v12 = vld [vmem:[#allocation103_spill] sm:$0xff] }
 0x553   :  { %5221 = vmatprep.subr.bf16.mxu1 %v10133_v27  ;;  %v10144_v27 = vld [vmem:[#allocation104_spill] sm:$0xff] }
 0x556   :  { %5223 = vmatpush1.bf16.msra.mxu1 %v10134_v8  ;;  %v2220_v8 = vrot.slane %v8238_v45, 4  ;;  %v10152_v45 = vld [vmem:[#allocation112_spill] sm:$0xff] }
 0x557   :  { %5225 = vmatprep.subr.bf16.mxu1 %v10135_v26  ;;  %v10145_v26 = vld [vmem:[#allocation105_spill] sm:$0xff] }
 0x55a   :  { %5227 = vmatpush1.bf16.msra.mxu1 %v10136_v9 }
 0x55b   :  { %5229 = vmatprep.subr.bf16.mxu1 %v10137_v3  ;;  %v10146_v3 = vld [vmem:[#allocation106_spill] sm:$0xff] }
 0x55e   :  { %5231 = vmatpush1.bf16.msra.mxu1 %v10138_v15  ;;  %v10155_v15 = vld [vmem:[#allocation115_spill] sm:$0xff] }
 0x55f   :  { %5233 = vmatprep.subr.bf16.mxu1 %v10139_v52  ;;  %v10147_v52 = vld [vmem:[#allocation107_spill] sm:$0xff] }
 0x562   :  { %5235 = vmatpush1.bf16.msra.mxu1 %v10140_v35  ;;  %v10148_v35 = vld [vmem:[#allocation108_spill] sm:$0xff] }
 0x563   :  { %5237 = vmatprep.subr.bf16.mxu1 %v10141_v33  ;;  %v10149_v33 = vld [vmem:[#allocation109_spill] sm:$0xff] }
 0x566   :  { %5239 = vmatpush1.bf16.msra.mxu1 %v10142_v0  ;;  %v10150_v0 = vld [vmem:[#allocation110_spill] sm:$0xff] }
 0x567   :  { %5241 = vmatprep.subr.bf16.mxu1 %v10143_v12  ;;  %v10151_v12 = vld [vmem:[#allocation111_spill] sm:$0xff] }
 0x56a   :  { %5243 = vmatpush1.bf16.msra.mxu1 %v10144_v27  ;;  %v10153_v27 = vld [vmem:[#allocation113_spill] sm:$0xff] }
 0x56b   :  { %5245 = vmatprep.subr.bf16.mxu1 %v10145_v26  ;;  %v10154_v26 = vld [vmem:[#allocation114_spill] sm:$0xff] }
 0x56d   :  { %2209 = vmatmul.mubr.f32.vlgmr.msra.gmra.mrb[22].mxu1 %v8236_v53 }
 0x56e   :  { %5247 = vmatpush1.bf16.msra.mxu1 %v10146_v3  ;;  %2287 = vmatprep.mubr.f32.mxu1 %v2220_v8  ;;  %v10156_v3 = vld [vmem:[#allocation116_spill] sm:$0xff]  ;;  %v10157_v8 = vld [vmem:[#allocation117_spill] sm:$0xff] }
 0x56f   :  { %5249 = vmatprep.subr.bf16.mxu1 %v10147_v52  ;;  %v10158_v52 = vld [vmem:[#allocation118_spill] sm:$0xff] }
 0x572   :  { %5251 = vmatpush1.bf16.msra.mxu1 %v10148_v35  ;;  %v10159_v35 = vld [vmem:[#allocation119_spill] sm:$0xff] }
 0x573   :  { %5253 = vmatprep.subr.bf16.mxu1 %v10149_v33  ;;  %v10160_v33 = vld [vmem:[#allocation120_spill] sm:$0xff] }
 0x576   :  { %5255 = vmatpush1.bf16.msra.mxu1 %v10150_v0  ;;  %v10161_v0 = vld [vmem:[#allocation121_spill] sm:$0xff] }
 0x577   :  { %5257 = vmatprep.subr.bf16.mxu1 %v10151_v12  ;;  %v10162_v12 = vld [vmem:[#allocation122_spill] sm:$0xff] }
 0x57a   :  { %5259 = vmatpush1.bf16.msra.mxu1 %v10152_v45  ;;  %v10163_v45 = vld [vmem:[#allocation123_spill] sm:$0xff] }
 0x57b   :  { %5261 = vmatprep.subr.bf16.mxu1 %v10153_v27  ;;  %v10164_v27 = vld [vmem:[#allocation124_spill] sm:$0xff] }
 0x57e   :  { %5263 = vmatpush1.bf16.msra.mxu1 %v10154_v26  ;;  %v10165_v26 = vld [vmem:[#allocation125_spill] sm:$0xff] }
 0x57f   :  { %5265 = vmatprep.subr.bf16.mxu1 %v10155_v15  ;;  %v10166_v15 = vld [vmem:[#allocation126_spill] sm:$0xff] }
 0x582   :  { %5267 = vmatpush1.bf16.msra.mxu1 %v10156_v3  ;;  %v10167_v3 = vld [vmem:[#allocation127_spill] sm:$0xff] }
 0x583   :  { %5269 = vmatprep.subr.bf16.mxu1 %v10157_v8  ;;  %v10168_v8 = vld [vmem:[#allocation128_spill] sm:$0xff] }
 0x586   :  { %5271 = vmatpush1.bf16.msra.mxu1 %v10158_v52  ;;  %v10169_v52 = vld [vmem:[#allocation129_spill] sm:$0xff] }
 0x587   :  { %5273 = vmatprep.subr.bf16.mxu1 %v10159_v35  ;;  %v10170_v35 = vld [vmem:[#allocation130_spill] sm:$0xff] }
 0x58a   :  { %5275 = vmatpush1.bf16.msra.mxu1 %v10160_v33  ;;  %v10171_v33 = vld [vmem:[#allocation131_spill] sm:$0xff] }
 0x58b   :  { %5277 = vmatprep.subr.bf16.mxu1 %v10161_v0  ;;  %v10172_v0 = vld [vmem:[#allocation132_spill] sm:$0xff] }
 0x58e   :  { %5279 = vmatpush1.bf16.msra.mxu1 %v10162_v12  ;;  %v10173_v12 = vld [vmem:[#allocation133_spill] sm:$0xff] }
 0x58f   :  { %5281 = vmatprep.subr.bf16.mxu1 %v10163_v45  ;;  %v10174_v45 = vld [vmem:[#allocation134_spill] sm:$0xff] }
 0x592   :  { %5283 = vmatpush1.bf16.msra.mxu1 %v10164_v27  ;;  %v10175_v27 = vld [vmem:[#allocation135_spill] sm:$0xff] }
 0x593   :  { %5285 = vmatprep.subr.bf16.mxu1 %v10165_v26 }
 0x596   :  { %5287 = vmatpush1.bf16.msra.mxu1 %v10166_v15  ;;  %v10176_v15 = vld [vmem:[#allocation137_spill] sm:$0xff] }
 0x597   :  { %5289 = vmatprep.subr.bf16.mxu1 %v10167_v3  ;;  %v2219_v3 = vrot.slane %v8236_v53, 4  ;;  %v10184_v53 = vld [vmem:[#allocation145_spill] sm:$0xff] }
 0x59a   :  { %5291 = vmatpush1.bf16.msra.mxu1 %v10168_v8 }
 0x59b   :  { %5293 = vmatprep.subr.bf16.mxu1 %v10169_v52  ;;  %v10177_v52 = vld [vmem:[#allocation138_spill] sm:$0xff] }
 0x59e   :  { %5295 = vmatpush1.bf16.msra.mxu1 %v10170_v35  ;;  %v10188_v35 = vld [vmem:[#allocation149_spill] sm:$0xff] }
 0x59f   :  { %5297 = vmatprep.subr.bf16.mxu1 %v10171_v33  ;;  %v10178_v33 = vld [vmem:[#allocation139_spill] sm:$0xff] }
 0x5a2   :  { %5299 = vmatpush1.bf16.msra.mxu1 %v10172_v0  ;;  %v10179_v0 = vld [vmem:[#allocation140_spill] sm:$0xff] }
 0x5a3   :  { %5301 = vmatprep.subr.bf16.mxu1 %v10173_v12  ;;  %v10180_v12 = vld [vmem:[#allocation141_spill] sm:$0xff] }
 0x5a6   :  { %5303 = vmatpush1.bf16.msra.mxu1 %v10174_v45  ;;  %v10181_v45 = vld [vmem:[#allocation142_spill] sm:$0xff] }
 0x5a7   :  { %5305 = vmatprep.subr.bf16.mxu1 %v10175_v27  ;;  %v10182_v27 = vld [vmem:[#allocation143_spill] sm:$0xff] }
 0x5aa   :  { %5307 = vmatpush1.bf16.msra.mxu1 %v7611_v34  ;;  %v10183_v34 = vld [vmem:[#allocation144_spill] sm:$0xff] }
 0x5ab   :  { %5309 = vmatprep.subr.bf16.mxu1 %v10176_v15  ;;  %v10185_v15 = vld [vmem:[#allocation146_spill] sm:$0xff] }
 0x5ad   :  { %2288 = vmatmul.mubr.f32.vlgmr.msra.gmra.mrb[22].mxu1 %v2219_v3  ;;  %v10186_v3 = vld [vmem:[#allocation147_spill] sm:$0xff] }
 0x5ae   :  { %5311 = vmatpush1.bf16.msra.mxu1 %v10177_v52  ;;  %2360 = vmatprep.mubr.f32.mxu1 %v8281_v62  ;;  %v10187_v52 = vld [vmem:[#allocation148_spill] sm:$0xff] }
 0x5af   :  { %5313 = vmatprep.subr.bf16.mxu1 %v10178_v33  ;;  %v10189_v33 = vld [vmem:[#allocation150_spill] sm:$0xff] }
 0x5b2   :  { %5315 = vmatpush1.bf16.msra.mxu1 %v10179_v0  ;;  %v10190_v0 = vld [vmem:[#allocation151_spill] sm:$0xff] }
 0x5b3   :  { %5317 = vmatprep.subr.bf16.mxu1 %v10180_v12  ;;  %v10191_v12 = vld [vmem:[#allocation152_spill] sm:$0xff] }
 0x5b6   :  { %5319 = vmatpush1.bf16.msra.mxu1 %v10181_v45  ;;  %v10192_v45 = vld [vmem:[#allocation153_spill] sm:$0xff] }
 0x5b7   :  { %5321 = vmatprep.subr.bf16.mxu1 %v10182_v27  ;;  %v10193_v27 = vld [vmem:[#allocation154_spill] sm:$0xff] }
 0x5ba   :  { %5323 = vmatpush1.bf16.msra.mxu1 %v10183_v34  ;;  %v10194_v34 = vld [vmem:[#allocation155_spill] sm:$0xff] }
 0x5bb   :  { %5325 = vmatprep.subr.bf16.mxu1 %v10184_v53  ;;  %v10195_v53 = vld [vmem:[#allocation156_spill] sm:$0xff] }
 0x5be   :  { %5327 = vmatpush1.bf16.msra.mxu1 %v10185_v15  ;;  %v10196_v15 = vld [vmem:[#allocation157_spill] sm:$0xff] }
 0x5bf   :  { %5329 = vmatprep.subr.bf16.mxu1 %v10186_v3  ;;  %v10197_v3 = vld [vmem:[#allocation158_spill] sm:$0xff] }
 0x5c2   :  { %5331 = vmatpush1.bf16.msra.mxu1 %v10187_v52  ;;  %v10198_v52 = vld [vmem:[#allocation159_spill] sm:$0xff] }
 0x5c3   :  { %5333 = vmatprep.subr.bf16.mxu1 %v10188_v35  ;;  %v10199_v35 = vld [vmem:[#allocation160_spill] sm:$0xff] }
 0x5c6   :  { %5335 = vmatpush1.bf16.msra.mxu1 %v10189_v33  ;;  %v10200_v33 = vld [vmem:[#allocation161_spill] sm:$0xff] }
 0x5c7   :  { %5337 = vmatprep.subr.bf16.mxu1 %v10190_v0  ;;  %v10201_v0 = vld [vmem:[#allocation162_spill] sm:$0xff] }
 0x5ca   :  { %5339 = vmatpush1.bf16.msra.mxu1 %v10191_v12  ;;  %v10202_v12 = vld [vmem:[#allocation163_spill] sm:$0xff] }
 0x5cb   :  { %5341 = vmatprep.subr.bf16.mxu1 %v10192_v45  ;;  %v10203_v45 = vld [vmem:[#allocation164_spill] sm:$0xff] }
 0x5ce   :  { %5343 = vmatpush1.bf16.msra.mxu1 %v10193_v27  ;;  %v10204_v27 = vld [vmem:[#allocation165_spill] sm:$0xff] }
 0x5cf   :  { %5345 = vmatprep.subr.bf16.mxu1 %v10194_v34  ;;  %v10205_v34 = vld [vmem:[#allocation166_spill] sm:$0xff] }
 0x5d2   :  { %5347 = vmatpush1.bf16.msra.mxu1 %v10195_v53  ;;  %v10206_v53 = vld [vmem:[#allocation167_spill] sm:$0xff] }
 0x5d3   :  { %5349 = vmatprep.subr.bf16.mxu1 %v10196_v15  ;;  %v10207_v15 = vld [vmem:[#allocation168_spill] sm:$0xff] }
 0x5d6   :  { %5351 = vmatpush1.bf16.msra.mxu1 %v10197_v3  ;;  %v10208_v3 = vld [vmem:[#allocation169_spill] sm:$0xff] }
 0x5d7   :  { %5353 = vmatprep.subr.bf16.mxu1 %v10198_v52 }
 0x5da   :  { %5355 = vmatpush1.bf16.msra.mxu1 %v10199_v35  ;;  %v2372_v35 = vrot.slane %v8281_v62, 4  ;;  %v10217_v62 = vld [vmem:[#allocation178_spill] sm:$0xff] }
 0x5db   :  { %5357 = vmatprep.subr.bf16.mxu1 %v10200_v33  ;;  %v10209_v33 = vld [vmem:[#allocation170_spill] sm:$0xff] }
 0x5de   :  { %5359 = vmatpush1.bf16.msra.mxu1 %v10201_v0  ;;  %v10218_v0 = vld [vmem:[#allocation179_spill] sm:$0xff] }
 0x5df   :  { %5361 = vmatprep.subr.bf16.mxu1 %v10202_v12  ;;  %v10210_v12 = vld [vmem:[#allocation171_spill] sm:$0xff] }
 0x5e2   :  { %5363 = vmatpush1.bf16.msra.mxu1 %v10203_v45  ;;  %v10211_v45 = vld [vmem:[#allocation172_spill] sm:$0xff] }
 0x5e3   :  { %5365 = vmatprep.subr.bf16.mxu1 %v10204_v27  ;;  %v10212_v27 = vld [vmem:[#allocation173_spill] sm:$0xff] }
 0x5e6   :  { %5367 = vmatpush1.bf16.msra.mxu1 %v10205_v34  ;;  %v10213_v34 = vld [vmem:[#allocation174_spill] sm:$0xff] }
 0x5e7   :  { %5369 = vmatprep.subr.bf16.mxu1 %v10206_v53  ;;  %v10214_v53 = vld [vmem:[#allocation175_spill] sm:$0xff] }
 0x5ea   :  { %5371 = vmatpush1.bf16.msra.mxu1 %v10207_v15  ;;  %v10215_v15 = vld [vmem:[#allocation176_spill] sm:$0xff] }
 0x5eb   :  { %5373 = vmatprep.subr.bf16.mxu1 %v10208_v3  ;;  %v10216_v3 = vld [vmem:[#allocation177_spill] sm:$0xff] }
 0x5ed   :  { %2361 = vmatmul.mubr.f32.vlgmr.msra.gmra.mrb[22].mxu1 %v8278_v60 }
 0x5ee   :  { %5375 = vmatpush1.bf16.msra.mxu1 %v10209_v33  ;;  %2439 = vmatprep.mubr.f32.mxu1 %v2372_v35  ;;  %v10219_v33 = vld [vmem:[#allocation180_spill] sm:$0xff]  ;;  %v10220_v35 = vld [vmem:[#allocation181_spill] sm:$0xff] }
 0x5ef   :  { %5377 = vmatprep.subr.bf16.mxu1 %v10210_v12  ;;  %v10221_v12 = vld [vmem:[#allocation182_spill] sm:$0xff] }
 0x5f2   :  { %5379 = vmatpush1.bf16.msra.mxu1 %v10211_v45  ;;  %v10222_v45 = vld [vmem:[#allocation183_spill] sm:$0xff] }
 0x5f3   :  { %5381 = vmatprep.subr.bf16.mxu1 %v10212_v27  ;;  %v10223_v27 = vld [vmem:[#allocation184_spill] sm:$0xff] }
 0x5f6   :  { %5383 = vmatpush1.bf16.msra.mxu1 %v10213_v34  ;;  %v10224_v34 = vld [vmem:[#allocation185_spill] sm:$0xff] }
 0x5f7   :  { %5385 = vmatprep.subr.bf16.mxu1 %v10214_v53  ;;  %v10225_v53 = vld [vmem:[#allocation186_spill] sm:$0xff] }
 0x5fa   :  { %5387 = vmatpush1.bf16.msra.mxu1 %v10215_v15  ;;  %v10226_v15 = vld [vmem:[#allocation187_spill] sm:$0xff] }
 0x5fb   :  { %5389 = vmatprep.subr.bf16.mxu1 %v10216_v3  ;;  %v10227_v3 = vld [vmem:[#allocation188_spill] sm:$0xff] }
 0x5fe   :  { %5391 = vmatpush1.bf16.msra.mxu1 %v10217_v62  ;;  %v10228_v62 = vld [vmem:[#allocation189_spill] sm:$0xff] }
 0x5ff   :  { %5393 = vmatprep.subr.bf16.mxu1 %v10218_v0  ;;  %v10229_v0 = vld [vmem:[#allocation190_spill] sm:$0xff] }
 0x602   :  { %5395 = vmatpush1.bf16.msra.mxu1 %v10219_v33  ;;  %v10230_v33 = vld [vmem:[#allocation191_spill] sm:$0xff] }
 0x603   :  { %5397 = vmatprep.subr.bf16.mxu1 %v10220_v35  ;;  %v10231_v35 = vld [vmem:[#allocation192_spill] sm:$0xff] }
 0x606   :  { %5399 = vmatpush1.bf16.msra.mxu1 %v10221_v12  ;;  %v10232_v12 = vld [vmem:[#allocation193_spill] sm:$0xff] }
 0x607   :  { %5401 = vmatprep.subr.bf16.mxu1 %v10222_v45  ;;  %v10233_v45 = vld [vmem:[#allocation194_spill] sm:$0xff] }
 0x60a   :  { %5403 = vmatpush1.bf16.msra.mxu1 %v10223_v27  ;;  %v10234_v27 = vld [vmem:[#allocation195_spill] sm:$0xff] }
 0x60b   :  { %5405 = vmatprep.subr.bf16.mxu1 %v10224_v34  ;;  %v10235_v34 = vld [vmem:[#allocation196_spill] sm:$0xff] }
 0x60e   :  { %5407 = vmatpush1.bf16.msra.mxu1 %v10225_v53  ;;  %v10236_v53 = vld [vmem:[#allocation197_spill] sm:$0xff] }
 0x60f   :  { %5409 = vmatprep.subr.bf16.mxu1 %v10226_v15  ;;  %v10237_v15 = vld [vmem:[#allocation198_spill] sm:$0xff] }
 0x612   :  { %5411 = vmatpush1.bf16.msra.mxu1 %v10227_v3  ;;  %v10238_v3 = vld [vmem:[#allocation199_spill] sm:$0xff] }
 0x613   :  { %5413 = vmatprep.subr.bf16.mxu1 %v10228_v62  ;;  %v10239_v62 = vld [vmem:[#allocation200_spill] sm:$0xff] }
 0x616   :  { %5415 = vmatpush1.bf16.msra.mxu1 %v10229_v0  ;;  %v10240_v0 = vld [vmem:[#allocation201_spill] sm:$0xff] }
 0x617   :  { %5417 = vmatprep.subr.bf16.mxu1 %v10230_v33  ;;  %v2371_v33 = vrot.slane %v8278_v60, 4  ;;  %v10248_v60 = vld [vmem:[#allocation209_spill] sm:$0xff] }
 0x61a   :  { %5419 = vmatpush1.bf16.msra.mxu1 %v10231_v35 }
 0x61b   :  { %5421 = vmatprep.subr.bf16.mxu1 %v10232_v12  ;;  %v10241_v12 = vld [vmem:[#allocation202_spill] sm:$0xff] }
 0x61e   :  { %5423 = vmatpush1.bf16.msra.mxu1 %v10233_v45  ;;  %v10252_v45 = vld [vmem:[#allocation213_spill] sm:$0xff] }
 0x61f   :  { %5425 = vmatprep.subr.bf16.mxu1 %v10234_v27  ;;  %v10242_v27 = vld [vmem:[#allocation203_spill] sm:$0xff] }
 0x622   :  { %5427 = vmatpush1.bf16.msra.mxu1 %v10235_v34  ;;  %v10243_v34 = vld [vmem:[#allocation204_spill] sm:$0xff] }
 0x623   :  { %5429 = vmatprep.subr.bf16.mxu1 %v10236_v53  ;;  %v10244_v53 = vld [vmem:[#allocation205_spill] sm:$0xff] }
 0x626   :  { %5431 = vmatpush1.bf16.msra.mxu1 %v10237_v15  ;;  %v10245_v15 = vld [vmem:[#allocation206_spill] sm:$0xff] }
 0x627   :  { %5433 = vmatprep.subr.bf16.mxu1 %v10238_v3  ;;  %v10246_v3 = vld [vmem:[#allocation207_spill] sm:$0xff] }
 0x62a   :  { %5435 = vmatpush1.bf16.msra.mxu1 %v10239_v62  ;;  %v10247_v62 = vld [vmem:[#allocation208_spill] sm:$0xff] }
 0x62b   :  { %5437 = vmatprep.subr.bf16.mxu1 %v10240_v0  ;;  %v10249_v0 = vld [vmem:[#allocation210_spill] sm:$0xff] }
 0x62d   :  { %2440 = vmatmul.mubr.f32.vlgmr.msra.gmra.mrb[22].mxu1 %v2371_v33  ;;  %v10250_v33 = vld [vmem:[#allocation211_spill] sm:$0xff] }
 0x62e   :  { %5439 = vmatpush1.bf16.msra.mxu1 %v10241_v12  ;;  %2512 = vmatprep.mubr.f32.mxu1 %v8212_v21  ;;  %v10251_v12 = vld [vmem:[#allocation212_spill] sm:$0xff] }
 0x62f   :  { %5441 = vmatprep.subr.bf16.mxu1 %v10242_v27  ;;  %v10253_v27 = vld [vmem:[#allocation214_spill] sm:$0xff] }
 0x632   :  { %5443 = vmatpush1.bf16.msra.mxu1 %v10243_v34  ;;  %v10254_v34 = vld [vmem:[#allocation215_spill] sm:$0xff] }
 0x633   :  { %5445 = vmatprep.subr.bf16.mxu1 %v10244_v53  ;;  %v10255_v53 = vld [vmem:[#allocation216_spill] sm:$0xff] }
 0x636   :  { %5447 = vmatpush1.bf16.msra.mxu1 %v10245_v15  ;;  %v10256_v15 = vld [vmem:[#allocation217_spill] sm:$0xff] }
 0x637   :  { %5449 = vmatprep.subr.bf16.mxu1 %v10246_v3  ;;  %v10257_v3 = vld [vmem:[#allocation218_spill] sm:$0xff] }
 0x63a   :  { %5451 = vmatpush1.bf16.msra.mxu1 %v10247_v62  ;;  %v10258_v62 = vld [vmem:[#allocation219_spill] sm:$0xff] }
 0x63b   :  { %5453 = vmatprep.subr.bf16.mxu1 %v10248_v60  ;;  %v10259_v60 = vld [vmem:[#allocation220_spill] sm:$0xff] }
 0x63e   :  { %5455 = vmatpush1.bf16.msra.mxu1 %v10249_v0  ;;  %v10260_v0 = vld [vmem:[#allocation221_spill] sm:$0xff] }
 0x63f   :  { %5457 = vmatprep.subr.bf16.mxu1 %v10250_v33  ;;  %v10261_v33 = vld [vmem:[#allocation222_spill] sm:$0xff] }
 0x642   :  { %5459 = vmatpush1.bf16.msra.mxu1 %v10251_v12  ;;  %v10262_v12 = vld [vmem:[#allocation223_spill] sm:$0xff] }
 0x643   :  { %5461 = vmatprep.subr.bf16.mxu1 %v10252_v45 }
 0x646   :  { %5463 = vmatpush1.bf16.msra.mxu1 %v10253_v27 }
 0x647   :  { %5465 = vmatprep.subr.bf16.mxu1 %v10254_v34 }
 0x64a   :  { %5467 = vmatpush1.bf16.msra.mxu1 %v10255_v53 }
 0x64b   :  { %5469 = vmatprep.subr.bf16.mxu1 %v10256_v15 }
 0x64e   :  { %5471 = vmatpush1.bf16.msra.mxu1 %v10257_v3 }
 0x64f   :  { %5473 = vmatprep.subr.bf16.mxu1 %v10258_v62 }
 0x652   :  { %5475 = vmatpush1.bf16.msra.mxu1 %v10259_v60 }
 0x653   :  { %5477 = vmatprep.subr.bf16.mxu1 %v10260_v0 }
 0x656   :  { %5479 = vmatpush1.bf16.msra.mxu1 %v10261_v33 }
 0x657   :  { %5481 = vmatprep.subr.bf16.mxu1 %v10262_v12 }
 0x65a   :  { %5483 = vmatpush1.bf16.msra.mxu1 %v7894_v44  ;;  %v2524_v44 = vrot.slane %v8212_v21, 4  ;;  %v10264_v21 = vld [vmem:[#allocation245_spill] sm:$0xff] }
 0x65b   :  { %5485 = vmatprep.subr.bf16.mxu1 %v7897_v40 }
 0x65e   :  { %5487 = vmatpush1.bf16.msra.mxu1 %v7905_v56 }
 0x65f   :  { %5489 = vmatprep.subr.bf16.mxu1 %v7909_v59 }
 0x662   :  { %5491 = vmatpush1.bf16.msra.mxu1 %v7920_v41 }
 0x663   :  { %5493 = vmatprep.subr.bf16.mxu1 %v7924_v51 }
 0x666   :  { %5495 = vmatpush1.bf16.msra.mxu1 %v7933_v22 }
 0x667   :  { %5497 = vmatprep.subr.bf16.mxu1 %v7937_v11 }
 0x66a   :  { %5499 = vmatpush1.bf16.msra.mxu1 %v7946_v5 }
 0x66b   :  { %5501 = vmatprep.subr.bf16.mxu1 %v7950_v23 }
 0x66d   :  { %2513 = vmatmul.mubr.f32.vlgmr.msra.gmra.mrb[22].mxu1 %v8210_v28 }
 0x66e   :  { %5503 = vmatpush1.bf16.msra.mxu1 %v7959_v47  ;;  %2591 = vmatprep.mubr.f32.mxu1 %v2524_v44  ;;  %v10263_v44 = vld [vmem:[#allocation244_spill] sm:$0xff] }
 0x66f   :  { %5505 = vmatprep.subr.bf16.mxu1 %v7963_v42 }
 0x672   :  { %5507 = vmatpush1.bf16.msra.mxu1 %v7973_v49 }
 0x673   :  { %5509 = vmatprep.subr.bf16.mxu1 %v7976_v50 }
 0x676   :  { %5511 = vmatpush1.bf16.msra.mxu1 %v7984_v57 }
 0x677   :  { %5513 = vmatprep.subr.bf16.mxu1 %v7987_v55  ;;  %v2679_v55 = vpop.xlane.xlu0 %2678 }
 0x67a   :  { %5515 = vmatpush1.bf16.msra.mxu1 %v7992_v48  ;;  %v2686_v48 = vpop.xlane.xlu1 %2685 }
 0x67b   :  { %5517 = vmatprep.subr.bf16.mxu1 %v7996_v1 }
 0x67e   :  { %5519 = vmatpush1.bf16.msra.mxu1 %v8000_v43 }
 0x67f   :  { %5521 = vmatprep.subr.bf16.mxu1 %v8004_v10  ;;  %v10265_v10 = vld [vmem:[#allocation246_spill] sm:$0xff] }
 0x682   :  { %5523 = vmatpush1.bf16.msra.mxu1 %v8008_v18  ;;  %v10266_v18 = vld [vmem:[#allocation247_spill] sm:$0xff] }
 0x683   :  { %5525 = vmatprep.subr.bf16.mxu1 %v8012_v38  ;;  %v10267_v38 = vld [vmem:[#allocation248_spill] sm:$0xff] }
 0x686   :  { %5527 = vmatpush1.bf16.msra.mxu1 %v8016_v24  ;;  %v10268_v24 = vld [vmem:[#allocation249_spill] sm:$0xff] }
 0x687   :  { %5529 = vmatprep.subr.bf16.mxu1 %v8020_v19  ;;  %v10269_v19 = vld [vmem:[#allocation250_spill] sm:$0xff] }
 0x68a   :  { %5531 = vmatpush1.bf16.msra.mxu1 %v8024_v30  ;;  %v10270_v30 = vld [vmem:[#allocation251_spill] sm:$0xff] }
 0x68b   :  { %5533 = vmatprep.subr.bf16.mxu1 %v8028_v25  ;;  %v10271_v25 = vld [vmem:[#allocation252_spill] sm:$0xff] }
 0x68e   :  { %5535 = vmatpush1.bf16.msra.mxu1 %v8032_v36  ;;  %v10272_v36 = vld [vmem:[#allocation253_spill] sm:$0xff] }
 0x68f   :  { %5537 = vmatprep.subr.bf16.mxu1 %v8036_v31  ;;  %v10273_v31 = vld [vmem:[#allocation254_spill] sm:$0xff] }
 0x692   :  { %5539 = vmatpush1.bf16.msra.mxu1 %v10263_v44  ;;  %v10274_v44 = vld [vmem:[#allocation255_spill] sm:$0xff] }
 0x693   :  { %5541 = vmatprep.subr.bf16.mxu1 %v10264_v21  ;;  %v10275_v21 = vld [vmem:[#allocation256_spill] sm:$0xff] }
 0x696   :  { %5543 = vmatpush1.bf16.msra.mxu1 %v10265_v10  ;;  %v10276_v10 = vld [vmem:[#allocation257_spill] sm:$0xff] }
 0x697   :  { %5545 = vmatprep.subr.bf16.mxu1 %v10266_v18  ;;  %v2523_v18 = vrot.slane %v8210_v28, 4  ;;  %v10285_v28 = vld [vmem:[#allocation265_spill] sm:$0xff] }
 0x69a   :  { %5547 = vmatpush1.bf16.msra.mxu1 %v10267_v38 }
 0x69b   :  { %5549 = vmatprep.subr.bf16.mxu1 %v10268_v24  ;;  %v10277_v24 = vld [vmem:[#allocation258_spill] sm:$0xff] }
 0x69e   :  { %5551 = vmatpush1.bf16.msra.mxu1 %v10269_v19  ;;  %v10278_v19 = vld [vmem:[#allocation290_spill] sm:$0xff] }
 0x69f   :  { %5553 = vmatprep.subr.bf16.mxu1 %v10270_v30  ;;  %v10279_v30 = vld [vmem:[#allocation259_spill] sm:$0xff] }
 0x6a2   :  { %5555 = vmatpush1.bf16.msra.mxu1 %v10271_v25  ;;  %v10280_v25 = vld [vmem:[#allocation260_spill] sm:$0xff] }
 0x6a3   :  { %5557 = vmatprep.subr.bf16.mxu1 %v10272_v36  ;;  %v10281_v36 = vld [vmem:[#allocation261_spill] sm:$0xff] }
 0x6a6   :  { %5559 = vmatpush1.bf16.msra.mxu1 %v10273_v31  ;;  %v10282_v31 = vld [vmem:[#allocation262_spill] sm:$0xff] }
 0x6a7   :  { %5561 = vmatprep.subr.bf16.mxu1 %v10274_v44  ;;  %v10283_v44 = vld [vmem:[#allocation263_spill] sm:$0xff] }
 0x6aa   :  { %5563 = vmatpush1.bf16.msra.mxu1 %v10275_v21  ;;  %v10284_v21 = vld [vmem:[#allocation264_spill] sm:$0xff] }
 0x6ab   :  { %5565 = vmatprep.subr.bf16.mxu1 %v10276_v10  ;;  %v10286_v10 = vld [vmem:[#allocation266_spill] sm:$0xff] }
 0x6ad   :  { %2592 = vmatmul.mubr.f32.vlgmr.msra.gmra.mrb[22].mxu1 %v2523_v18  ;;  %v10287_v18 = vld [vmem:[#allocation267_spill] sm:$0xff] }
 0x6ae   :  { %5567 = vmatpush1.bf16.msra.mxu1 %v10277_v24  ;;  %2664 = vmatprep.mubr.f32.mxu1 %v10278_v19  ;;  %v10288_v24 = vld [vmem:[#allocation268_spill] sm:$0xff]  ;;  %v10289_v19 = vld [vmem:[#allocation269_spill] sm:$0xff] }
 0x6af   :  { %5569 = vmatprep.subr.bf16.mxu1 %v10279_v30  ;;  %v10290_v30 = vld [vmem:[#allocation270_spill] sm:$0xff] }
 0x6b2   :  { %5571 = vmatpush1.bf16.msra.mxu1 %v10280_v25  ;;  %v10291_v25 = vld [vmem:[#allocation271_spill] sm:$0xff] }
 0x6b3   :  { %5573 = vmatprep.subr.bf16.mxu1 %v10281_v36  ;;  %v10292_v36 = vld [vmem:[#allocation272_spill] sm:$0xff] }
 0x6b6   :  { %5575 = vmatpush1.bf16.msra.mxu1 %v10282_v31  ;;  %v10293_v31 = vld [vmem:[#allocation273_spill] sm:$0xff] }
 0x6b7   :  { %5577 = vmatprep.subr.bf16.mxu1 %v10283_v44  ;;  %v10294_v44 = vld [vmem:[#allocation274_spill] sm:$0xff] }
 0x6ba   :  { %5579 = vmatpush1.bf16.msra.mxu1 %v10284_v21  ;;  %v10295_v21 = vld [vmem:[#allocation275_spill] sm:$0xff] }
 0x6bb   :  { %5581 = vmatprep.subr.bf16.mxu1 %v10285_v28  ;;  %v10296_v28 = vld [vmem:[#allocation276_spill] sm:$0xff] }
 0x6be   :  { %5583 = vmatpush1.bf16.msra.mxu1 %v10286_v10  ;;  %v10297_v10 = vld [vmem:[#allocation277_spill] sm:$0xff] }
 0x6bf   :  { %5585 = vmatprep.subr.bf16.mxu1 %v10287_v18  ;;  %v10298_v18 = vld [vmem:[#allocation278_spill] sm:$0xff] }
 0x6c2   :  { %5587 = vmatpush1.bf16.msra.mxu1 %v10288_v24  ;;  %v10299_v24 = vld [vmem:[#allocation279_spill] sm:$0xff] }
 0x6c3   :  { %5589 = vmatprep.subr.bf16.mxu1 %v10289_v19  ;;  %v10300_v19 = vld [vmem:[#allocation280_spill] sm:$0xff] }
 0x6c6   :  { %5591 = vmatpush1.bf16.msra.mxu1 %v10290_v30  ;;  %v10301_v30 = vld [vmem:[#allocation281_spill] sm:$0xff] }
 0x6c7   :  { %5593 = vmatprep.subr.bf16.mxu1 %v10291_v25  ;;  %v10302_v25 = vld [vmem:[#allocation282_spill] sm:$0xff] }
 0x6ca   :  { %5595 = vmatpush1.bf16.msra.mxu1 %v10292_v36  ;;  %v10303_v36 = vld [vmem:[#allocation283_spill] sm:$0xff] }
 0x6cb   :  { %5597 = vmatprep.subr.bf16.mxu1 %v10293_v31  ;;  %v10304_v31 = vld [vmem:[#allocation284_spill] sm:$0xff] }
 0x6ce   :  { %5599 = vmatpush1.bf16.msra.mxu1 %v10294_v44  ;;  %v10305_v44 = vld [vmem:[#allocation285_spill] sm:$0xff] }
 0x6cf   :  { %5601 = vmatprep.subr.bf16.mxu1 %v10295_v21  ;;  %v10306_v21 = vld [vmem:[#allocation286_spill] sm:$0xff] }
 0x6d2   :  { %5603 = vmatpush1.bf16.msra.mxu1 %v10296_v28  ;;  %v10307_v28 = vld [vmem:[#allocation287_spill] sm:$0xff] }
 0x6d3   :  { %5605 = vmatprep.subr.bf16.mxu1 %v10297_v10  ;;  %v10308_v10 = vld [vmem:[#allocation288_spill] sm:$0xff] }
 0x6d6   :  { %5607 = vmatpush1.bf16.msra.mxu1 %v10298_v18  ;;  %v10309_v18 = vld [vmem:[#allocation289_spill] sm:$0xff] }
 0x6d7   :  { %5609 = vmatprep.subr.bf16.mxu1 %v10299_v24  ;;  %v10310_v24 = vmov 0.0  }
 0x6da   :  { %5611 = vmatpush1.bf16.msra.mxu1 %v10300_v19 }
 0x6db   :  { %5613 = vmatprep.subr.bf16.mxu1 %v10301_v30  ;;  %v10311_v30 = vld [vmem:[#allocation291_spill] sm:$0xff] }
 0x6de   :  { %5615 = vmatpush1.bf16.msra.mxu1 %v10302_v25 }
 0x6df   :  { %5617 = vmatprep.subr.bf16.mxu1 %v10303_v36 }
 0x6e2   :  { %5619 = vmatpush1.bf16.msra.mxu1 %v10304_v31 }
 0x6e3   :  { %5621 = vmatprep.subr.bf16.mxu1 %v10305_v44 }
 0x6e6   :  { %5623 = vmatpush1.bf16.msra.mxu1 %v10306_v21 }
 0x6e7   :  { %5625 = vmatprep.subr.bf16.mxu1 %v10307_v28 }
 0x6ea   :  { %5627 = vmatpush1.bf16.msra.mxu1 %v10308_v10 }
 0x6ed   :  { %2665 = vmatmul.mubr.f32.vlgmr.msra.gmra.mrb[22].mxu1 %v10309_v18 }
 0x6ee   :  { %3603 = vmatprep.mubr.f32.mxu1 %v10310_v24 }
 0x7c0   :  { %v2666_v19 = vpop.f32.mrb[22].mxu1 }
 0x7c1   :  { %v2673_v38 = vadd.f32 %v2666_v19, %v10311_v30  ;;  %v2668_v25 = vpop.f32.mrb[23].mxu1 }
 0x7c2   :  { %v2674_v36 = vadd.f32 %v2668_v25, %v10311_v30 }
 0x7c3   :  { %v2687_v31 = vsel %vm230_vm1, %v2673_v38, 0.0  ;;  %v2693_v43 = vmul.f32 %v2673_v38, %v2673_v38 }
 0x7c4   :  { %v2688_v44 = vsel %vm230_vm1, %v2674_v36, 0.0  ;;  %v2694_v21 = vmul.f32 %v2674_v36, %v2674_v36 }
 0x7c5   :  { %v2689_v1 = vadd.f32 %v2688_v44, %v2687_v31  ;;  %v2695_v28 = vsel %vm230_vm1, %v2693_v43, 0.0  ;;  %v132_v43 = vld [vmem:[%s9250_s7] sm:$0xf] }
 0x7c6   :  { %v2696_v10 = vsel %vm230_vm1, %v2694_v21, 0.0 }
 0x7c7   :  { %2690 = vadd.xlane.f32.xlu1 %v2689_v1  ;;  %v2697_v18 = vadd.f32 %v2696_v10, %v2695_v28  ;;  %v133_v10 = vld [vmem:[%s9251_s8] sm:$0xf] }
 0x7cb   :  { %2698 = vadd.xlane.f32.xlu1 %v2697_v18 }
 0x854   :  { %v2691_v19 = vpop.xlane.xlu1 %2690 }
 0x855   :  { %v2692_v57 = vadd.f32 %v2691_v19, %v2679_v55 }
 0x857   :  { %v2702_v50 = vmul.f32 0.001953125, %v2692_v57 }
 0x858   :  { %v2699_v30 = vpop.xlane.xlu1 %2698 }
 0x859   :  { %v2700_v25 = vadd.f32 %v2699_v30, %v2686_v48  ;;  %v2704_v49 = vmul.f32 %v2702_v50, %v2702_v50 }
 0x85b   :  { %v2703_v42 = vmul.f32 0.001953125, %v2700_v25 }
 0x85d   :  { %v2705_v47 = vsub.f32 %v2703_v42, %v2704_v49  ;;  %v134_v42 = vld [vmem:[%s9253_s10] sm:$0xf] }
 0x85f   :  { %v2706_v23 = vadd.f32 1e-05, %v2705_v47  ;;  %v10312_v47 = vld [vmem:[#allocation292_spill] sm:$0xff] }
 0x861   :  { %6883 = vrsqrt.f32 %v2706_v23 }
 0x86b   :  { %v6884_v31 = vpop.eup %6883 }
 0x86c   :  { %v2708_v1 = vmul.f32 %v6884_v31, %v132_v43 }
 0x86e   :  { %2713 = vperm.xlu1 %6880, %v2708_v1   ;;  %v2709_v55 = vmul.f32 %v2708_v1, %v2702_v50 }
 0x870   :  { %v2710_v57 = vsub.f32 %v133_v10, %v2709_v55  ;;  %v126_v10 = vld [vmem:[%s9252_s9] sm:$0xff]  ;;  %v10315_v55 = vld [vmem:[#allocation17_spill] sm:$0xff] }
 0x872   :  { %2720 = vperm.xlu1 %6880, %v2710_v57   ;;  %v128_v57 = vld [vmem:[%s9252_s9 + $0x10] sm:$0xff] }
 0x876   :  { %3528 = vperm.xlu1 %6880, %v134_v42   ;;  %v10316_v42 = vld [vmem:[#allocation18_spill] sm:$0xff] }
 0x8ed   :  { %v2714_v23 = vpop.permute.xlu1 %2713 }
 0x8ee   :  { %v2716_v49 = vmul.f32 %v2714_v23, %v10312_v47  ;;  %v2717_v48 = vmul.f32 %v2714_v23, %v8224_v13  ;;  %v2727_v44 = vmul.f32 %v2714_v23, %v2673_v38  ;;  %v2728_v21 = vmul.f32 %v2714_v23, %v2674_v36  ;;  %v127_v36 = vld [vmem:[%s9252_s9 + $0x8] sm:$0xff]  ;;  %v10314_v13 = vld [vmem:[#allocation16_spill] sm:$0xff]  ;;  %v129_v47 = vld [vmem:[%s9252_s9 + $0x18] sm:$0xff] }
 0x8ef   :  { %v10313_v38 = vld [vmem:[#allocation15_spill] sm:$0xff] }
 0x8f0   :  { %v10317_v23 = vld [vmem:[#allocation19_spill] sm:$0xff] }
 0x8f1   :  { %v2721_v28 = vpop.permute.xlu1 %2720 }
 0x8f2   :  { %v2723_v18 = vadd.f32 %v2721_v28, %v2716_v49  ;;  %v2724_v19 = vadd.f32 %v2721_v28, %v2717_v48  ;;  %v2729_v30 = vadd.f32 %v2727_v44, %v2721_v28  ;;  %v2730_v25 = vadd.f32 %v2728_v21, %v2721_v28  ;;  %v10318_v49 = vld [vmem:[#allocation20_spill] sm:$0xff]  ;;  %v10319_v48 = vld [vmem:[#allocation21_spill] sm:$0xff]  ;;  %v10320_v44 = vld [vmem:[#allocation22_spill] sm:$0xff] }
 0x8f3   :  { %v10321_v21 = vld [vmem:[#allocation23_spill] sm:$0xff]  ;;  %v10322_v28 = vld [vmem:[#allocation24_spill] sm:$0xff] }
 0x8f4   :  { %v2725_v50 = vmax.f32 %v2723_v18, 0.0  ;;  %v2726_v43 = vmax.f32 %v2724_v19, 0.0  ;;  %v2731_v31 = vmax.f32 %v2729_v30, 0.0  ;;  %v2732_v1 = vmax.f32 %v2730_v25, 0.0  ;;  %v10323_v18 = vld [vmem:[#allocation25_spill] sm:$0xff]  ;;  %v10324_v19 = vld [vmem:[#allocation26_spill] sm:$0xff] }
 0x8f5   :  { %v10326_v30 = vld [vmem:[#allocation28_spill] sm:$0xff]  ;;  %v10327_v25 = vld [vmem:[#allocation29_spill] sm:$0xff] }
 0x8f6   :  { %4430 = vmatprep.subr.msk.mxu0 %vm230_vm1, %v2726_v43  ;;  %4437 = vmatprep.subr.msk.mxu1 %vm230_vm1, %v2732_v1  ;;  %v10329_v43 = vld [vmem:[#allocation31_spill] sm:$0xff]  ;;  %v10331_v1 = vld [vmem:[#allocation33_spill] sm:$0xff] }
 0x8f7   :  { %4431 = vmatpush1.msk.msra.mxu0 %vm230_vm1, %v2725_v50  ;;  %4438 = vmatpush1.msk.msra.mxu1 %vm230_vm1, %v2731_v31  ;;  %v10328_v50 = vld [vmem:[#allocation30_spill] sm:$0xff]  ;;  %v10330_v31 = vld [vmem:[#allocation32_spill] sm:$0xff] }
 0x8f8   :  { %4432 = vmatmul.mubr.msk.f32.vlgmr.msra.gmra.mrb[20].mxu0 %vm214_vm2, %v126_v10  ;;  %4439 = vmatmul.mubr.msk.f32.vlgmr.msra.gmra.mrb[24].mxu1 %vm214_vm2, %v126_v10  ;;  %v10332_v10 = vld [vmem:[#allocation34_spill] sm:$0xff] }
 0x8f9   :  { %2824 = vmatprep.mubr.f32.mxu0 %v10310_v24  ;;  %3609 = vmatprep.mubr.f32.mxu1 %v10310_v24 }
 0x8fa   :  { %5629 = vmatprep.subr.bf16.mxu0 %v10313_v38  ;;  %6205 = vmatprep.subr.bf16.mxu1 %v10313_v38  ;;  %v10334_v38 = vld [vmem:[#allocation36_spill] sm:$0xff] }
 0x8fb   :  { %5631 = vmatpush1.bf16.msra.mxu0 %v10314_v13  ;;  %6207 = vmatpush1.bf16.msra.mxu1 %v10314_v13  ;;  %v10335_v13 = vld [vmem:[#allocation37_spill] sm:$0xff] }
 0x8fc   :  { %4433 = vmatmul.mubr.msk.f32.gmra.mrb[22].mxu0 %vm214_vm2, %v127_v36  ;;  %4440 = vmatmul.mubr.msk.f32.gmra.mrb[26].mxu1 %vm214_vm2, %v127_v36  ;;  %v10333_v36 = vld [vmem:[#allocation35_spill] sm:$0xff] }
 0x8fd   :  { %5633 = vmatprep.subr.bf16.mxu0 %v10315_v55  ;;  %6209 = vmatprep.subr.bf16.mxu1 %v10315_v55  ;;  %v10336_v55 = vld [vmem:[#allocation38_spill] sm:$0xff] }
 0x8fe   :  { %2830 = vmatprep.mubr.f32.mxu0 %v10310_v24  ;;  %3615 = vmatprep.mubr.f32.mxu1 %v10310_v24 }
 0x8ff   :  { %5635 = vmatpush1.bf16.msra.mxu0 %v10316_v42  ;;  %6211 = vmatpush1.bf16.msra.mxu1 %v10316_v42  ;;  %v10338_v42 = vld [vmem:[#allocation40_spill] sm:$0xff] }
 0x900   :  { %5637 = vmatprep.subr.bf16.mxu0 %v10317_v23  ;;  %6213 = vmatprep.subr.bf16.mxu1 %v10317_v23  ;;  %v10339_v23 = vld [vmem:[#allocation41_spill] sm:$0xff] }
 0x901   :  { %4434 = vmatmul.mubr.msk.f32.gmra.mrb[24].mxu0 %vm214_vm2, %v128_v57  ;;  %4441 = vmatmul.mubr.msk.f32.gmra.mrb[28].mxu1 %vm214_vm2, %v128_v57  ;;  %v10337_v57 = vld [vmem:[#allocation39_spill] sm:$0xff] }
 0x902   :  { %2836 = vmatprep.mubr.f32.mxu0 %v10310_v24  ;;  %3621 = vmatprep.mubr.f32.mxu1 %v10310_v24 }
 0x903   :  { %5639 = vmatpush1.bf16.msra.mxu0 %v10318_v49  ;;  %6215 = vmatpush1.bf16.msra.mxu1 %v10318_v49  ;;  %v10341_v49 = vld [vmem:[#allocation43_spill] sm:$0xff] }
 0x904   :  { %5641 = vmatprep.subr.bf16.mxu0 %v10319_v48  ;;  %6217 = vmatprep.subr.bf16.mxu1 %v10319_v48  ;;  %v10342_v48 = vld [vmem:[#allocation44_spill] sm:$0xff] }
 0x905   :  { %4435 = vmatmul.mubr.msk.f32.gmra.mrb[26].mxu0 %vm214_vm2, %v129_v47  ;;  %4442 = vmatmul.mubr.msk.f32.gmra.mrb[30].mxu1 %vm214_vm2, %v129_v47  ;;  %v10340_v47 = vld [vmem:[#allocation42_spill] sm:$0xff] }
 0x906   :  { %2842 = vmatprep.mubr.f32.mxu0 %v10310_v24  ;;  %3627 = vmatprep.mubr.f32.mxu1 %v10310_v24  ;;  %v10325_v24 = vld [vmem:[#allocation27_spill] sm:$0xff] }
 0x907   :  { %5643 = vmatpush1.bf16.msra.mxu0 %v10320_v44  ;;  %6219 = vmatpush1.bf16.msra.mxu1 %v10320_v44  ;;  %v10343_v44 = vld [vmem:[#allocation45_spill] sm:$0xff] }
 0x908   :  { %5645 = vmatprep.subr.bf16.mxu0 %v10321_v21  ;;  %6221 = vmatprep.subr.bf16.mxu1 %v10321_v21  ;;  %v10344_v21 = vld [vmem:[#allocation46_spill] sm:$0xff] }
 0x90b   :  { %5647 = vmatpush1.bf16.msra.mxu0 %v10322_v28  ;;  %6223 = vmatpush1.bf16.msra.mxu1 %v10322_v28  ;;  %v10345_v28 = vld [vmem:[#allocation47_spill] sm:$0xff] }
 0x90c   :  { %5649 = vmatprep.subr.bf16.mxu0 %v10323_v18  ;;  %6225 = vmatprep.subr.bf16.mxu1 %v10323_v18  ;;  %v130_v18 = vld [vmem:[%s9252_s9 + $0x20] sm:$0xf] }
 0x90d   :  { %4436 = vmatmul.mubr.msk.f32.gmra.mrb[28].mxu0 %vm214_vm2, %v130_v18  ;;  %4443 = vmatmul.mubr.msk.f32.gmra.mrb[32].mxu1 %vm214_vm2, %v130_v18 }
 0x90f   :  { %5651 = vmatpush1.bf16.msra.mxu0 %v10324_v19  ;;  %6227 = vmatpush1.bf16.msra.mxu1 %v10324_v19 }
 0x910   :  { %5653 = vmatprep.subr.bf16.mxu0 %v10325_v24  ;;  %6229 = vmatprep.subr.bf16.mxu1 %v10325_v24 }
 0x913   :  { %5655 = vmatpush1.bf16.msra.mxu0 %v10326_v30  ;;  %6231 = vmatpush1.bf16.msra.mxu1 %v10326_v30 }
 0x914   :  { %5657 = vmatprep.subr.bf16.mxu0 %v10327_v25  ;;  %6233 = vmatprep.subr.bf16.mxu1 %v10327_v25 }
 0x917   :  { %5659 = vmatpush1.bf16.msra.mxu0 %v10328_v50  ;;  %6235 = vmatpush1.bf16.msra.mxu1 %v10328_v50 }
 0x918   :  { %5661 = vmatprep.subr.bf16.mxu0 %v10329_v43  ;;  %6237 = vmatprep.subr.bf16.mxu1 %v10329_v43 }
 0x91b   :  { %5663 = vmatpush1.bf16.msra.mxu0 %v10330_v31  ;;  %6239 = vmatpush1.bf16.msra.mxu1 %v10330_v31 }
 0x91c   :  { %5665 = vmatprep.subr.bf16.mxu0 %v10331_v1  ;;  %6241 = vmatprep.subr.bf16.mxu1 %v10331_v1 }
 0x91f   :  { %5667 = vmatpush1.bf16.msra.mxu0 %v10332_v10  ;;  %6243 = vmatpush1.bf16.msra.mxu1 %v10332_v10 }
 0x920   :  { %5669 = vmatprep.subr.bf16.mxu0 %v10333_v36  ;;  %6245 = vmatprep.subr.bf16.mxu1 %v10333_v36 }
 0x923   :  { %5671 = vmatpush1.bf16.msra.mxu0 %v10334_v38  ;;  %6247 = vmatpush1.bf16.msra.mxu1 %v10334_v38 }
 0x924   :  { %5673 = vmatprep.subr.bf16.mxu0 %v10335_v13  ;;  %6249 = vmatprep.subr.bf16.mxu1 %v10335_v13 }
 0x927   :  { %5675 = vmatpush1.bf16.msra.mxu0 %v10336_v55  ;;  %6251 = vmatpush1.bf16.msra.mxu1 %v10336_v55  ;;  %v10361_v55 = vld [vmem:[#allocation73_spill] sm:$0xff] }
 0x928   :  { %5677 = vmatprep.subr.bf16.mxu0 %v10337_v57  ;;  %6253 = vmatprep.subr.bf16.mxu1 %v10337_v57  ;;  %v10363_v57 = vld [vmem:[#allocation76_spill] sm:$0xff] }
 0x92b   :  { %5679 = vmatpush1.bf16.msra.mxu0 %v10338_v42  ;;  %6255 = vmatpush1.bf16.msra.mxu1 %v10338_v42  ;;  %v10364_v42 = vld [vmem:[#allocation77_spill] sm:$0xff] }
 0x92c   :  { %5681 = vmatprep.subr.bf16.mxu0 %v10339_v23  ;;  %6257 = vmatprep.subr.bf16.mxu1 %v10339_v23  ;;  %v10365_v23 = vld [vmem:[#allocation78_spill] sm:$0xff] }
 0x92f   :  { %5683 = vmatpush1.bf16.msra.mxu0 %v10340_v47  ;;  %6259 = vmatpush1.bf16.msra.mxu1 %v10340_v47 }
 0x930   :  { %5685 = vmatprep.subr.bf16.mxu0 %v10341_v49  ;;  %6261 = vmatprep.subr.bf16.mxu1 %v10341_v49  ;;  %v10366_v49 = vld [vmem:[#allocation79_spill] sm:$0xff] }
 0x933   :  { %5687 = vmatpush1.bf16.msra.mxu0 %v10342_v48  ;;  %6263 = vmatpush1.bf16.msra.mxu1 %v10342_v48  ;;  %v10367_v48 = vld [vmem:[#allocation80_spill] sm:$0xff] }
 0x934   :  { %5689 = vmatprep.subr.bf16.mxu0 %v10343_v44  ;;  %6265 = vmatprep.subr.bf16.mxu1 %v10343_v44 }
 0x937   :  { %5691 = vmatpush1.bf16.msra.mxu0 %v10344_v21  ;;  %6267 = vmatpush1.bf16.msra.mxu1 %v10344_v21  ;;  %v10368_v21 = vld [vmem:[#allocation81_spill] sm:$0xff] }
 0x938   :  { %5693 = vmatprep.subr.bf16.mxu0 %v10345_v28  ;;  %6269 = vmatprep.subr.bf16.mxu1 %v10345_v28 }
 0x9cb   :  { %v8636_v19 = vpop.f32.mrb[20].mxu0  ;;  %v8638_v24 = vpop.f32.mrb[24].mxu1 }
 0x9cc   :  { %v3636_v30 = vrot.slane %v8638_v24, 4  ;;  %v2822_v25 = vpop.f32.mrb[21].mxu0  ;;  %v3607_v50 = vpop.f32.mrb[25].mxu1  ;;  %v2851_v1 = vrot.slane %v8636_v19, 4 }
 0x9cd   :  { %v2852_v43 = vrot.slane %v2822_v25, 4  ;;  %v3637_v31 = vrot.slane %v3607_v50, 4 }
 0x9cf   :  { %2919 = vmatprep.mubr.f32.mxu0 %v2852_v43  ;;  %3704 = vmatprep.mubr.f32.mxu1 %v3637_v31  ;;  %v8642_v10 = vpop.f32.mrb[22].mxu0  ;;  %v8644_v36 = vpop.f32.mrb[26].mxu1 }
 0x9d0   :  { %2920 = vmatmul.mubr.f32.vlgmr.msra.gmra.mrb[30].mxu0 %v2851_v1  ;;  %3705 = vmatmul.mubr.f32.vlgmr.msra.gmra.mrb[34].mxu1 %v3636_v30  ;;  %v8646_v38 = vpop.f32.mrb[23].mxu0  ;;  %v8648_v13 = vpop.f32.mrb[27].mxu1  ;;  %v10371_v1 = vld [vmem:[#allocation84_spill] sm:$0xff] }
 0x9d1   :  { %5695 = vmatpush1.bf16.msra.mxu0 %v7307_v58  ;;  %6271 = vmatpush1.bf16.msra.mxu1 %v7307_v58  ;;  %v10346_v58 = vld [vmem:[#allocation56_spill] sm:$0xff] }
 0x9d2   :  { %5697 = vmatprep.subr.bf16.mxu0 %v7310_v2  ;;  %6273 = vmatprep.subr.bf16.mxu1 %v7310_v2  ;;  %v10347_v2 = vld [vmem:[#allocation57_spill] sm:$0xff] }
 0x9d3   :  { %2990 = vmatprep.mubr.f32.mxu0 %v2822_v25  ;;  %3775 = vmatprep.mubr.f32.mxu1 %v3607_v50  ;;  %v10370_v25 = vld [vmem:[#allocation83_spill] sm:$0xff] }
 0x9d4   :  { %v8728_v47 = vpop.f32.mrb[24].mxu0  ;;  %v8742_v18 = vpop.f32.mrb[28].mxu1 }
 0x9d5   :  { %5699 = vmatpush1.bf16.msra.mxu0 %v7317_v17  ;;  %6275 = vmatpush1.bf16.msra.mxu1 %v7317_v17  ;;  %v10348_v17 = vld [vmem:[#allocation58_spill] sm:$0xff] }
 0x9d6   :  { %5701 = vmatprep.subr.bf16.mxu0 %v7320_v20  ;;  %6277 = vmatprep.subr.bf16.mxu1 %v7320_v20  ;;  %v10349_v20 = vld [vmem:[#allocation59_spill] sm:$0xff] }
 0x9d9   :  { %5703 = vmatpush1.bf16.msra.mxu0 %v7323_v29  ;;  %6279 = vmatpush1.bf16.msra.mxu1 %v7323_v29  ;;  %v10350_v29 = vld [vmem:[#allocation60_spill] sm:$0xff] }
 0x9da   :  { %5705 = vmatprep.subr.bf16.mxu0 %v7326_v32  ;;  %6281 = vmatprep.subr.bf16.mxu1 %v7326_v32  ;;  %v10351_v32 = vld [vmem:[#allocation61_spill] sm:$0xff] }
 0x9dd   :  { %5707 = vmatpush1.bf16.msra.mxu0 %v10090_v46  ;;  %6283 = vmatpush1.bf16.msra.mxu1 %v10090_v46  ;;  %v10352_v46 = vld [vmem:[#allocation62_spill] sm:$0xff] }
 0x9de   :  { %5709 = vmatprep.subr.bf16.mxu0 %v10091_v54  ;;  %6285 = vmatprep.subr.bf16.mxu1 %v10091_v54  ;;  %v10353_v54 = vld [vmem:[#allocation64_spill] sm:$0xff] }
 0x9e1   :  { %5711 = vmatpush1.bf16.msra.mxu0 %v10092_v61  ;;  %6287 = vmatpush1.bf16.msra.mxu1 %v10092_v61  ;;  %v10354_v61 = vld [vmem:[#allocation65_spill] sm:$0xff] }
 0x9e2   :  { %5713 = vmatprep.subr.bf16.mxu0 %v10093_v4  ;;  %6289 = vmatprep.subr.bf16.mxu1 %v10093_v4  ;;  %v10355_v4 = vld [vmem:[#allocation66_spill] sm:$0xff] }
 0x9e5   :  { %5715 = vmatpush1.bf16.msra.mxu0 %v10094_v37  ;;  %6291 = vmatpush1.bf16.msra.mxu1 %v10094_v37  ;;  %v10356_v37 = vld [vmem:[#allocation67_spill] sm:$0xff] }
 0x9e6   :  { %5717 = vmatprep.subr.bf16.mxu0 %v10095_v6  ;;  %6293 = vmatprep.subr.bf16.mxu1 %v10095_v6  ;;  %v10357_v6 = vld [vmem:[#allocation68_spill] sm:$0xff] }
 0x9e9   :  { %5719 = vmatpush1.bf16.msra.mxu0 %v10096_v7  ;;  %6295 = vmatpush1.bf16.msra.mxu1 %v10096_v7  ;;  %v10358_v7 = vld [vmem:[#allocation70_spill] sm:$0xff] }
 0x9ea   :  { %5721 = vmatprep.subr.bf16.mxu0 %v10097_v39  ;;  %6297 = vmatprep.subr.bf16.mxu1 %v10097_v39  ;;  %v10359_v39 = vld [vmem:[#allocation71_spill] sm:$0xff] }
 0x9ed   :  { %5723 = vmatpush1.bf16.msra.mxu0 %v10346_v58  ;;  %6299 = vmatpush1.bf16.msra.mxu1 %v10346_v58  ;;  %v10372_v58 = vld [vmem:[#allocation85_spill] sm:$0xff] }
 0x9ee   :  { %5725 = vmatprep.subr.bf16.mxu0 %v10347_v2  ;;  %6301 = vmatprep.subr.bf16.mxu1 %v10347_v2 }
 0x9f1   :  { %5727 = vmatpush1.bf16.msra.mxu0 %v10348_v17  ;;  %6303 = vmatpush1.bf16.msra.mxu1 %v10348_v17 }
 0x9f2   :  { %5729 = vmatprep.subr.bf16.mxu0 %v10349_v20  ;;  %6305 = vmatprep.subr.bf16.mxu1 %v10349_v20  ;;  %v10373_v20 = vld [vmem:[#allocation86_spill] sm:$0xff] }
 0x9f5   :  { %5731 = vmatpush1.bf16.msra.mxu0 %v10350_v29  ;;  %6307 = vmatpush1.bf16.msra.mxu1 %v10350_v29  ;;  %v10374_v29 = vld [vmem:[#allocation87_spill] sm:$0xff] }
 0x9f6   :  { %5733 = vmatprep.subr.bf16.mxu0 %v10351_v32  ;;  %6309 = vmatprep.subr.bf16.mxu1 %v10351_v32  ;;  %v10375_v32 = vld [vmem:[#allocation88_spill] sm:$0xff] }
 0x9f9   :  { %5735 = vmatpush1.bf16.msra.mxu0 %v10352_v46  ;;  %6311 = vmatpush1.bf16.msra.mxu1 %v10352_v46  ;;  %v10376_v46 = vld [vmem:[#allocation89_spill] sm:$0xff] }
 0x9fa   :  { %5737 = vmatprep.subr.bf16.mxu0 %v10105_v14  ;;  %6313 = vmatprep.subr.bf16.mxu1 %v10105_v14  ;;  %v10360_v14 = vld [vmem:[#allocation72_spill] sm:$0xff] }
 0x9fd   :  { %5739 = vmatpush1.bf16.msra.mxu0 %v10353_v54  ;;  %6315 = vmatpush1.bf16.msra.mxu1 %v10353_v54  ;;  %v10377_v54 = vld [vmem:[#allocation90_spill] sm:$0xff] }
 0x9fe   :  { %5741 = vmatprep.subr.bf16.mxu0 %v10354_v61  ;;  %6317 = vmatprep.subr.bf16.mxu1 %v10354_v61  ;;  %v10378_v61 = vld [vmem:[#allocation91_spill] sm:$0xff] }
 0xa01   :  { %5743 = vmatpush1.bf16.msra.mxu0 %v10355_v4  ;;  %6319 = vmatpush1.bf16.msra.mxu1 %v10355_v4  ;;  %v10379_v4 = vld [vmem:[#allocation92_spill] sm:$0xff] }
 0xa02   :  { %5745 = vmatprep.subr.bf16.mxu0 %v10356_v37  ;;  %6321 = vmatprep.subr.bf16.mxu1 %v10356_v37  ;;  %v10380_v37 = vld [vmem:[#allocation93_spill] sm:$0xff] }
 0xa05   :  { %5747 = vmatpush1.bf16.msra.mxu0 %v10357_v6  ;;  %6323 = vmatpush1.bf16.msra.mxu1 %v10357_v6  ;;  %v10381_v6 = vld [vmem:[#allocation94_spill] sm:$0xff] }
 0xa06   :  { %5749 = vmatprep.subr.bf16.mxu0 %v10111_v63  ;;  %6325 = vmatprep.subr.bf16.mxu1 %v10111_v63  ;;  %v10362_v63 = vld [vmem:[#allocation74_spill] sm:$0xff] }
 0xa09   :  { %5751 = vmatpush1.bf16.msra.mxu0 %v10358_v7  ;;  %6327 = vmatpush1.bf16.msra.mxu1 %v10358_v7  ;;  %v10382_v7 = vld [vmem:[#allocation95_spill] sm:$0xff] }
 0xa0a   :  { %5753 = vmatprep.subr.bf16.mxu0 %v10359_v39  ;;  %6329 = vmatprep.subr.bf16.mxu1 %v10359_v39  ;;  %v10383_v39 = vld [vmem:[#allocation97_spill] sm:$0xff] }
 0xa0d   :  { %5755 = vmatpush1.bf16.msra.mxu0 %v10360_v14  ;;  %6331 = vmatpush1.bf16.msra.mxu1 %v10360_v14  ;;  %v10384_v14 = vld [vmem:[#allocation98_spill] sm:$0xff] }
 0xa0e   :  { %5757 = vmatprep.subr.bf16.mxu0 %v10361_v55  ;;  %6333 = vmatprep.subr.bf16.mxu1 %v10361_v55  ;;  %v10385_v55 = vld [vmem:[#allocation99_spill] sm:$0xff] }
 0xa10   :  { %2991 = vmatmul.mubr.f32.vlgmr.msra.gmra.mrb[30].mxu0 %v8636_v19  ;;  %3776 = vmatmul.mubr.f32.vlgmr.msra.gmra.mrb[34].mxu1 %v8638_v24  ;;  %v8744_v19 = vpop.f32.mrb[29].mxu1  ;;  %v10369_v24 = vld [vmem:[#allocation82_spill] sm:$0xff] }
 0xa11   :  { %5759 = vmatpush1.bf16.msra.mxu0 %v10362_v63  ;;  %6335 = vmatpush1.bf16.msra.mxu1 %v10362_v63  ;;  %v8754_v43 = vpop.f32.mrb[30].mxu1  ;;  %v10386_v63 = vld [vmem:[#allocation100_spill] sm:$0xff] }
 0xa12   :  { %5761 = vmatprep.subr.bf16.mxu0 %v10117_v16  ;;  %6337 = vmatprep.subr.bf16.mxu1 %v10117_v16  ;;  %v8732_v16 = vpop.f32.mrb[25].mxu0  ;;  %v8756_v31 = vpop.f32.mrb[31].mxu1 }
 0xa13   :  { %3061 = vmatprep.mubr.f32.mxu0 %v8646_v38  ;;  %3846 = vmatprep.mubr.f32.mxu1 %v8648_v13  ;;  %v8736_v44 = vpop.f32.mrb[26].mxu0  ;;  %v8762_v2 = vpop.f32.mrb[32].mxu1 }
 0xa14   :  { %v8740_v28 = vpop.f32.mrb[27].mxu0  ;;  %v8764_v17 = vpop.f32.mrb[33].mxu1 }
 0xa15   :  { %5763 = vmatpush1.bf16.msra.mxu0 %v10363_v57  ;;  %6339 = vmatpush1.bf16.msra.mxu1 %v10363_v57  ;;  %v8748_v30 = vpop.f32.mrb[28].mxu0  ;;  %v10387_v57 = vld [vmem:[#allocation101_spill] sm:$0xff] }
 0xa16   :  { %5765 = vmatprep.subr.bf16.mxu0 %v10364_v42  ;;  %6341 = vmatprep.subr.bf16.mxu1 %v10364_v42  ;;  %v8752_v50 = vpop.f32.mrb[29].mxu0  ;;  %v10389_v42 = vld [vmem:[#allocation103_spill] sm:$0xff] }
 0xa19   :  { %5767 = vmatpush1.bf16.msra.mxu0 %v10365_v23  ;;  %6343 = vmatpush1.bf16.msra.mxu1 %v10365_v23  ;;  %v10390_v23 = vld [vmem:[#allocation104_spill] sm:$0xff] }
 0xa1a   :  { %5769 = vmatprep.subr.bf16.mxu0 %v10366_v49  ;;  %6345 = vmatprep.subr.bf16.mxu1 %v10366_v49  ;;  %v10391_v49 = vld [vmem:[#allocation105_spill] sm:$0xff] }
 0xa1d   :  { %5771 = vmatpush1.bf16.msra.mxu0 %v10367_v48  ;;  %6347 = vmatpush1.bf16.msra.mxu1 %v10367_v48  ;;  %v3073_v48 = vrot.slane %v8646_v38, 4  ;;  %v10395_v38 = vld [vmem:[#allocation109_spill] sm:$0xff] }
 0xa1e   :  { %5773 = vmatprep.subr.bf16.mxu0 %v10368_v21  ;;  %6349 = vmatprep.subr.bf16.mxu1 %v10368_v21  ;;  %v3858_v21 = vrot.slane %v8648_v13, 4  ;;  %v10396_v13 = vld [vmem:[#allocation110_spill] sm:$0xff] }
 0xa21   :  { %5775 = vmatpush1.bf16.msra.mxu0 %v10369_v24  ;;  %6351 = vmatpush1.bf16.msra.mxu1 %v10369_v24  ;;  %v10392_v24 = vld [vmem:[#allocation106_spill] sm:$0xff] }
 0xa22   :  { %5777 = vmatprep.subr.bf16.mxu0 %v10370_v25  ;;  %6353 = vmatprep.subr.bf16.mxu1 %v10370_v25  ;;  %v10393_v25 = vld [vmem:[#allocation107_spill] sm:$0xff] }
 0xa25   :  { %5779 = vmatpush1.bf16.msra.mxu0 %v10371_v1  ;;  %6355 = vmatpush1.bf16.msra.mxu1 %v10371_v1  ;;  %v10394_v1 = vld [vmem:[#allocation108_spill] sm:$0xff] }
 0xa26   :  { %5781 = vmatprep.subr.bf16.mxu0 %v10372_v58  ;;  %6357 = vmatprep.subr.bf16.mxu1 %v10372_v58  ;;  %v10397_v58 = vld [vmem:[#allocation111_spill] sm:$0xff] }
 0xa29   :  { %5783 = vmatpush1.bf16.msra.mxu0 %v10373_v20  ;;  %6359 = vmatpush1.bf16.msra.mxu1 %v10373_v20  ;;  %v10398_v20 = vld [vmem:[#allocation112_spill] sm:$0xff] }
 0xa2a   :  { %5785 = vmatprep.subr.bf16.mxu0 %v10374_v29  ;;  %6361 = vmatprep.subr.bf16.mxu1 %v10374_v29  ;;  %v10399_v29 = vld [vmem:[#allocation113_spill] sm:$0xff] }
 0xa2d   :  { %5787 = vmatpush1.bf16.msra.mxu0 %v10375_v32  ;;  %6363 = vmatpush1.bf16.msra.mxu1 %v10375_v32  ;;  %v10400_v32 = vld [vmem:[#allocation114_spill] sm:$0xff] }
 0xa2e   :  { %5789 = vmatprep.subr.bf16.mxu0 %v10376_v46  ;;  %6365 = vmatprep.subr.bf16.mxu1 %v10376_v46  ;;  %v10401_v46 = vld [vmem:[#allocation115_spill] sm:$0xff] }
 0xa31   :  { %5791 = vmatpush1.bf16.msra.mxu0 %v10377_v54  ;;  %6367 = vmatpush1.bf16.msra.mxu1 %v10377_v54  ;;  %v10402_v54 = vld [vmem:[#allocation116_spill] sm:$0xff] }
 0xa32   :  { %5793 = vmatprep.subr.bf16.mxu0 %v10378_v61  ;;  %6369 = vmatprep.subr.bf16.mxu1 %v10378_v61  ;;  %v10403_v61 = vld [vmem:[#allocation117_spill] sm:$0xff] }
 0xa35   :  { %5795 = vmatpush1.bf16.msra.mxu0 %v10379_v4  ;;  %6371 = vmatpush1.bf16.msra.mxu1 %v10379_v4  ;;  %v10404_v4 = vld [vmem:[#allocation118_spill] sm:$0xff] }
 0xa36   :  { %5797 = vmatprep.subr.bf16.mxu0 %v10380_v37  ;;  %6373 = vmatprep.subr.bf16.mxu1 %v10380_v37  ;;  %v10405_v37 = vld [vmem:[#allocation119_spill] sm:$0xff] }
 0xa39   :  { %5799 = vmatpush1.bf16.msra.mxu0 %v10381_v6  ;;  %6375 = vmatpush1.bf16.msra.mxu1 %v10381_v6  ;;  %v10406_v6 = vld [vmem:[#allocation120_spill] sm:$0xff] }
 0xa3a   :  { %5801 = vmatprep.subr.bf16.mxu0 %v10382_v7  ;;  %6377 = vmatprep.subr.bf16.mxu1 %v10382_v7  ;;  %v10407_v7 = vld [vmem:[#allocation121_spill] sm:$0xff] }
 0xa3d   :  { %5803 = vmatpush1.bf16.msra.mxu0 %v10136_v9  ;;  %6379 = vmatpush1.bf16.msra.mxu1 %v10136_v9  ;;  %v10388_v9 = vld [vmem:[#allocation102_spill] sm:$0xff] }
 0xa3e   :  { %5805 = vmatprep.subr.bf16.mxu0 %v10383_v39  ;;  %6381 = vmatprep.subr.bf16.mxu1 %v10383_v39  ;;  %v10408_v39 = vld [vmem:[#allocation122_spill] sm:$0xff] }
 0xa41   :  { %5807 = vmatpush1.bf16.msra.mxu0 %v10384_v14  ;;  %6383 = vmatpush1.bf16.msra.mxu1 %v10384_v14  ;;  %v10409_v14 = vld [vmem:[#allocation123_spill] sm:$0xff] }
 0xa42   :  { %5809 = vmatprep.subr.bf16.mxu0 %v10385_v55  ;;  %6385 = vmatprep.subr.bf16.mxu1 %v10385_v55  ;;  %v10410_v55 = vld [vmem:[#allocation124_spill] sm:$0xff] }
 0xa45   :  { %5811 = vmatpush1.bf16.msra.mxu0 %v10386_v63  ;;  %6387 = vmatpush1.bf16.msra.mxu1 %v10386_v63  ;;  %v10411_v63 = vld [vmem:[#allocation126_spill] sm:$0xff] }
 0xa46   :  { %5813 = vmatprep.subr.bf16.mxu0 %v10387_v57  ;;  %6389 = vmatprep.subr.bf16.mxu1 %v10387_v57  ;;  %v10412_v57 = vld [vmem:[#allocation127_spill] sm:$0xff] }
 0xa49   :  { %5815 = vmatpush1.bf16.msra.mxu0 %v10388_v9  ;;  %6391 = vmatpush1.bf16.msra.mxu1 %v10388_v9  ;;  %v10413_v9 = vld [vmem:[#allocation129_spill] sm:$0xff] }
 0xa4a   :  { %5817 = vmatprep.subr.bf16.mxu0 %v10389_v42  ;;  %6393 = vmatprep.subr.bf16.mxu1 %v10389_v42  ;;  %v10414_v42 = vld [vmem:[#allocation130_spill] sm:$0xff] }
 0xa4d   :  { %5819 = vmatpush1.bf16.msra.mxu0 %v10390_v23  ;;  %6395 = vmatpush1.bf16.msra.mxu1 %v10390_v23  ;;  %v10416_v23 = vld [vmem:[#allocation132_spill] sm:$0xff] }
 0xa4e   :  { %5821 = vmatprep.subr.bf16.mxu0 %v10391_v49  ;;  %6397 = vmatprep.subr.bf16.mxu1 %v10391_v49  ;;  %v10417_v49 = vld [vmem:[#allocation133_spill] sm:$0xff] }
 0xa50   :  { %3062 = vmatmul.mubr.f32.vlgmr.msra.gmra.mrb[30].mxu0 %v8642_v10  ;;  %3847 = vmatmul.mubr.f32.vlgmr.msra.gmra.mrb[34].mxu1 %v8644_v36 }
 0xa51   :  { %5823 = vmatpush1.bf16.msra.mxu0 %v10392_v24  ;;  %6399 = vmatpush1.bf16.msra.mxu1 %v10392_v24  ;;  %v3072_v24 = vrot.slane %v8642_v10, 4  ;;  %v10424_v10 = vld [vmem:[#allocation140_spill] sm:$0xff] }
 0xa52   :  { %5825 = vmatprep.subr.bf16.mxu0 %v10393_v25  ;;  %6401 = vmatprep.subr.bf16.mxu1 %v10393_v25  ;;  %v3857_v25 = vrot.slane %v8644_v36, 4  ;;  %v10425_v36 = vld [vmem:[#allocation141_spill] sm:$0xff] }
 0xa53   :  { %3140 = vmatprep.mubr.f32.mxu0 %v3073_v48  ;;  %3925 = vmatprep.mubr.f32.mxu1 %v3858_v21  ;;  %v10419_v48 = vld [vmem:[#allocation135_spill] sm:$0xff]  ;;  %v10420_v21 = vld [vmem:[#allocation136_spill] sm:$0xff] }
 0xa55   :  { %5827 = vmatpush1.bf16.msra.mxu0 %v10394_v1  ;;  %6403 = vmatpush1.bf16.msra.mxu1 %v10394_v1  ;;  %v10421_v1 = vld [vmem:[#allocation137_spill] sm:$0xff] }
 0xa56   :  { %5829 = vmatprep.subr.bf16.mxu0 %v10395_v38  ;;  %6405 = vmatprep.subr.bf16.mxu1 %v10395_v38  ;;  %v10422_v38 = vld [vmem:[#allocation138_spill] sm:$0xff] }
 0xa59   :  { %5831 = vmatpush1.bf16.msra.mxu0 %v10396_v13  ;;  %6407 = vmatpush1.bf16.msra.mxu1 %v10396_v13  ;;  %v10423_v13 = vld [vmem:[#allocation139_spill] sm:$0xff] }
 0xa5a   :  { %5833 = vmatprep.subr.bf16.mxu0 %v10397_v58  ;;  %6409 = vmatprep.subr.bf16.mxu1 %v10397_v58  ;;  %v10426_v58 = vld [vmem:[#allocation142_spill] sm:$0xff] }
 0xa5d   :  { %5835 = vmatpush1.bf16.msra.mxu0 %v10398_v20  ;;  %6411 = vmatpush1.bf16.msra.mxu1 %v10398_v20  ;;  %v10427_v20 = vld [vmem:[#allocation143_spill] sm:$0xff] }
 0xa5e   :  { %5837 = vmatprep.subr.bf16.mxu0 %v10399_v29  ;;  %6413 = vmatprep.subr.bf16.mxu1 %v10399_v29  ;;  %v10428_v29 = vld [vmem:[#allocation144_spill] sm:$0xff] }
 0xa61   :  { %5839 = vmatpush1.bf16.msra.mxu0 %v10400_v32  ;;  %6415 = vmatpush1.bf16.msra.mxu1 %v10400_v32  ;;  %v10429_v32 = vld [vmem:[#allocation145_spill] sm:$0xff] }
 0xa62   :  { %5841 = vmatprep.subr.bf16.mxu0 %v10401_v46  ;;  %6417 = vmatprep.subr.bf16.mxu1 %v10401_v46  ;;  %v10430_v46 = vld [vmem:[#allocation146_spill] sm:$0xff] }
 0xa65   :  { %5843 = vmatpush1.bf16.msra.mxu0 %v10402_v54  ;;  %6419 = vmatpush1.bf16.msra.mxu1 %v10402_v54  ;;  %v10431_v54 = vld [vmem:[#allocation147_spill] sm:$0xff] }
 0xa66   :  { %5845 = vmatprep.subr.bf16.mxu0 %v10403_v61  ;;  %6421 = vmatprep.subr.bf16.mxu1 %v10403_v61  ;;  %v10432_v61 = vld [vmem:[#allocation148_spill] sm:$0xff] }
 0xa69   :  { %5847 = vmatpush1.bf16.msra.mxu0 %v10404_v4  ;;  %6423 = vmatpush1.bf16.msra.mxu1 %v10404_v4  ;;  %v10433_v4 = vld [vmem:[#allocation149_spill] sm:$0xff] }
 0xa6a   :  { %5849 = vmatprep.subr.bf16.mxu0 %v10405_v37  ;;  %6425 = vmatprep.subr.bf16.mxu1 %v10405_v37  ;;  %v10434_v37 = vld [vmem:[#allocation150_spill] sm:$0xff] }
 0xa6d   :  { %5851 = vmatpush1.bf16.msra.mxu0 %v10406_v6  ;;  %6427 = vmatpush1.bf16.msra.mxu1 %v10406_v6  ;;  %v10435_v6 = vld [vmem:[#allocation151_spill] sm:$0xff] }
 0xa6e   :  { %5853 = vmatprep.subr.bf16.mxu0 %v10407_v7  ;;  %6429 = vmatprep.subr.bf16.mxu1 %v10407_v7  ;;  %v10436_v7 = vld [vmem:[#allocation152_spill] sm:$0xff] }
 0xa71   :  { %5855 = vmatpush1.bf16.msra.mxu0 %v10408_v39  ;;  %6431 = vmatpush1.bf16.msra.mxu1 %v10408_v39  ;;  %v10437_v39 = vld [vmem:[#allocation153_spill] sm:$0xff] }
 0xa72   :  { %5857 = vmatprep.subr.bf16.mxu0 %v10409_v14  ;;  %6433 = vmatprep.subr.bf16.mxu1 %v10409_v14  ;;  %v10438_v14 = vld [vmem:[#allocation154_spill] sm:$0xff] }
 0xa75   :  { %5859 = vmatpush1.bf16.msra.mxu0 %v10410_v55  ;;  %6435 = vmatpush1.bf16.msra.mxu1 %v10410_v55  ;;  %v10439_v55 = vld [vmem:[#allocation155_spill] sm:$0xff] }
 0xa76   :  { %5861 = vmatprep.subr.bf16.mxu0 %v10165_v26  ;;  %6437 = vmatprep.subr.bf16.mxu1 %v10165_v26  ;;  %v10415_v26 = vld [vmem:[#allocation131_spill] sm:$0xff] }
 0xa79   :  { %5863 = vmatpush1.bf16.msra.mxu0 %v10411_v63  ;;  %6439 = vmatpush1.bf16.msra.mxu1 %v10411_v63  ;;  %v10440_v63 = vld [vmem:[#allocation156_spill] sm:$0xff] }
 0xa7a   :  { %5865 = vmatprep.subr.bf16.mxu0 %v10412_v57  ;;  %6441 = vmatprep.subr.bf16.mxu1 %v10412_v57  ;;  %v10441_v57 = vld [vmem:[#allocation157_spill] sm:$0xff] }
 0xa7d   :  { %5867 = vmatpush1.bf16.msra.mxu0 %v10168_v8  ;;  %6443 = vmatpush1.bf16.msra.mxu1 %v10168_v8  ;;  %v10418_v8 = vld [vmem:[#allocation134_spill] sm:$0xff] }
 0xa7e   :  { %5869 = vmatprep.subr.bf16.mxu0 %v10413_v9  ;;  %6445 = vmatprep.subr.bf16.mxu1 %v10413_v9  ;;  %v10442_v9 = vld [vmem:[#allocation158_spill] sm:$0xff] }
 0xa81   :  { %5871 = vmatpush1.bf16.msra.mxu0 %v10414_v42  ;;  %6447 = vmatpush1.bf16.msra.mxu1 %v10414_v42  ;;  %v10443_v42 = vld [vmem:[#allocation160_spill] sm:$0xff] }
 0xa82   :  { %5873 = vmatprep.subr.bf16.mxu0 %v10415_v26  ;;  %6449 = vmatprep.subr.bf16.mxu1 %v10415_v26  ;;  %v10444_v26 = vld [vmem:[#allocation161_spill] sm:$0xff] }
 0xa85   :  { %5875 = vmatpush1.bf16.msra.mxu0 %v10416_v23  ;;  %6451 = vmatpush1.bf16.msra.mxu1 %v10416_v23  ;;  %v10445_v23 = vld [vmem:[#allocation162_spill] sm:$0xff] }
 0xa86   :  { %5877 = vmatprep.subr.bf16.mxu0 %v10417_v49  ;;  %6453 = vmatprep.subr.bf16.mxu1 %v10417_v49  ;;  %v10446_v49 = vld [vmem:[#allocation163_spill] sm:$0xff] }
 0xa89   :  { %5879 = vmatpush1.bf16.msra.mxu0 %v10418_v8  ;;  %6455 = vmatpush1.bf16.msra.mxu1 %v10418_v8  ;;  %v10447_v8 = vld [vmem:[#allocation164_spill] sm:$0xff] }
 0xa8a   :  { %5881 = vmatprep.subr.bf16.mxu0 %v10419_v48  ;;  %6457 = vmatprep.subr.bf16.mxu1 %v10419_v48  ;;  %v10449_v48 = vld [vmem:[#allocation166_spill] sm:$0xff] }
 0xa8d   :  { %5883 = vmatpush1.bf16.msra.mxu0 %v10420_v21  ;;  %6459 = vmatpush1.bf16.msra.mxu1 %v10420_v21  ;;  %v10450_v21 = vld [vmem:[#allocation167_spill] sm:$0xff] }
 0xa8e   :  { %5885 = vmatprep.subr.bf16.mxu0 %v10421_v1  ;;  %6461 = vmatprep.subr.bf16.mxu1 %v10421_v1  ;;  %v3225_v1 = vrot.slane %v8732_v16, 4 }
 0xa90   :  { %3141 = vmatmul.mubr.f32.vlgmr.msra.gmra.mrb[30].mxu0 %v3072_v24  ;;  %3926 = vmatmul.mubr.f32.vlgmr.msra.gmra.mrb[34].mxu1 %v3857_v25  ;;  %v10451_v24 = vld [vmem:[#allocation168_spill] sm:$0xff]  ;;  %v10452_v25 = vld [vmem:[#allocation169_spill] sm:$0xff] }
 0xa91   :  { %5887 = vmatpush1.bf16.msra.mxu0 %v10422_v38  ;;  %6463 = vmatpush1.bf16.msra.mxu1 %v10422_v38  ;;  %v4010_v38 = vrot.slane %v8744_v19, 4 }
 0xa92   :  { %5889 = vmatprep.subr.bf16.mxu0 %v10423_v13  ;;  %6465 = vmatprep.subr.bf16.mxu1 %v10423_v13  ;;  %v10453_v13 = vld [vmem:[#allocation170_spill] sm:$0xff] }
 0xa93   :  { %3213 = vmatprep.mubr.f32.mxu0 %v8732_v16  ;;  %3998 = vmatprep.mubr.f32.mxu1 %v8744_v19  ;;  %v10456_v16 = vld [vmem:[#allocation173_spill] sm:$0xff]  ;;  %v10457_v19 = vld [vmem:[#allocation174_spill] sm:$0xff] }
 0xa95   :  { %5891 = vmatpush1.bf16.msra.mxu0 %v10424_v10  ;;  %6467 = vmatpush1.bf16.msra.mxu1 %v10424_v10  ;;  %v10454_v10 = vld [vmem:[#allocation171_spill] sm:$0xff] }
 0xa96   :  { %5893 = vmatprep.subr.bf16.mxu0 %v10425_v36  ;;  %6469 = vmatprep.subr.bf16.mxu1 %v10425_v36  ;;  %v10455_v36 = vld [vmem:[#allocation172_spill] sm:$0xff] }
 0xa99   :  { %5895 = vmatpush1.bf16.msra.mxu0 %v10426_v58  ;;  %6471 = vmatpush1.bf16.msra.mxu1 %v10426_v58  ;;  %v10458_v58 = vld [vmem:[#allocation175_spill] sm:$0xff] }
 0xa9a   :  { %5897 = vmatprep.subr.bf16.mxu0 %v10427_v20  ;;  %6473 = vmatprep.subr.bf16.mxu1 %v10427_v20  ;;  %v10459_v20 = vld [vmem:[#allocation176_spill] sm:$0xff] }
 0xa9d   :  { %5899 = vmatpush1.bf16.msra.mxu0 %v10428_v29  ;;  %6475 = vmatpush1.bf16.msra.mxu1 %v10428_v29  ;;  %v10460_v29 = vld [vmem:[#allocation177_spill] sm:$0xff] }
 0xa9e   :  { %5901 = vmatprep.subr.bf16.mxu0 %v10429_v32  ;;  %6477 = vmatprep.subr.bf16.mxu1 %v10429_v32  ;;  %v10461_v32 = vld [vmem:[#allocation178_spill] sm:$0xff] }
 0xaa1   :  { %5903 = vmatpush1.bf16.msra.mxu0 %v10430_v46  ;;  %6479 = vmatpush1.bf16.msra.mxu1 %v10430_v46  ;;  %v10462_v46 = vld [vmem:[#allocation179_spill] sm:$0xff] }
 0xaa2   :  { %5905 = vmatprep.subr.bf16.mxu0 %v10431_v54  ;;  %6481 = vmatprep.subr.bf16.mxu1 %v10431_v54  ;;  %v10463_v54 = vld [vmem:[#allocation180_spill] sm:$0xff] }
 0xaa5   :  { %5907 = vmatpush1.bf16.msra.mxu0 %v10432_v61  ;;  %6483 = vmatpush1.bf16.msra.mxu1 %v10432_v61  ;;  %v10464_v61 = vld [vmem:[#allocation181_spill] sm:$0xff] }
 0xaa6   :  { %5909 = vmatprep.subr.bf16.mxu0 %v10433_v4  ;;  %6485 = vmatprep.subr.bf16.mxu1 %v10433_v4  ;;  %v10465_v4 = vld [vmem:[#allocation182_spill] sm:$0xff] }
 0xaa9   :  { %5911 = vmatpush1.bf16.msra.mxu0 %v10434_v37  ;;  %6487 = vmatpush1.bf16.msra.mxu1 %v10434_v37  ;;  %v10466_v37 = vld [vmem:[#allocation183_spill] sm:$0xff] }
 0xaaa   :  { %5913 = vmatprep.subr.bf16.mxu0 %v10435_v6  ;;  %6489 = vmatprep.subr.bf16.mxu1 %v10435_v6  ;;  %v10467_v6 = vld [vmem:[#allocation184_spill] sm:$0xff] }
 0xaad   :  { %5915 = vmatpush1.bf16.msra.mxu0 %v10436_v7  ;;  %6491 = vmatpush1.bf16.msra.mxu1 %v10436_v7  ;;  %v10468_v7 = vld [vmem:[#allocation185_spill] sm:$0xff] }
 0xaae   :  { %5917 = vmatprep.subr.bf16.mxu0 %v10437_v39  ;;  %6493 = vmatprep.subr.bf16.mxu1 %v10437_v39  ;;  %v10469_v39 = vld [vmem:[#allocation186_spill] sm:$0xff] }
 0xab1   :  { %5919 = vmatpush1.bf16.msra.mxu0 %v10438_v14  ;;  %6495 = vmatpush1.bf16.msra.mxu1 %v10438_v14  ;;  %v10470_v14 = vld [vmem:[#allocation187_spill] sm:$0xff] }
 0xab2   :  { %5921 = vmatprep.subr.bf16.mxu0 %v10439_v55  ;;  %6497 = vmatprep.subr.bf16.mxu1 %v10439_v55  ;;  %v10471_v55 = vld [vmem:[#allocation188_spill] sm:$0xff] }
 0xab5   :  { %5923 = vmatpush1.bf16.msra.mxu0 %v10440_v63  ;;  %6499 = vmatpush1.bf16.msra.mxu1 %v10440_v63  ;;  %v10472_v63 = vld [vmem:[#allocation189_spill] sm:$0xff] }
 0xab6   :  { %5925 = vmatprep.subr.bf16.mxu0 %v10441_v57  ;;  %6501 = vmatprep.subr.bf16.mxu1 %v10441_v57  ;;  %v10473_v57 = vld [vmem:[#allocation190_spill] sm:$0xff] }
 0xab9   :  { %5927 = vmatpush1.bf16.msra.mxu0 %v10442_v9  ;;  %6503 = vmatpush1.bf16.msra.mxu1 %v10442_v9  ;;  %v10474_v9 = vld [vmem:[#allocation191_spill] sm:$0xff] }
 0xaba   :  { %5929 = vmatprep.subr.bf16.mxu0 %v10198_v52  ;;  %6505 = vmatprep.subr.bf16.mxu1 %v10198_v52  ;;  %v10448_v52 = vld [vmem:[#allocation165_spill] sm:$0xff] }
 0xabd   :  { %5931 = vmatpush1.bf16.msra.mxu0 %v10443_v42  ;;  %6507 = vmatpush1.bf16.msra.mxu1 %v10443_v42  ;;  %v10475_v42 = vld [vmem:[#allocation193_spill] sm:$0xff] }
 0xabe   :  { %5933 = vmatprep.subr.bf16.mxu0 %v10444_v26  ;;  %6509 = vmatprep.subr.bf16.mxu1 %v10444_v26  ;;  %v10476_v26 = vld [vmem:[#allocation194_spill] sm:$0xff] }
 0xac1   :  { %5935 = vmatpush1.bf16.msra.mxu0 %v10445_v23  ;;  %6511 = vmatpush1.bf16.msra.mxu1 %v10445_v23  ;;  %v10477_v23 = vld [vmem:[#allocation195_spill] sm:$0xff] }
 0xac2   :  { %5937 = vmatprep.subr.bf16.mxu0 %v10446_v49  ;;  %6513 = vmatprep.subr.bf16.mxu1 %v10446_v49  ;;  %v10478_v49 = vld [vmem:[#allocation196_spill] sm:$0xff] }
 0xac5   :  { %5939 = vmatpush1.bf16.msra.mxu0 %v10447_v8  ;;  %6515 = vmatpush1.bf16.msra.mxu1 %v10447_v8  ;;  %v10479_v8 = vld [vmem:[#allocation197_spill] sm:$0xff] }
 0xac6   :  { %5941 = vmatprep.subr.bf16.mxu0 %v10448_v52  ;;  %6517 = vmatprep.subr.bf16.mxu1 %v10448_v52  ;;  %v10481_v52 = vld [vmem:[#allocation199_spill] sm:$0xff] }
 0xac9   :  { %5943 = vmatpush1.bf16.msra.mxu0 %v10449_v48  ;;  %6519 = vmatpush1.bf16.msra.mxu1 %v10449_v48  ;;  %v10482_v48 = vld [vmem:[#allocation200_spill] sm:$0xff] }
 0xaca   :  { %5945 = vmatprep.subr.bf16.mxu0 %v10450_v21  ;;  %6521 = vmatprep.subr.bf16.mxu1 %v10450_v21  ;;  %v3224_v21 = vrot.slane %v8728_v47, 4 }
 0xacd   :  { %5947 = vmatpush1.bf16.msra.mxu0 %v10451_v24  ;;  %6523 = vmatpush1.bf16.msra.mxu1 %v10451_v24  ;;  %v10483_v24 = vld [vmem:[#allocation201_spill] sm:$0xff] }
 0xace   :  { %5949 = vmatprep.subr.bf16.mxu0 %v10452_v25  ;;  %6525 = vmatprep.subr.bf16.mxu1 %v10452_v25  ;;  %v4009_v25 = vrot.slane %v8742_v18, 4 }
 0xad0   :  { %3214 = vmatmul.mubr.f32.vlgmr.msra.gmra.mrb[30].mxu0 %v8728_v47  ;;  %3999 = vmatmul.mubr.f32.vlgmr.msra.gmra.mrb[34].mxu1 %v8742_v18  ;;  %v10486_v47 = vld [vmem:[#allocation204_spill] sm:$0xff]  ;;  %v10487_v18 = vld [vmem:[#allocation205_spill] sm:$0xff] }
 0xad1   :  { %5951 = vmatpush1.bf16.msra.mxu0 %v10453_v13  ;;  %3292 = vmatprep.mubr.f32.mxu0 %v3225_v1  ;;  %v10484_v1 = vld [vmem:[#allocation202_spill] sm:$0xff] }
 0xad2   :  { %6527 = vmatpush1.bf16.msra.mxu1 %v10453_v13  ;;  %4077 = vmatprep.mubr.f32.mxu1 %v4010_v38  ;;  %v10485_v38 = vld [vmem:[#allocation203_spill] sm:$0xff]  ;;  %v10488_v13 = vld [vmem:[#allocation206_spill] sm:$0xff] }
 0xad3   :  { %5953 = vmatprep.subr.bf16.mxu0 %v10454_v10  ;;  %6529 = vmatprep.subr.bf16.mxu1 %v10454_v10  ;;  %v10489_v10 = vld [vmem:[#allocation207_spill] sm:$0xff] }
 0xad5   :  { %5955 = vmatpush1.bf16.msra.mxu0 %v10455_v36 }
 0xad6   :  { %6531 = vmatpush1.bf16.msra.mxu1 %v10455_v36  ;;  %5957 = vmatprep.subr.bf16.mxu0 %v10456_v16  ;;  %v10490_v36 = vld [vmem:[#allocation208_spill] sm:$0xff] }
 0xad7   :  { %6533 = vmatprep.subr.bf16.mxu1 %v10456_v16  ;;  %v10491_v16 = vld [vmem:[#allocation209_spill] sm:$0xff] }
 0xad9   :  { %5959 = vmatpush1.bf16.msra.mxu0 %v10457_v19 }
 0xada   :  { %6535 = vmatpush1.bf16.msra.mxu1 %v10457_v19  ;;  %5961 = vmatprep.subr.bf16.mxu0 %v10458_v58  ;;  %v10492_v19 = vld [vmem:[#allocation210_spill] sm:$0xff] }
 0xadb   :  { %6537 = vmatprep.subr.bf16.mxu1 %v10458_v58  ;;  %v10493_v58 = vld [vmem:[#allocation211_spill] sm:$0xff] }
 0xadd   :  { %5963 = vmatpush1.bf16.msra.mxu0 %v10459_v20 }
 0xade   :  { %6539 = vmatpush1.bf16.msra.mxu1 %v10459_v20  ;;  %5965 = vmatprep.subr.bf16.mxu0 %v10460_v29  ;;  %v10494_v20 = vld [vmem:[#allocation212_spill] sm:$0xff] }
 0xadf   :  { %6541 = vmatprep.subr.bf16.mxu1 %v10460_v29  ;;  %v10514_v29 = vld [vmem:[#allocation243_spill] sm:$0xff] }
 0xae1   :  { %5967 = vmatpush1.bf16.msra.mxu0 %v10461_v32 }
 0xae2   :  { %6543 = vmatpush1.bf16.msra.mxu1 %v10461_v32  ;;  %5969 = vmatprep.subr.bf16.mxu0 %v10462_v46  ;;  %v10515_v32 = vld [vmem:[#allocation244_spill] sm:$0xff] }
 0xae3   :  { %6545 = vmatprep.subr.bf16.mxu1 %v10462_v46  ;;  %v10516_v46 = vld [vmem:[#allocation245_spill] sm:$0xff] }
 0xae5   :  { %5971 = vmatpush1.bf16.msra.mxu0 %v10463_v54 }
 0xae6   :  { %6547 = vmatpush1.bf16.msra.mxu1 %v10463_v54  ;;  %5973 = vmatprep.subr.bf16.mxu0 %v10464_v61  ;;  %v10517_v54 = vld [vmem:[#allocation246_spill] sm:$0xff] }
 0xae7   :  { %6549 = vmatprep.subr.bf16.mxu1 %v10464_v61  ;;  %v10518_v61 = vld [vmem:[#allocation247_spill] sm:$0xff] }
 0xae9   :  { %5975 = vmatpush1.bf16.msra.mxu0 %v10465_v4 }
 0xaea   :  { %6551 = vmatpush1.bf16.msra.mxu1 %v10465_v4  ;;  %5977 = vmatprep.subr.bf16.mxu0 %v10466_v37  ;;  %v10519_v4 = vld [vmem:[#allocation248_spill] sm:$0xff] }
 0xaeb   :  { %6553 = vmatprep.subr.bf16.mxu1 %v10466_v37  ;;  %v10520_v37 = vld [vmem:[#allocation249_spill] sm:$0xff] }
 0xaed   :  { %5979 = vmatpush1.bf16.msra.mxu0 %v10467_v6 }
 0xaee   :  { %6555 = vmatpush1.bf16.msra.mxu1 %v10467_v6  ;;  %5981 = vmatprep.subr.bf16.mxu0 %v10468_v7  ;;  %v10521_v6 = vld [vmem:[#allocation250_spill] sm:$0xff] }
 0xaef   :  { %6557 = vmatprep.subr.bf16.mxu1 %v10468_v7  ;;  %v10522_v7 = vld [vmem:[#allocation251_spill] sm:$0xff] }
 0xaf1   :  { %5983 = vmatpush1.bf16.msra.mxu0 %v10469_v39 }
 0xaf2   :  { %6559 = vmatpush1.bf16.msra.mxu1 %v10469_v39  ;;  %5985 = vmatprep.subr.bf16.mxu0 %v10470_v14  ;;  %v10523_v39 = vld [vmem:[#allocation252_spill] sm:$0xff] }
 0xaf3   :  { %6561 = vmatprep.subr.bf16.mxu1 %v10470_v14  ;;  %v10524_v14 = vld [vmem:[#allocation253_spill] sm:$0xff] }
 0xaf5   :  { %5987 = vmatpush1.bf16.msra.mxu0 %v10471_v55 }
 0xaf6   :  { %6563 = vmatpush1.bf16.msra.mxu1 %v10471_v55  ;;  %5989 = vmatprep.subr.bf16.mxu0 %v10472_v63  ;;  %v10525_v55 = vld [vmem:[#allocation254_spill] sm:$0xff] }
 0xaf7   :  { %6565 = vmatprep.subr.bf16.mxu1 %v10472_v63  ;;  %v10526_v63 = vld [vmem:[#allocation255_spill] sm:$0xff] }
 0xaf9   :  { %5991 = vmatpush1.bf16.msra.mxu0 %v10473_v57 }
 0xafa   :  { %6567 = vmatpush1.bf16.msra.mxu1 %v10473_v57  ;;  %5993 = vmatprep.subr.bf16.mxu0 %v10474_v9  ;;  %v10527_v57 = vld [vmem:[#allocation256_spill] sm:$0xff] }
 0xafb   :  { %6569 = vmatprep.subr.bf16.mxu1 %v10474_v9  ;;  %v3376_v9 = vrot.slane %v8736_v44, 4 }
 0xafd   :  { %5995 = vmatpush1.bf16.msra.mxu0 %v10231_v35 }
 0xafe   :  { %6571 = vmatpush1.bf16.msra.mxu1 %v10231_v35  ;;  %5997 = vmatprep.subr.bf16.mxu0 %v10475_v42  ;;  %v10480_v35 = vld [vmem:[#allocation198_spill] sm:$0xff] }
 0xaff   :  { %6573 = vmatprep.subr.bf16.mxu1 %v10475_v42  ;;  %v10528_v42 = vld [vmem:[#allocation257_spill] sm:$0xff] }
 0xb01   :  { %5999 = vmatpush1.bf16.msra.mxu0 %v10476_v26 }
 0xb02   :  { %6575 = vmatpush1.bf16.msra.mxu1 %v10476_v26  ;;  %6001 = vmatprep.subr.bf16.mxu0 %v10477_v23  ;;  %v4161_v26 = vrot.slane %v8754_v43, 4 }
 0xb03   :  { %6577 = vmatprep.subr.bf16.mxu1 %v10477_v23  ;;  %v10529_v23 = vld [vmem:[#allocation258_spill] sm:$0xff] }
 0xb05   :  { %6003 = vmatpush1.bf16.msra.mxu0 %v10478_v49 }
 0xb06   :  { %6579 = vmatpush1.bf16.msra.mxu1 %v10478_v49  ;;  %6005 = vmatprep.subr.bf16.mxu0 %v10479_v8  ;;  %v10530_v49 = vld [vmem:[#allocation259_spill] sm:$0xff] }
 0xb07   :  { %6581 = vmatprep.subr.bf16.mxu1 %v10479_v8  ;;  %v10533_v8 = vld [vmem:[#allocation262_spill] sm:$0xff] }
 0xb09   :  { %6007 = vmatpush1.bf16.msra.mxu0 %v10480_v35 }
 0xb0a   :  { %6583 = vmatpush1.bf16.msra.mxu1 %v10480_v35  ;;  %6009 = vmatprep.subr.bf16.mxu0 %v10481_v52  ;;  %v10536_v35 = vld [vmem:[#allocation265_spill] sm:$0xff] }
 0xb0b   :  { %6585 = vmatprep.subr.bf16.mxu1 %v10481_v52  ;;  %v10537_v52 = vld [vmem:[#allocation266_spill] sm:$0xff] }
 0xb0d   :  { %6011 = vmatpush1.bf16.msra.mxu0 %v10482_v48 }
 0xb0e   :  { %6587 = vmatpush1.bf16.msra.mxu1 %v10482_v48  ;;  %6013 = vmatprep.subr.bf16.mxu0 %v10483_v24  ;;  %v10538_v48 = vld [vmem:[#allocation267_spill] sm:$0xff] }
 0xb0f   :  { %6589 = vmatprep.subr.bf16.mxu1 %v10483_v24  ;;  %v10540_v24 = vld [vmem:[#allocation269_spill] sm:$0xff] }
 0xb10   :  { %3293 = vmatmul.mubr.f32.vlgmr.msra.gmra.mrb[30].mxu0 %v3224_v21  ;;  %v10539_v21 = vld [vmem:[#allocation268_spill] sm:$0xff] }
 0xb11   :  { %4078 = vmatmul.mubr.f32.vlgmr.msra.gmra.mrb[34].mxu1 %v4009_v25  ;;  %6015 = vmatpush1.bf16.msra.mxu0 %v10484_v1  ;;  %v10541_v25 = vld [vmem:[#allocation270_spill] sm:$0xff] }
 0xb12   :  { %3365 = vmatprep.mubr.f32.mxu0 %v8740_v28  ;;  %6591 = vmatpush1.bf16.msra.mxu1 %v10484_v1  ;;  %v10542_v1 = vld [vmem:[#allocation271_spill] sm:$0xff] }
 0xb13   :  { %4150 = vmatprep.mubr.f32.mxu1 %v8756_v31  ;;  %6017 = vmatprep.subr.bf16.mxu0 %v10485_v38 }
 0xb14   :  { %6593 = vmatprep.subr.bf16.mxu1 %v10485_v38  ;;  %v10543_v38 = vld [vmem:[#allocation272_spill] sm:$0xff] }
 0xb15   :  { %6019 = vmatpush1.bf16.msra.mxu0 %v10486_v47 }
 0xb16   :  { %6595 = vmatpush1.bf16.msra.mxu1 %v10486_v47  ;;  %6021 = vmatprep.subr.bf16.mxu0 %v10487_v18  ;;  %v10544_v47 = vld [vmem:[#allocation273_spill] sm:$0xff] }
 0xb17   :  { %6597 = vmatprep.subr.bf16.mxu1 %v10487_v18  ;;  %v10545_v18 = vld [vmem:[#allocation274_spill] sm:$0xff] }
 0xb19   :  { %6023 = vmatpush1.bf16.msra.mxu0 %v10488_v13 }
 0xb1a   :  { %6599 = vmatpush1.bf16.msra.mxu1 %v10488_v13  ;;  %6025 = vmatprep.subr.bf16.mxu0 %v10489_v10  ;;  %v10546_v13 = vld [vmem:[#allocation275_spill] sm:$0xff] }
 0xb1b   :  { %6601 = vmatprep.subr.bf16.mxu1 %v10489_v10  ;;  %v10547_v10 = vld [vmem:[#allocation276_spill] sm:$0xff] }
 0xb1d   :  { %6027 = vmatpush1.bf16.msra.mxu0 %v10490_v36 }
 0xb1e   :  { %6603 = vmatpush1.bf16.msra.mxu1 %v10490_v36  ;;  %6029 = vmatprep.subr.bf16.mxu0 %v10491_v16  ;;  %v10548_v36 = vld [vmem:[#allocation277_spill] sm:$0xff] }
 0xb1f   :  { %6605 = vmatprep.subr.bf16.mxu1 %v10491_v16  ;;  %v10549_v16 = vld [vmem:[#allocation278_spill] sm:$0xff] }
 0xb21   :  { %6031 = vmatpush1.bf16.msra.mxu0 %v10492_v19 }
 0xb22   :  { %6607 = vmatpush1.bf16.msra.mxu1 %v10492_v19  ;;  %6033 = vmatprep.subr.bf16.mxu0 %v10493_v58  ;;  %v10550_v19 = vld [vmem:[#allocation279_spill] sm:$0xff] }
 0xb23   :  { %6609 = vmatprep.subr.bf16.mxu1 %v10493_v58  ;;  %v10551_v58 = vld [vmem:[#allocation280_spill] sm:$0xff] }
 0xb25   :  { %6035 = vmatpush1.bf16.msra.mxu0 %v10494_v20 }
 0xb26   :  { %6611 = vmatpush1.bf16.msra.mxu1 %v10494_v20  ;;  %6037 = vmatprep.subr.bf16.mxu0 %v10252_v45  ;;  %v10552_v20 = vld [vmem:[#allocation281_spill] sm:$0xff] }
 0xb27   :  { %6613 = vmatprep.subr.bf16.mxu1 %v10252_v45  ;;  %v10506_v45 = vld [vmem:[#allocation235_spill] sm:$0xff] }
 0xb29   :  { %6039 = vmatpush1.bf16.msra.mxu0 %v10253_v27 }
 0xb2a   :  { %6615 = vmatpush1.bf16.msra.mxu1 %v10253_v27  ;;  %6041 = vmatprep.subr.bf16.mxu0 %v10254_v34  ;;  %v10495_v27 = vld [vmem:[#allocation224_spill] sm:$0xff] }
 0xb2b   :  { %6617 = vmatprep.subr.bf16.mxu1 %v10254_v34  ;;  %v3377_v34 = vrot.slane %v8740_v28, 4  ;;  %v10512_v28 = vld [vmem:[#allocation241_spill] sm:$0xff] }
 0xb2d   :  { %6043 = vmatpush1.bf16.msra.mxu0 %v10255_v53 }
 0xb2e   :  { %6619 = vmatpush1.bf16.msra.mxu1 %v10255_v53  ;;  %6045 = vmatprep.subr.bf16.mxu0 %v10256_v15  ;;  %v10507_v53 = vld [vmem:[#allocation236_spill] sm:$0xff] }
 0xb2f   :  { %6621 = vmatprep.subr.bf16.mxu1 %v10256_v15  ;;  %v10505_v15 = vld [vmem:[#allocation234_spill] sm:$0xff] }
 0xb31   :  { %6047 = vmatpush1.bf16.msra.mxu0 %v10257_v3 }
 0xb32   :  { %6623 = vmatpush1.bf16.msra.mxu1 %v10257_v3  ;;  %6049 = vmatprep.subr.bf16.mxu0 %v10258_v62  ;;  %v10508_v3 = vld [vmem:[#allocation237_spill] sm:$0xff] }
 0xb33   :  { %6625 = vmatprep.subr.bf16.mxu1 %v10258_v62  ;;  %v10509_v62 = vld [vmem:[#allocation238_spill] sm:$0xff] }
 0xb35   :  { %6051 = vmatpush1.bf16.msra.mxu0 %v10259_v60 }
 0xb36   :  { %6627 = vmatpush1.bf16.msra.mxu1 %v10259_v60  ;;  %6053 = vmatprep.subr.bf16.mxu0 %v10260_v0  ;;  %v10510_v60 = vld [vmem:[#allocation239_spill] sm:$0xff] }
 0xb37   :  { %6629 = vmatprep.subr.bf16.mxu1 %v10260_v0  ;;  %v10496_v0 = vld [vmem:[#allocation225_spill] sm:$0xff] }
 0xb39   :  { %6055 = vmatpush1.bf16.msra.mxu0 %v10261_v33 }
 0xb3a   :  { %6631 = vmatpush1.bf16.msra.mxu1 %v10261_v33  ;;  %6057 = vmatprep.subr.bf16.mxu0 %v10262_v12  ;;  %v10511_v33 = vld [vmem:[#allocation240_spill] sm:$0xff] }
 0xb3b   :  { %6633 = vmatprep.subr.bf16.mxu1 %v10262_v12  ;;  %v10504_v12 = vld [vmem:[#allocation233_spill] sm:$0xff] }
 0xb3d   :  { %6059 = vmatpush1.bf16.msra.mxu0 %v10495_v27 }
 0xb3e   :  { %6635 = vmatpush1.bf16.msra.mxu1 %v10495_v27  ;;  %6061 = vmatprep.subr.bf16.mxu0 %v7897_v40  ;;  %v10553_v27 = vld [vmem:[#allocation282_spill] sm:$0xff] }
 0xb3f   :  { %6637 = vmatprep.subr.bf16.mxu1 %v7897_v40  ;;  %v4162_v40 = vrot.slane %v8756_v31, 4  ;;  %v10513_v31 = vld [vmem:[#allocation242_spill] sm:$0xff] }
 0xb41   :  { %6063 = vmatpush1.bf16.msra.mxu0 %v7905_v56 }
 0xb42   :  { %6639 = vmatpush1.bf16.msra.mxu1 %v7905_v56  ;;  %6065 = vmatprep.subr.bf16.mxu0 %v7909_v59  ;;  %v10497_v56 = vld [vmem:[#allocation226_spill] sm:$0xff] }
 0xb43   :  { %6641 = vmatprep.subr.bf16.mxu1 %v7909_v59  ;;  %v10498_v59 = vld [vmem:[#allocation227_spill] sm:$0xff] }
 0xb45   :  { %6067 = vmatpush1.bf16.msra.mxu0 %v7920_v41 }
 0xb46   :  { %6643 = vmatpush1.bf16.msra.mxu1 %v7920_v41  ;;  %6069 = vmatprep.subr.bf16.mxu0 %v7924_v51  ;;  %v10499_v41 = vld [vmem:[#allocation228_spill] sm:$0xff] }
 0xb47   :  { %6645 = vmatprep.subr.bf16.mxu1 %v7924_v51  ;;  %v10500_v51 = vld [vmem:[#allocation229_spill] sm:$0xff] }
 0xb49   :  { %6071 = vmatpush1.bf16.msra.mxu0 %v7933_v22 }
 0xb4a   :  { %6647 = vmatpush1.bf16.msra.mxu1 %v7933_v22  ;;  %6073 = vmatprep.subr.bf16.mxu0 %v7937_v11  ;;  %v10501_v22 = vld [vmem:[#allocation230_spill] sm:$0xff] }
 0xb4b   :  { %6649 = vmatprep.subr.bf16.mxu1 %v7937_v11  ;;  %v10502_v11 = vld [vmem:[#allocation231_spill] sm:$0xff] }
 0xb4d   :  { %6075 = vmatpush1.bf16.msra.mxu0 %v7946_v5 }
 0xb4e   :  { %6651 = vmatpush1.bf16.msra.mxu1 %v7946_v5  ;;  %6077 = vmatprep.subr.bf16.mxu0 %v10496_v0  ;;  %v10503_v5 = vld [vmem:[#allocation232_spill] sm:$0xff] }
 0xb4f   :  { %6653 = vmatprep.subr.bf16.mxu1 %v10496_v0  ;;  %v10554_v0 = vld [vmem:[#allocation283_spill] sm:$0xff] }
 0xb50   :  { %3366 = vmatmul.mubr.f32.vlgmr.msra.gmra.mrb[30].mxu0 %v8736_v44  ;;  %v10531_v44 = vld [vmem:[#allocation260_spill] sm:$0xff] }
 0xb51   :  { %4151 = vmatmul.mubr.f32.vlgmr.msra.gmra.mrb[34].mxu1 %v8754_v43  ;;  %6079 = vmatpush1.bf16.msra.mxu0 %v10497_v56  ;;  %v10532_v43 = vld [vmem:[#allocation261_spill] sm:$0xff] }
 0xb52   :  { %3444 = vmatprep.mubr.f32.mxu0 %v3377_v34  ;;  %6655 = vmatpush1.bf16.msra.mxu1 %v10497_v56  ;;  %v10555_v34 = vld [vmem:[#allocation284_spill] sm:$0xff]  ;;  %v10557_v56 = vld [vmem:[#allocation286_spill] sm:$0xff] }
 0xb53   :  { %4229 = vmatprep.mubr.f32.mxu1 %v4162_v40  ;;  %6081 = vmatprep.subr.bf16.mxu0 %v10498_v59  ;;  %v10556_v40 = vld [vmem:[#allocation285_spill] sm:$0xff] }
 0xb54   :  { %6657 = vmatprep.subr.bf16.mxu1 %v10498_v59  ;;  %v10558_v59 = vld [vmem:[#allocation287_spill] sm:$0xff] }
 0xb55   :  { %6083 = vmatpush1.bf16.msra.mxu0 %v10499_v41 }
 0xb56   :  { %6659 = vmatpush1.bf16.msra.mxu1 %v10499_v41  ;;  %6085 = vmatprep.subr.bf16.mxu0 %v10500_v51  ;;  %v10559_v41 = vld [vmem:[#allocation288_spill] sm:$0xff] }
 0xb57   :  { %6661 = vmatprep.subr.bf16.mxu1 %v10500_v51  ;;  %v3529_v51 = vpop.permute.xlu1 %3528 }
 0xb59   :  { %6087 = vmatpush1.bf16.msra.mxu0 %v10501_v22 }
 0xb5a   :  { %6663 = vmatpush1.bf16.msra.mxu1 %v10501_v22  ;;  %6089 = vmatprep.subr.bf16.mxu0 %v10502_v11 }
 0xb5b   :  { %6665 = vmatprep.subr.bf16.mxu1 %v10502_v11 }
 0xb5d   :  { %6091 = vmatpush1.bf16.msra.mxu0 %v10503_v5 }
 0xb5e   :  { %6667 = vmatpush1.bf16.msra.mxu1 %v10503_v5  ;;  %6093 = vmatprep.subr.bf16.mxu0 %v10504_v12 }
 0xb5f   :  { %6669 = vmatprep.subr.bf16.mxu1 %v10504_v12 }
 0xb61   :  { %6095 = vmatpush1.bf16.msra.mxu0 %v10505_v15 }
 0xb62   :  { %6671 = vmatpush1.bf16.msra.mxu1 %v10505_v15  ;;  %6097 = vmatprep.subr.bf16.mxu0 %v10506_v45 }
 0xb63   :  { %6673 = vmatprep.subr.bf16.mxu1 %v10506_v45 }
 0xb65   :  { %6099 = vmatpush1.bf16.msra.mxu0 %v10507_v53 }
 0xb66   :  { %6675 = vmatpush1.bf16.msra.mxu1 %v10507_v53  ;;  %6101 = vmatprep.subr.bf16.mxu0 %v10508_v3 }
 0xb67   :  { %6677 = vmatprep.subr.bf16.mxu1 %v10508_v3 }
 0xb69   :  { %6103 = vmatpush1.bf16.msra.mxu0 %v10509_v62 }
 0xb6a   :  { %6679 = vmatpush1.bf16.msra.mxu1 %v10509_v62  ;;  %6105 = vmatprep.subr.bf16.mxu0 %v10510_v60 }
 0xb6b   :  { %6681 = vmatprep.subr.bf16.mxu1 %v10510_v60 }
 0xb6d   :  { %6107 = vmatpush1.bf16.msra.mxu0 %v10511_v33 }
 0xb6e   :  { %6683 = vmatpush1.bf16.msra.mxu1 %v10511_v33  ;;  %6109 = vmatprep.subr.bf16.mxu0 %v10512_v28 }
 0xb6f   :  { %6685 = vmatprep.subr.bf16.mxu1 %v10512_v28 }
 0xb71   :  { %6111 = vmatpush1.bf16.msra.mxu0 %v10513_v31 }
 0xb72   :  { %6687 = vmatpush1.bf16.msra.mxu1 %v10513_v31  ;;  %6113 = vmatprep.subr.bf16.mxu0 %v10514_v29 }
 0xb73   :  { %6689 = vmatprep.subr.bf16.mxu1 %v10514_v29 }
 0xb75   :  { %6115 = vmatpush1.bf16.msra.mxu0 %v10515_v32 }
 0xb76   :  { %6691 = vmatpush1.bf16.msra.mxu1 %v10515_v32  ;;  %6117 = vmatprep.subr.bf16.mxu0 %v10516_v46 }
 0xb77   :  { %6693 = vmatprep.subr.bf16.mxu1 %v10516_v46 }
 0xb79   :  { %6119 = vmatpush1.bf16.msra.mxu0 %v10517_v54 }
 0xb7a   :  { %6695 = vmatpush1.bf16.msra.mxu1 %v10517_v54  ;;  %6121 = vmatprep.subr.bf16.mxu0 %v10518_v61 }
 0xb7b   :  { %6697 = vmatprep.subr.bf16.mxu1 %v10518_v61 }
 0xb7d   :  { %6123 = vmatpush1.bf16.msra.mxu0 %v10519_v4 }
 0xb7e   :  { %6699 = vmatpush1.bf16.msra.mxu1 %v10519_v4  ;;  %6125 = vmatprep.subr.bf16.mxu0 %v10520_v37 }
 0xb7f   :  { %6701 = vmatprep.subr.bf16.mxu1 %v10520_v37 }
 0xb81   :  { %6127 = vmatpush1.bf16.msra.mxu0 %v10521_v6 }
 0xb82   :  { %6703 = vmatpush1.bf16.msra.mxu1 %v10521_v6  ;;  %6129 = vmatprep.subr.bf16.mxu0 %v10522_v7 }
 0xb83   :  { %6705 = vmatprep.subr.bf16.mxu1 %v10522_v7 }
 0xb85   :  { %6131 = vmatpush1.bf16.msra.mxu0 %v10523_v39 }
 0xb86   :  { %6707 = vmatpush1.bf16.msra.mxu1 %v10523_v39  ;;  %6133 = vmatprep.subr.bf16.mxu0 %v10524_v14 }
 0xb87   :  { %6709 = vmatprep.subr.bf16.mxu1 %v10524_v14 }
 0xb89   :  { %6135 = vmatpush1.bf16.msra.mxu0 %v10525_v55 }
 0xb8a   :  { %6711 = vmatpush1.bf16.msra.mxu1 %v10525_v55  ;;  %6137 = vmatprep.subr.bf16.mxu0 %v10526_v63 }
 0xb8b   :  { %6713 = vmatprep.subr.bf16.mxu1 %v10526_v63 }
 0xb8d   :  { %6139 = vmatpush1.bf16.msra.mxu0 %v10527_v57 }
 0xb8e   :  { %6715 = vmatpush1.bf16.msra.mxu1 %v10527_v57  ;;  %6141 = vmatprep.subr.bf16.mxu0 %v10528_v42 }
 0xb8f   :  { %6717 = vmatprep.subr.bf16.mxu1 %v10528_v42 }
 0xb90   :  { %3445 = vmatmul.mubr.f32.vlgmr.msra.gmra.mrb[30].mxu0 %v3376_v9 }
 0xb91   :  { %4230 = vmatmul.mubr.f32.vlgmr.msra.gmra.mrb[34].mxu1 %v4161_v26  ;;  %6143 = vmatpush1.bf16.msra.mxu0 %v10529_v23 }
 0xb92   :  { %3517 = vmatprep.mubr.f32.mxu0 %v8752_v50  ;;  %6719 = vmatpush1.bf16.msra.mxu1 %v10529_v23  ;;  %v10534_v50 = vld [vmem:[#allocation263_spill] sm:$0xff] }
 0xb93   :  { %4302 = vmatprep.mubr.f32.mxu1 %v8764_v17  ;;  %6145 = vmatprep.subr.bf16.mxu0 %v10530_v49  ;;  %v10535_v17 = vld [vmem:[#allocation264_spill] sm:$0xff] }
 0xb94   :  { %6721 = vmatprep.subr.bf16.mxu1 %v10530_v49 }
 0xb95   :  { %6147 = vmatpush1.bf16.msra.mxu0 %v10531_v44 }
 0xb96   :  { %6723 = vmatpush1.bf16.msra.mxu1 %v10531_v44  ;;  %6149 = vmatprep.subr.bf16.mxu0 %v10532_v43 }
 0xb97   :  { %6725 = vmatprep.subr.bf16.mxu1 %v10532_v43  ;;  %v135_v43 = vld [vmem:[%s9254_s11] sm:$0xf]  ;;  %s7027_s11 = smov [#allocation10]  }
 0xb98   :  { %s4386_s6 = sshll.u32 %s7027_s11, 4  ;;  %s4387_s6 = int_to_ptr.vmem [resolvable:$true] %s4386_s6 }
 0xb99   :  { %6151 = vmatpush1.bf16.msra.mxu0 %v10533_v8  ;;  %p6990_p5 = scmp.lt.s32.totalorder %s4387_s6, %s4387_s6 }
 0xb9a   :  { %6727 = vmatpush1.bf16.msra.mxu1 %v10533_v8  ;;  %6153 = vmatprep.subr.bf16.mxu0 %v10534_v50 }
 0xb9b   :  { %6729 = vmatprep.subr.bf16.mxu1 %v10534_v50 }
 0xb9d   :  { %6155 = vmatpush1.bf16.msra.mxu0 %v10535_v17 }
 0xb9e   :  { %6731 = vmatpush1.bf16.msra.mxu1 %v10535_v17  ;;  %6157 = vmatprep.subr.bf16.mxu0 %v10536_v35  ;;  %v136_v17 = vld [vmem:[%s9255_s12] sm:$0xf]  ;;  %s6985_s12 = scalar_lea.vmem %s4387_s6, 256 }
 0xb9f   :  { %6733 = vmatprep.subr.bf16.mxu1 %v10536_v35  ;;  %p6986_p4 = scmp.ne.s32.totalorder %s4387_s6, %s6985_s12  ;;  %p6991_p6 = scmp.lt.s32.totalorder %s6985_s12, %s6985_s12 }
 0xba1   :  { %6159 = vmatpush1.bf16.msra.mxu0 %v10537_v52  ;;  %p6992_p7 = por %p6991_p6, %p6990_p5 }
 0xba2   :  { %6735 = vmatpush1.bf16.msra.mxu1 %v10537_v52  ;;  %6161 = vmatprep.subr.bf16.mxu0 %v10538_v48 }
 0xba3   :  { %6737 = vmatprep.subr.bf16.mxu1 %v10538_v48  ;;  %p6993_p8 = pnand %p6992_p7, %p6986_p4 }
 0xba5   :  { %6163 = vmatpush1.bf16.msra.mxu0 %v10539_v21 }
 0xba6   :  { %6739 = vmatpush1.bf16.msra.mxu1 %v10539_v21  ;;  %6165 = vmatprep.subr.bf16.mxu0 %v10540_v24 }
 0xba7   :  { %6741 = vmatprep.subr.bf16.mxu1 %v10540_v24 }
 0xba9   :  { %6167 = vmatpush1.bf16.msra.mxu0 %v10541_v25 }
 0xbaa   :  { %6743 = vmatpush1.bf16.msra.mxu1 %v10541_v25  ;;  %6169 = vmatprep.subr.bf16.mxu0 %v10542_v1 }
 0xbab   :  { %6745 = vmatprep.subr.bf16.mxu1 %v10542_v1 }
 0xbad   :  { %6171 = vmatpush1.bf16.msra.mxu0 %v10543_v38 }
 0xbae   :  { %6747 = vmatpush1.bf16.msra.mxu1 %v10543_v38  ;;  %6173 = vmatprep.subr.bf16.mxu0 %v10544_v47 }
 0xbaf   :  { %6749 = vmatprep.subr.bf16.mxu1 %v10544_v47 }
 0xbb1   :  { %6175 = vmatpush1.bf16.msra.mxu0 %v10545_v18 }
 0xbb2   :  { %6751 = vmatpush1.bf16.msra.mxu1 %v10545_v18  ;;  %6177 = vmatprep.subr.bf16.mxu0 %v10546_v13 }
 0xbb3   :  { %6753 = vmatprep.subr.bf16.mxu1 %v10546_v13 }
 0xbb5   :  { %6179 = vmatpush1.bf16.msra.mxu0 %v10547_v10 }
 0xbb6   :  { %6755 = vmatpush1.bf16.msra.mxu1 %v10547_v10  ;;  %6181 = vmatprep.subr.bf16.mxu0 %v10548_v36 }
 0xbb7   :  { %6757 = vmatprep.subr.bf16.mxu1 %v10548_v36 }
 0xbb9   :  { %6183 = vmatpush1.bf16.msra.mxu0 %v10549_v16 }
 0xbba   :  { %6759 = vmatpush1.bf16.msra.mxu1 %v10549_v16  ;;  %6185 = vmatprep.subr.bf16.mxu0 %v10550_v19 }
 0xbbb   :  { %6761 = vmatprep.subr.bf16.mxu1 %v10550_v19 }
 0xbbd   :  { %6187 = vmatpush1.bf16.msra.mxu0 %v10551_v58 }
 0xbbe   :  { %6763 = vmatpush1.bf16.msra.mxu1 %v10551_v58  ;;  %6189 = vmatprep.subr.bf16.mxu0 %v10552_v20 }
 0xbbf   :  { %6765 = vmatprep.subr.bf16.mxu1 %v10552_v20 }
 0xbc1   :  { %6191 = vmatpush1.bf16.msra.mxu0 %v10553_v27 }
 0xbc2   :  { %6767 = vmatpush1.bf16.msra.mxu1 %v10553_v27  ;;  %6193 = vmatprep.subr.bf16.mxu0 %v10554_v0 }
 0xbc3   :  { %6769 = vmatprep.subr.bf16.mxu1 %v10554_v0 }
 0xbc5   :  { %6195 = vmatpush1.bf16.msra.mxu0 %v10555_v34 }
 0xbc6   :  { %6771 = vmatpush1.bf16.msra.mxu1 %v10555_v34  ;;  %6197 = vmatprep.subr.bf16.mxu0 %v10556_v40 }
 0xbc7   :  { %6773 = vmatprep.subr.bf16.mxu1 %v10556_v40 }
 0xbc9   :  { %6199 = vmatpush1.bf16.msra.mxu0 %v10557_v56 }
 0xbca   :  { %6775 = vmatpush1.bf16.msra.mxu1 %v10557_v56  ;;  %6201 = vmatprep.subr.bf16.mxu0 %v10558_v59 }
 0xbcb   :  { %6777 = vmatprep.subr.bf16.mxu1 %v10558_v59 }
 0xbcd   :  { %6203 = vmatpush1.bf16.msra.mxu0 %v10559_v41 }
 0xbce   :  { %6779 = vmatpush1.bf16.msra.mxu1 %v10559_v41 }
 0xbd0   :  { %3518 = vmatmul.mubr.f32.vlgmr.msra.gmra.mrb[30].mxu0 %v8748_v30 }
 0xbd1   :  { %4303 = vmatmul.mubr.f32.vlgmr.msra.gmra.mrb[34].mxu1 %v8762_v2 }
 0xca3   :  { %v3519_v22 = vpop.f32.mrb[30].mxu0 }
 0xca4   :  { %v3531_v11 = vadd.f32 %v3529_v51, %v3519_v22  ;;  %v4304_v5 = vpop.f32.mrb[34].mxu1  ;;  %v3521_v12 = vpop.f32.mrb[31].mxu0 }
 0xca5   :  { %v4311_v15 = vadd.f32 %v4304_v5, %v3529_v51  ;;  %v3532_v45 = vadd.f32 %v3529_v51, %v3521_v12  ;;  %v4306_v53 = vpop.f32.mrb[35].mxu1 }
 0xca6   :  { %v4312_v3 = vadd.f32 %v4306_v53, %v3529_v51  ;;  %v4313_v62 = vsel %vm230_vm1, %v3531_v11, 0.0  ;;  %v4318_v60 = vmul.f32 %v3531_v11, %v3531_v11 }
 0xca7   :  { %v4314_v33 = vsel %vm230_vm1, %v3532_v45, 0.0  ;;  %v4325_v28 = vsel %vm230_vm1, %v4311_v15, 0.0  ;;  %v4319_v31 = vmul.f32 %v3532_v45, %v3532_v45  ;;  %v4331_v29 = vmul.f32 %v4311_v15, %v4311_v15 }
 0xca8   :  { %v4315_v30 = vadd.f32 %v4314_v33, %v4313_v62  ;;  %v4326_v2 = vsel %vm230_vm1, %v4312_v3, 0.0  ;;  %v4320_v46 = vsel %vm230_vm1, %v4318_v60, 0.0  ;;  %v4332_v61 = vmul.f32 %v4312_v3, %v4312_v3 }
 0xca9   :  { %v4327_v32 = vadd.f32 %v4326_v2, %v4325_v28  ;;  %v4321_v54 = vsel %vm230_vm1, %v4319_v31, 0.0  ;;  %v4333_v37 = vsel %vm230_vm1, %v4331_v29, 0.0 }
 0xcaa   :  { %4316 = vadd.xlane.f32.xlu0 %v4315_v30  ;;  %v4322_v4 = vadd.f32 %v4321_v54, %v4320_v46  ;;  %v4334_v6 = vsel %vm230_vm1, %v4332_v61, 0.0 }
 0xcab   :  { %4328 = vadd.xlane.f32.xlu1 %v4327_v32  ;;  %v4335_v7 = vadd.f32 %v4334_v6, %v4333_v37 }
 0xcae   :  { %4323 = vadd.xlane.f32.xlu0 %v4322_v4 }
 0xcb2   :  { %4336 = vadd.xlane.f32.xlu0 %v4335_v7 }
 0xd37   :  { %v4317_v39 = vpop.xlane.xlu0 %4316 }
 0xd38   :  { %v4329_v14 = vpop.xlane.xlu1 %4328 }
 0xd39   :  { %v4330_v55 = vadd.f32 %v4329_v14, %v4317_v39 }
 0xd3b   :  { %v4324_v63 = vpop.xlane.xlu0 %4323  ;;  %v4339_v57 = vmul.f32 0.001953125, %v4330_v55 }
 0xd3d   :  { %v4341_v26 = vmul.f32 %v4339_v57, %v4339_v57 }
 0xd3f   :  { %v4337_v9 = vpop.xlane.xlu0 %4336 }
 0xd40   :  { %v4338_v42 = vadd.f32 %v4337_v9, %v4324_v63 }
 0xd42   :  { %v4340_v23 = vmul.f32 0.001953125, %v4338_v42 }
 0xd44   :  { %v4342_v49 = vsub.f32 %v4340_v23, %v4341_v26 }
 0xd46   :  { %v4343_v44 = vadd.f32 1e-05, %v4342_v49 }
 0xd48   :  { %6885 = vrsqrt.f32 %v4343_v44 }
 0xd52   :  { %v6886_v8 = vpop.eup %6885 }
 0xd53   :  { %v4345_v50 = vmul.f32 %v6886_v8, %v135_v43 }
 0xd55   :  { %4350 = vperm.xlu0 %6879, %v4345_v50   ;;  %v4346_v35 = vmul.f32 %v4345_v50, %v4339_v57 }
 0xd57   :  { %v4347_v52 = vsub.f32 %v136_v17, %v4346_v35 }
 0xd59   :  { %4357 = vperm.xlu0 %6879, %v4347_v52  }
 0xdd4   :  { %v4351_v48 = vpop.permute.xlu0 %4350 }
 0xdd5   :  { %v4353_v21 = vmul.f32 %v4351_v48, %v3531_v11  ;;  %v4354_v24 = vmul.f32 %v4351_v48, %v3532_v45  ;;  %v4364_v25 = vmul.f32 %v4351_v48, %v4311_v15  ;;  %v4365_v1 = vmul.f32 %v4351_v48, %v4312_v3 }
 0xdd8   :  { %v4358_v38 = vpop.permute.xlu0 %4357 }
 0xdd9   :  { %v4360_v47 = vadd.f32 %v4358_v38, %v4353_v21  ;;  %v4361_v18 = vadd.f32 %v4358_v38, %v4354_v24  ;;  %v4366_v13 = vadd.f32 %v4364_v25, %v4358_v38  ;;  %v4367_v10 = vadd.f32 %v4365_v1, %v4358_v38 }
 0xddb   :  { %v4362_v36 = vmax.f32 %v4360_v47, 0.0  ;;  %v4363_v16 = vmax.f32 %v4361_v18, 0.0  ;;  %v4368_v19 = vmax.f32 %v4366_v13, 0.0  ;;  %v4369_v58 = vmax.f32 %v4367_v10, 0.0 }
 0xddd   :  { %v4372_v20 = vcombine.low %v4362_v36, %v4363_v16  ;;  %v4377_v27 = vcombine.low %v4368_v19, %v4369_v58 }
 0xddf   :  { %4374 = vst [vmem:[#allocation10] sm:$0xff] %v4372_v20  ;;  %4380 = vst [vmem:[#allocation10 + $0x8] sm:$0xff] %v4377_v27 }
 0xde0   :  { %6996 = shalt.err (!%p6993_p8)
}
 0xde1   :  { %s6997_s21 = scalar_lea.hbm %s9256_s13, 256 }
 0xde2   :  { %p6998_p9 = scmp.ne.s32.totalorder %s9256_s13, %s6997_s21  ;;  %p7001_p10 = scmp.lt.u32.totalorder %s6997_s21, %s9256_s13 }
 0xde4   :  { %p7003_p11 = pnand %p7001_p10, %p6998_p9 }
 0xde6   :  { %7006 = shalt.err (!%p7003_p11)
}
 0xde7   :  { %4392 = dma.vmem_to_hbm [thread:$0]  %s4387_s6, 256, %s9256_s13, [#allocation4], %s7016_s18, %s7016_s18, %s7017_s19  }
 0xde8   :  { %7013 = dma.done.wait [#allocation4], 256  }
 0xde9   :  { %7014 = vsyncadd [#allocation4], 4294967040 }
 0xdea   :  { %4396 = vsyncpa [#allocation3], 1 }
 0xdeb   :  { %4397 = vsyncpa [#allocation6], 1 }
 0xdec   :  { %4398 = vsyncpa [#allocation9], 1 }
 0xded   :  { %4399 = vsyncpa [#allocation4], 1 }

</bundles_post_ra>
